<compile_context>
chip_gen: v7x
topology: tpu7x:2x2x1
jax: 0.10.0
libtpu: 0.0.40
codegen_flags: <defaults>
</compile_context>

<pallas_src>
import functools

import numpy as np

import jax
import jax.numpy as jnp
from jax.experimental import pallas as pl
from jax.experimental.pallas import tpu as pltpu


_LANE_CHUNK = 256  # lanes per accumulation chunk (keeps the 9-tap acc in vregs)


# ------------------------------ Pallas kernel ------------------------------ #

def _head_kernel(x_ref, w1_ref, w2_ref, w3_ref, w4_ref, b1_ref, b2_ref,
                 mask_ref, misc_ref, o_ref, sa_ref, sb_ref, *, H0, W0):
    """Fully fused DepthPredictHead2Up for one batch element.

    Layouts (all f32, 64 rows = channel x phase, raw-resolution lanes):
      x_ref   : (1, 64, L)   raw input channels, zero halo, flattened spatial
                             (lane = (h+1)*P + (w+1), P = W0+2, +2 slack).
      wK_ref  : (9, 64, 64)  conv-K coarse-shift tap matrices (BN folded,
                             PixelShuffles absorbed).
      b1/b2   : (64, 1)      per-row biases (BN shift) for conv1 / conv2.
      mask    : (1, Qc)      1.0 on valid columns (w < W0), 0.0 on tails.
      misc    : SMEM (4,)    [shift3, shift4, w5*scale5, shift5].
      o_ref   : (1, 64, L)   phase-separated output slab (padded lanes).
      sa/sb   : (64, L)      ping-pong activation scratch.
    """
    f32 = jnp.float32
    P = W0 + 2                       # padded row stride (lanes per image row)
    Qc = H0 * P                      # lanes covering the H0 valid rows
    L = (H0 + 2) * P + 2             # buffer length (halo rows + tap slack)
    top = P + 1                      # first interior lane (= pixel (0, 0))

    # Zero ONLY the halo regions of the scratch slabs (top pad row + row-0 left
    # halo, bottom pad row + slack).  Interiors are fully rewritten below and
    # tail columns are masked to zero, so no full-slab zeroing is needed.
    halo_zeros = jnp.zeros((64, P + 1), f32)
    for buf in (sa_ref, sb_ref):
        buf[:, 0:P + 1] = halo_zeros
        buf[:, (H0 + 1) * P + 1:L] = halo_zeros

    def conv(read, w_ref, out_ref, bias):
        # 3x3 conv + BN + ReLU as 9 accumulating coarse-shift matmuls.  No
        # im2col buffer: each tap streams a shifted lane window straight into
        # the MXU; the accumulator stays in vregs (one lane chunk at a time)
        # and the interior gets exactly one masked store per chunk.
        for q0 in range(0, Qc, _LANE_CHUNK):
            qn = min(_LANE_CHUNK, Qc - q0)
            acc = None
            for t in range(9):
                dy, dx = divmod(t, 3)
                src = read(dy * P + dx + q0, qn)                  # (64, qn)
                part = jnp.dot(w_ref[t], src, preferred_element_type=f32)
                acc = part if acc is None else acc + part
            v = jnp.maximum(acc + bias, 0.0) * mask_ref[:, q0:q0 + qn]
            out_ref[:, top + q0: top + q0 + qn] = v

    read_x = lambda off, n: x_ref[0, :, off:off + n]
    read_a = lambda off, n: sa_ref[:, off:off + n]
    read_b = lambda off, n: sb_ref[:, off:off + n]

    conv(read_x, w1_ref, sb_ref, b1_ref[...])       # shuffle1 + conv1 : x -> B
    conv(read_b, w2_ref, sa_ref, b2_ref[...])       # shuffle2 + conv2 : B -> A
    conv(read_a, w3_ref, sb_ref, misc_ref[0])       # shuffle3 + conv3 : A -> B
    conv(read_b, w4_ref, sa_ref, misc_ref[1])       #            conv4 : B -> A

    # conv5 (1x1) + BN + ReLU + softplus(beta=1, threshold=20), fused; one
    # lane-dense store of the whole padded slab (wrapper strips halo lanes).
    w5 = misc_ref[2]
    b5 = misc_ref[3]
    for q0 in range(0, L, _LANE_CHUNK):
        qn = min(_LANE_CHUNK, L - q0)
        z = jnp.maximum(sa_ref[:, q0:q0 + qn] * w5 + b5, 0.0)
        o_ref[0, :, q0:q0 + qn] = jnp.where(
            z > 20.0, z, jnp.log1p(jnp.exp(jnp.minimum(z, 20.0))))


def _fused_head_pallas(x_flat, ops, *, H0, W0):
    N = x_flat.shape[0]
    P = W0 + 2
    Qc = H0 * P
    L = (H0 + 2) * P + 2
    assert x_flat.shape == (N, 64, L)

    # 1.0 on valid output columns, 0.0 on the two tail columns of every row
    # (keeps the next stage's halo columns zero).  Constant input: DMA'd once.
    mask = jnp.asarray((np.arange(Qc) % P < W0).astype(np.float32)).reshape(1, Qc)

    kernel = functools.partial(_head_kernel, H0=H0, W0=W0)
    full3 = lambda n: (0, 0, 0)
    full2 = lambda n: (0, 0)

    return pl.pallas_call(
        kernel,
        out_shape=jax.ShapeDtypeStruct((N, 64, L), jnp.float32),
        grid=(N,),
        in_specs=[
            pl.BlockSpec((1, 64, L), lambda n: (n, 0, 0)),    # input slab
            pl.BlockSpec((9, 64, 64), full3),                 # conv1 tap mats
            pl.BlockSpec((9, 64, 64), full3),                 # conv2 tap mats
            pl.BlockSpec((9, 64, 64), full3),                 # conv3 tap mats
            pl.BlockSpec((9, 64, 64), full3),                 # conv4 tap mats
            pl.BlockSpec((64, 1), full2),                     # conv1 bias
            pl.BlockSpec((64, 1), full2),                     # conv2 bias
            pl.BlockSpec((1, Qc), full2),                     # valid-col mask
            pl.BlockSpec(memory_space=pltpu.MemorySpace.SMEM),  # scalars
        ],
        out_specs=pl.BlockSpec((1, 64, L), lambda n: (n, 0, 0)),
        scratch_shapes=[pltpu.VMEM((64, L), jnp.float32),
                        pltpu.VMEM((64, L), jnp.float32)],
        compiler_params=pltpu.CompilerParams(
            dimension_semantics=("parallel",),
            vmem_limit_bytes=32 * 1024 * 1024),
    )(x_flat, ops["M1"], ops["M2"], ops["M3"], ops["M4"],
      ops["b1"], ops["b2"], mask, ops["misc"])


# ---------------------- parameter folding / wrapper ------------------------ #

def prepare_head_params(params):
    """Host-side (NOT jit-traceable): fold eval-mode BN into the conv weights
    and rebuild them as per-coarse-shift tap matrices for the phase-separated
    layout (all three PixelShuffles are absorbed into these matrices)."""
    def fold(p):
        w = np.asarray(p["w"], np.float32)
        s = np.asarray(p["scale"], np.float32)
        return w * s.reshape(1, 1, 1, -1), np.asarray(p["shift"], np.float32)

    w1, s1 = fold(params["conv1"])   # (3,3,16,16)
    w2, s2 = fold(params["conv2"])   # (3,3,4,4)
    w3, s3 = fold(params["conv3"])   # (3,3,1,1)
    w4, s4 = fold(params["conv4"])   # (3,3,1,1)
    w5, s5 = fold(params["conv5"])   # (1,1,1,1)

    r1 = lambda u, a, b: u * 4 + a * 2 + b      # Y1 rep rows (u<16, a,b<2)
    r2 = lambda v, a, b: v * 16 + a * 4 + b     # Y2 rep rows (v<4,  a,b<4)
    r3 = lambda a, b: a * 8 + b                 # Y3/Y4/out rep rows (a,b<8)
    tix = lambda dh, dw: (dh + 1) * 3 + (dw + 1)

    M1 = np.zeros((9, 64, 64), np.float32)
    M2 = np.zeros((9, 64, 64), np.float32)
    M3 = np.zeros((9, 64, 64), np.float32)
    M4 = np.zeros((9, 64, 64), np.float32)
    b1 = np.zeros((64, 1), np.float32)
    b2 = np.zeros((64, 1), np.float32)

    # conv1: 3x3 on the 2x-shuffled input; input rows = raw channels.
    for uo in range(16):
        for a in range(2):
            for b in range(2):
                b1[r1(uo, a, b), 0] = s1[uo]
                for dy in range(3):
                    for dx in range(3):
                        ay, bx = a + dy - 1, b + dx - 1
                        ap, dh = ay % 2, ay // 2
                        bp, dw = bx % 2, bx // 2
                        for ui in range(16):
                            M1[tix(dh, dw), r1(uo, a, b),
                               4 * ui + 2 * ap + bp] += w1[dy, dx, ui, uo]

    # conv2: 3x3 on the 4x-shuffled image (shuffle-2 absorbed into the taps).
    for vo in range(4):
        for a in range(4):
            for b in range(4):
                b2[r2(vo, a, b), 0] = s2[vo]
                for dy in range(3):
                    for dx in range(3):
                        ay, bx = a + dy - 1, b + dx - 1
                        ap, dh = ay % 4, ay // 4
                        bp, dw = bx % 4, bx // 4
                        for vi in range(4):
                            row_in = r1(4 * vi + 2 * (ap % 2) + (bp % 2),
                                        ap // 2, bp // 2)
                            M2[tix(dh, dw), r2(vo, a, b), row_in] += \
                                w2[dy, dx, vi, vo]

    # conv3: 3x3 on the 8x-shuffled image (shuffle-3 absorbed into the taps).
    for a in range(8):
        for b in range(8):
            for dy in range(3):
                for dx in range(3):
                    ay, bx = a + dy - 1, b + dx - 1
                    ap, dh = ay % 8, ay // 8
                    bp, dw = bx % 8, bx // 8
                    row_in = r2(2 * (ap % 2) + (bp % 2), ap // 2, bp // 2)
                    M3[tix(dh, dw), r3(a, b), row_in] += w3[dy, dx, 0, 0]

    # conv4: 3x3 on the (already phase-separated) full-resolution image.
    for a in range(8):
        for b in range(8):
            for dy in range(3):
                for dx in range(3):
                    ay, bx = a + dy - 1, b + dx - 1
                    ap, dh = ay % 8, ay // 8
                    bp, dw = bx % 8, bx // 8
                    M4[tix(dh, dw), r3(a, b), r3(ap, bp)] += w4[dy, dx, 0, 0]

    misc = np.array([s3[0], s4[0], float(w5[0, 0, 0, 0]), s5[0]], np.float32)
    return dict(M1=jnp.asarray(M1), M2=jnp.asarray(M2), M3=jnp.asarray(M3),
                M4=jnp.asarray(M4), b1=jnp.asarray(b1), b2=jnp.asarray(b2),
                misc=jnp.asarray(misc))


def depth_predict_head2up(x_nchw, ops):
    """Pallas implementation of DepthPredictHead2Up.forward (NCHW in / out).
    `ops` must come from prepare_head_params()."""
    N, C, H0, W0 = x_nchw.shape
    assert C == 64, "fused kernel is specialised to in_channels == 64"
    P = W0 + 2

    # Zero halo + flatten spatial into lanes (+2 slack lanes for the widest
    # shifted tap read).  Only wrapper-side input pass; the PixelShuffles are
    # absorbed into the kernel's tap matrices.
    xp = jnp.pad(x_nchw, ((0, 0), (0, 0), (1, 1), (1, 1)))
    x_flat = jnp.pad(xp.reshape(N, C, (H0 + 2) * P), ((0, 0), (0, 0), (0, 2)))

    rep = _fused_head_pallas(x_flat, ops, H0=H0, W0=W0)          # (N, 64, L)

    # De-phase-separate: rep row (8*alpha + beta) at raw (h, w) holds the depth
    # at (8h + alpha, 8w + beta).  Single XLA pass on the output.
    rep = rep[:, :, :(H0 + 2) * P].reshape(N, 64, H0 + 2, P)
    rep = rep[:, :, 1:H0 + 1, 1:W0 + 1]
    rep = rep.reshape(N, 8, 8, H0, W0).transpose(0, 3, 1, 4, 2)
    return rep.reshape(N, 1, 8 * H0, 8 * W0)


# ---------------------------- pure-JAX reference ---------------------------- #

def _pixel_shuffle_nhwc(x, r):
    N, H, W, C = x.shape
    c = C // (r * r)
    x = x.reshape(N, H, W, c, r, r).transpose(0, 1, 4, 2, 5, 3)
    return x.reshape(N, H * r, W * r, c)


def _conv_bn_relu_ref(x, p, *, padding):
    w, scale, shift = p["w"], p["scale"], p["shift"]
    Cout = w.shape[-1]
    y = jax.lax.conv_general_dilated(
        x, w, window_strides=(1, 1),
        padding=[(padding, padding), (padding, padding)],
        dimension_numbers=("NHWC", "HWIO", "NHWC"),
        precision=jax.lax.Precision.HIGHEST)
    y = y * scale.reshape(1, 1, 1, Cout) + shift.reshape(1, 1, 1, Cout)
    return jnp.maximum(y, 0.0)


def ref_forward(x_nchw, params):
    x = jnp.transpose(x_nchw, (0, 2, 3, 1))
    x = _pixel_shuffle_nhwc(x, 2)
    x = _conv_bn_relu_ref(x, params["conv1"], padding=1)
    x = _pixel_shuffle_nhwc(x, 2)
    x = _conv_bn_relu_ref(x, params["conv2"], padding=1)
    x = _pixel_shuffle_nhwc(x, 2)
    x = _conv_bn_relu_ref(x, params["conv3"], padding=1)
    x = _conv_bn_relu_ref(x, params["conv4"], padding=1)
    x = _conv_bn_relu_ref(x, params["conv5"], padding=0)
    x = jnp.where(x > 20.0, x, jnp.log1p(jnp.exp(jnp.minimum(x, 20.0))))
    return jnp.transpose(x, (0, 3, 1, 2))


def make_conv_params(key, Cin, Cout, K):
    """Deterministic conv weight + folded eval-mode BatchNorm params."""
    kw, kg, kb, km, kv = jax.random.split(key, 5)
    w = jax.random.normal(kw, (K, K, Cin, Cout), jnp.float32)
    w = w * (1.0 / (K * K * Cin) ** 0.5)
    gamma = 1.0 + 0.1 * jax.random.normal(kg, (Cout,), jnp.float32)
    beta = 0.1 * jax.random.normal(kb, (Cout,), jnp.float32)
    mean = 0.1 * jax.random.normal(km, (Cout,), jnp.float32)
    var = 1.0 + 0.1 * jax.random.uniform(kv, (Cout,), jnp.float32)
    eps = 1e-5
    scale = gamma / jnp.sqrt(var + eps)
    shift = beta - mean * scale
    return dict(w=w, scale=scale, shift=shift)


# ----------------------------------- main ----------------------------------- #

if __name__ == "__main__":
    key = jax.random.PRNGKey(0)
    k_x, k1, k2, k3, k4, k5 = jax.random.split(key, 6)

    # in_channels must be divisible by 64; smallest interesting config.
    N, C, H0, W0 = 2, 64, 4, 4
    x = jax.random.normal(k_x, (N, C, H0, W0), jnp.float32)     # NCHW like torch

    params = {
        "conv1": make_conv_params(k1, C // 4, C // 4, 3),        # 16 -> 16
        "conv2": make_conv_params(k2, C // 16, C // 16, 3),      # 4  -> 4
        "conv3": make_conv_params(k3, C // 64, C // 64, 3),      # 1  -> 1
        "conv4": make_conv_params(k4, C // 64, C // 64, 3),      # 1  -> 1
        "conv5": make_conv_params(k5, C // 64, 1, 1),            # 1  -> 1, 1x1
    }

    ops = prepare_head_params(params)        # host-side BN fold + tap matrices
    fwd = jax.jit(depth_predict_head2up)
    out = jax.block_until_ready(fwd(x, ops))
    assert out.shape == (N, 1, 8 * H0, 8 * W0), out.shape
    assert bool(jnp.all(out >= 0.0))                             # softplus output

    ref = jax.block_until_ready(jax.jit(ref_forward)(x, params))
    err = float(jnp.max(jnp.abs(out - ref)))
    assert err < 5e-3, f"max abs err vs reference: {err}"

    print("KERNEL_OK")
</pallas_src>

<mosaic_0001>
module attributes {stable_mosaic.version = 11 : i64} {
  func.func @_head_kernel(%arg0: i32, %arg1: memref<1x64x38xf32, #tpu.memory_space<vmem>>, %arg2: memref<9x64x64xf32, #tpu.memory_space<vmem>>, %arg3: memref<9x64x64xf32, #tpu.memory_space<vmem>>, %arg4: memref<9x64x64xf32, #tpu.memory_space<vmem>>, %arg5: memref<9x64x64xf32, #tpu.memory_space<vmem>>, %arg6: memref<64x1xf32, #tpu.memory_space<vmem>>, %arg7: memref<64x1xf32, #tpu.memory_space<vmem>>, %arg8: memref<1x24xf32, #tpu.memory_space<vmem>>, %arg9: memref<4xf32, #tpu.memory_space<smem>>, %arg10: memref<1x64x38xf32, #tpu.memory_space<vmem>>, %arg11: memref<64x38xf32, #tpu.memory_space<vmem>>, %arg12: memref<64x38xf32, #tpu.memory_space<vmem>>) attributes {dimension_semantics = [#tpu.dimension_semantics<parallel>], iteration_bounds = array<i64: 2>, scalar_prefetch = 0 : i64, scratch_operands = 2 : i64, tpu.core_type = #tpu.core_type<tc>, window_params = [{transform_indices = @transform_0, window_bounds = array<i64: 1, 64, 38>}, {pipeline_mode = #tpu.pipeline_mode<synchronous>, transform_indices = @transform_1, window_bounds = array<i64: 9, 64, 64>}, {pipeline_mode = #tpu.pipeline_mode<synchronous>, transform_indices = @transform_2, window_bounds = array<i64: 9, 64, 64>}, {pipeline_mode = #tpu.pipeline_mode<synchronous>, transform_indices = @transform_3, window_bounds = array<i64: 9, 64, 64>}, {pipeline_mode = #tpu.pipeline_mode<synchronous>, transform_indices = @transform_4, window_bounds = array<i64: 9, 64, 64>}, {pipeline_mode = #tpu.pipeline_mode<synchronous>, transform_indices = @transform_5, window_bounds = array<i64: 64, 1>}, {pipeline_mode = #tpu.pipeline_mode<synchronous>, transform_indices = @transform_6, window_bounds = array<i64: 64, 1>}, {pipeline_mode = #tpu.pipeline_mode<synchronous>, transform_indices = @transform_7, window_bounds = array<i64: 1, 24>}, {transform_indices = @transform_8, window_bounds = array<i64: 4>}, {transform_indices = @transform_9, window_bounds = array<i64: 1, 64, 38>}]} {
    %cst = arith.constant 0.000000e+00 : f32
    %0 = vector.broadcast %cst : f32 to vector<64x7xf32>
    %c0 = arith.constant 0 : index
    %c0_0 = arith.constant 0 : index
    %1 = vector.load %arg11[%c0, %c0_0] : memref<64x38xf32, #tpu.memory_space<vmem>>, vector<64x7xf32>
    tpu.vector_store %arg11[%c0, %c0_0], %0 {strides = array<i32>} : memref<64x38xf32, #tpu.memory_space<vmem>>, vector<64x7xf32>,
    %c0_1 = arith.constant 0 : index
    %c31 = arith.constant 31 : index
    %2 = vector.load %arg11[%c0_1, %c31] : memref<64x38xf32, #tpu.memory_space<vmem>>, vector<64x7xf32>
    tpu.vector_store %arg11[%c0_1, %c31], %0 {strides = array<i32>} : memref<64x38xf32, #tpu.memory_space<vmem>>, vector<64x7xf32>,
    %c0_2 = arith.constant 0 : index
    %c0_3 = arith.constant 0 : index
    %3 = vector.load %arg12[%c0_2, %c0_3] : memref<64x38xf32, #tpu.memory_space<vmem>>, vector<64x7xf32>
    tpu.vector_store %arg12[%c0_2, %c0_3], %0 {strides = array<i32>} : memref<64x38xf32, #tpu.memory_space<vmem>>, vector<64x7xf32>,
    %c0_4 = arith.constant 0 : index
    %c31_5 = arith.constant 31 : index
    %4 = vector.load %arg12[%c0_4, %c31_5] : memref<64x38xf32, #tpu.memory_space<vmem>>, vector<64x7xf32>
    tpu.vector_store %arg12[%c0_4, %c31_5], %0 {strides = array<i32>} : memref<64x38xf32, #tpu.memory_space<vmem>>, vector<64x7xf32>,
    %c0_6 = arith.constant 0 : index
    %c0_7 = arith.constant 0 : index
    %5 = vector.load %arg6[%c0_6, %c0_7] : memref<64x1xf32, #tpu.memory_space<vmem>>, vector<64x1xf32>
    %c0_8 = arith.constant 0 : index
    %c0_9 = arith.constant 0 : index
    %c0_10 = arith.constant 0 : index
    %6 = vector.load %arg1[%c0_8, %c0_9, %c0_10] : memref<1x64x38xf32, #tpu.memory_space<vmem>>, vector<1x64x24xf32>
    %7 = vector.shape_cast %6 : vector<1x64x24xf32> to vector<64x24xf32>
    %c0_11 = arith.constant 0 : index
    %c0_12 = arith.constant 0 : index
    %c0_13 = arith.constant 0 : index
    %8 = vector.load %arg2[%c0_11, %c0_12, %c0_13] : memref<9x64x64xf32, #tpu.memory_space<vmem>>, vector<1x64x64xf32>
    %9 = vector.shape_cast %8 : vector<1x64x64xf32> to vector<64x64xf32>
    %cst_14 = arith.constant dense<0.000000e+00> : vector<64x24xf32>
    %10 = tpu.matmul %9, %7, %cst_14 {dimension_numbers = #tpu.dot_dimension_numbers<[1], [0], [0], [1], [0, 0, 1, 1], [], []>} : vector<64x64xf32>, vector<64x24xf32>, vector<64x24xf32> -> vector<64x24xf32>
    %c0_15 = arith.constant 0 : index
    %c0_16 = arith.constant 0 : index
    %c1 = arith.constant 1 : index
    %11 = vector.load %arg1[%c0_15, %c0_16, %c1] : memref<1x64x38xf32, #tpu.memory_space<vmem>>, vector<1x64x24xf32>
    %12 = vector.shape_cast %11 : vector<1x64x24xf32> to vector<64x24xf32>
    %c1_17 = arith.constant 1 : index
    %c0_18 = arith.constant 0 : index
    %c0_19 = arith.constant 0 : index
    %13 = vector.load %arg2[%c1_17, %c0_18, %c0_19] : memref<9x64x64xf32, #tpu.memory_space<vmem>>, vector<1x64x64xf32>
    %14 = vector.shape_cast %13 : vector<1x64x64xf32> to vector<64x64xf32>
    %cst_20 = arith.constant dense<0.000000e+00> : vector<64x24xf32>
    %15 = tpu.matmul %14, %12, %cst_20 {dimension_numbers = #tpu.dot_dimension_numbers<[1], [0], [0], [1], [0, 0, 1, 1], [], []>} : vector<64x64xf32>, vector<64x24xf32>, vector<64x24xf32> -> vector<64x24xf32>
    %16 = arith.addf %10, %15 : vector<64x24xf32>
    %c0_21 = arith.constant 0 : index
    %c0_22 = arith.constant 0 : index
    %c2 = arith.constant 2 : index
    %17 = vector.load %arg1[%c0_21, %c0_22, %c2] : memref<1x64x38xf32, #tpu.memory_space<vmem>>, vector<1x64x24xf32>
    %18 = vector.shape_cast %17 : vector<1x64x24xf32> to vector<64x24xf32>
    %c2_23 = arith.constant 2 : index
    %c0_24 = arith.constant 0 : index
    %c0_25 = arith.constant 0 : index
    %19 = vector.load %arg2[%c2_23, %c0_24, %c0_25] : memref<9x64x64xf32, #tpu.memory_space<vmem>>, vector<1x64x64xf32>
    %20 = vector.shape_cast %19 : vector<1x64x64xf32> to vector<64x64xf32>
    %cst_26 = arith.constant dense<0.000000e+00> : vector<64x24xf32>
    %21 = tpu.matmul %20, %18, %cst_26 {dimension_numbers = #tpu.dot_dimension_numbers<[1], [0], [0], [1], [0, 0, 1, 1], [], []>} : vector<64x64xf32>, vector<64x24xf32>, vector<64x24xf32> -> vector<64x24xf32>
    %22 = arith.addf %16, %21 : vector<64x24xf32>
    %c0_27 = arith.constant 0 : index
    %c0_28 = arith.constant 0 : index
    %c6 = arith.constant 6 : index
    %23 = vector.load %arg1[%c0_27, %c0_28, %c6] : memref<1x64x38xf32, #tpu.memory_space<vmem>>, vector<1x64x24xf32>
    %24 = vector.shape_cast %23 : vector<1x64x24xf32> to vector<64x24xf32>
    %c3 = arith.constant 3 : index
    %c0_29 = arith.constant 0 : index
    %c0_30 = arith.constant 0 : index
    %25 = vector.load %arg2[%c3, %c0_29, %c0_30] : memref<9x64x64xf32, #tpu.memory_space<vmem>>, vector<1x64x64xf32>
    %26 = vector.shape_cast %25 : vector<1x64x64xf32> to vector<64x64xf32>
    %cst_31 = arith.constant dense<0.000000e+00> : vector<64x24xf32>
    %27 = tpu.matmul %26, %24, %cst_31 {dimension_numbers = #tpu.dot_dimension_numbers<[1], [0], [0], [1], [0, 0, 1, 1], [], []>} : vector<64x64xf32>, vector<64x24xf32>, vector<64x24xf32> -> vector<64x24xf32>
    %28 = arith.addf %22, %27 : vector<64x24xf32>
    %c0_32 = arith.constant 0 : index
    %c0_33 = arith.constant 0 : index
    %c7 = arith.constant 7 : index
    %29 = vector.load %arg1[%c0_32, %c0_33, %c7] : memref<1x64x38xf32, #tpu.memory_space<vmem>>, vector<1x64x24xf32>
    %30 = vector.shape_cast %29 : vector<1x64x24xf32> to vector<64x24xf32>
    %c4 = arith.constant 4 : index
    %c0_34 = arith.constant 0 : index
    %c0_35 = arith.constant 0 : index
    %31 = vector.load %arg2[%c4, %c0_34, %c0_35] : memref<9x64x64xf32, #tpu.memory_space<vmem>>, vector<1x64x64xf32>
    %32 = vector.shape_cast %31 : vector<1x64x64xf32> to vector<64x64xf32>
    %cst_36 = arith.constant dense<0.000000e+00> : vector<64x24xf32>
    %33 = tpu.matmul %32, %30, %cst_36 {dimension_numbers = #tpu.dot_dimension_numbers<[1], [0], [0], [1], [0, 0, 1, 1], [], []>} : vector<64x64xf32>, vector<64x24xf32>, vector<64x24xf32> -> vector<64x24xf32>
    %34 = arith.addf %28, %33 : vector<64x24xf32>
    %c0_37 = arith.constant 0 : index
    %c0_38 = arith.constant 0 : index
    %c8 = arith.constant 8 : index
    %35 = vector.load %arg1[%c0_37, %c0_38, %c8] : memref<1x64x38xf32, #tpu.memory_space<vmem>>, vector<1x64x24xf32>
    %36 = vector.shape_cast %35 : vector<1x64x24xf32> to vector<64x24xf32>
    %c5 = arith.constant 5 : index
    %c0_39 = arith.constant 0 : index
    %c0_40 = arith.constant 0 : index
    %37 = vector.load %arg2[%c5, %c0_39, %c0_40] : memref<9x64x64xf32, #tpu.memory_space<vmem>>, vector<1x64x64xf32>
    %38 = vector.shape_cast %37 : vector<1x64x64xf32> to vector<64x64xf32>
    %cst_41 = arith.constant dense<0.000000e+00> : vector<64x24xf32>
    %39 = tpu.matmul %38, %36, %cst_41 {dimension_numbers = #tpu.dot_dimension_numbers<[1], [0], [0], [1], [0, 0, 1, 1], [], []>} : vector<64x64xf32>, vector<64x24xf32>, vector<64x24xf32> -> vector<64x24xf32>
    %40 = arith.addf %34, %39 : vector<64x24xf32>
    %c0_42 = arith.constant 0 : index
    %c0_43 = arith.constant 0 : index
    %c12 = arith.constant 12 : index
    %41 = vector.load %arg1[%c0_42, %c0_43, %c12] : memref<1x64x38xf32, #tpu.memory_space<vmem>>, vector<1x64x24xf32>
    %42 = vector.shape_cast %41 : vector<1x64x24xf32> to vector<64x24xf32>
    %c6_44 = arith.constant 6 : index
    %c0_45 = arith.constant 0 : index
    %c0_46 = arith.constant 0 : index
    %43 = vector.load %arg2[%c6_44, %c0_45, %c0_46] : memref<9x64x64xf32, #tpu.memory_space<vmem>>, vector<1x64x64xf32>
    %44 = vector.shape_cast %43 : vector<1x64x64xf32> to vector<64x64xf32>
    %cst_47 = arith.constant dense<0.000000e+00> : vector<64x24xf32>
    %45 = tpu.matmul %44, %42, %cst_47 {dimension_numbers = #tpu.dot_dimension_numbers<[1], [0], [0], [1], [0, 0, 1, 1], [], []>} : vector<64x64xf32>, vector<64x24xf32>, vector<64x24xf32> -> vector<64x24xf32>
    %46 = arith.addf %40, %45 : vector<64x24xf32>
    %c0_48 = arith.constant 0 : index
    %c0_49 = arith.constant 0 : index
    %c13 = arith.constant 13 : index
    %47 = vector.load %arg1[%c0_48, %c0_49, %c13] : memref<1x64x38xf32, #tpu.memory_space<vmem>>, vector<1x64x24xf32>
    %48 = vector.shape_cast %47 : vector<1x64x24xf32> to vector<64x24xf32>
    %c7_50 = arith.constant 7 : index
    %c0_51 = arith.constant 0 : index
    %c0_52 = arith.constant 0 : index
    %49 = vector.load %arg2[%c7_50, %c0_51, %c0_52] : memref<9x64x64xf32, #tpu.memory_space<vmem>>, vector<1x64x64xf32>
    %50 = vector.shape_cast %49 : vector<1x64x64xf32> to vector<64x64xf32>
    %cst_53 = arith.constant dense<0.000000e+00> : vector<64x24xf32>
    %51 = tpu.matmul %50, %48, %cst_53 {dimension_numbers = #tpu.dot_dimension_numbers<[1], [0], [0], [1], [0, 0, 1, 1], [], []>} : vector<64x64xf32>, vector<64x24xf32>, vector<64x24xf32> -> vector<64x24xf32>
    %52 = arith.addf %46, %51 : vector<64x24xf32>
    %c0_54 = arith.constant 0 : index
    %c0_55 = arith.constant 0 : index
    %c14 = arith.constant 14 : index
    %53 = vector.load %arg1[%c0_54, %c0_55, %c14] : memref<1x64x38xf32, #tpu.memory_space<vmem>>, vector<1x64x24xf32>
    %54 = vector.shape_cast %53 : vector<1x64x24xf32> to vector<64x24xf32>
    %c8_56 = arith.constant 8 : index
    %c0_57 = arith.constant 0 : index
    %c0_58 = arith.constant 0 : index
    %55 = vector.load %arg2[%c8_56, %c0_57, %c0_58] : memref<9x64x64xf32, #tpu.memory_space<vmem>>, vector<1x64x64xf32>
    %56 = vector.shape_cast %55 : vector<1x64x64xf32> to vector<64x64xf32>
    %cst_59 = arith.constant dense<0.000000e+00> : vector<64x24xf32>
    %57 = tpu.matmul %56, %54, %cst_59 {dimension_numbers = #tpu.dot_dimension_numbers<[1], [0], [0], [1], [0, 0, 1, 1], [], []>} : vector<64x64xf32>, vector<64x24xf32>, vector<64x24xf32> -> vector<64x24xf32>
    %58 = arith.addf %52, %57 : vector<64x24xf32>
    %59 = vector.broadcast %5 : vector<64x1xf32> to vector<64x24xf32>
    %60 = arith.addf %58, %59 : vector<64x24xf32>
    %cst_60 = arith.constant 0.000000e+00 : f32
    %61 = vector.broadcast %cst_60 : f32 to vector<64x24xf32>
    %62 = arith.maximumf %60, %61 : vector<64x24xf32>
    %c0_61 = arith.constant 0 : index
    %c0_62 = arith.constant 0 : index
    %63 = vector.load %arg8[%c0_61, %c0_62] : memref<1x24xf32, #tpu.memory_space<vmem>>, vector<1x24xf32>
    %64 = vector.broadcast %63 : vector<1x24xf32> to vector<64x24xf32>
    %65 = arith.mulf %62, %64 : vector<64x24xf32>
    %c0_63 = arith.constant 0 : index
    %c7_64 = arith.constant 7 : index
    %66 = vector.load %arg12[%c0_63, %c7_64] : memref<64x38xf32, #tpu.memory_space<vmem>>, vector<64x24xf32>
    tpu.vector_store %arg12[%c0_63, %c7_64], %65 {strides = array<i32>} : memref<64x38xf32, #tpu.memory_space<vmem>>, vector<64x24xf32>,
    %c0_65 = arith.constant 0 : index
    %c0_66 = arith.constant 0 : index
    %67 = vector.load %arg7[%c0_65, %c0_66] : memref<64x1xf32, #tpu.memory_space<vmem>>, vector<64x1xf32>
    %c0_67 = arith.constant 0 : index
    %c0_68 = arith.constant 0 : index
    %68 = vector.load %arg12[%c0_67, %c0_68] : memref<64x38xf32, #tpu.memory_space<vmem>>, vector<64x24xf32>
    %c0_69 = arith.constant 0 : index
    %c0_70 = arith.constant 0 : index
    %c0_71 = arith.constant 0 : index
    %69 = vector.load %arg3[%c0_69, %c0_70, %c0_71] : memref<9x64x64xf32, #tpu.memory_space<vmem>>, vector<1x64x64xf32>
    %70 = vector.shape_cast %69 : vector<1x64x64xf32> to vector<64x64xf32>
    %cst_72 = arith.constant dense<0.000000e+00> : vector<64x24xf32>
    %71 = tpu.matmul %70, %68, %cst_72 {dimension_numbers = #tpu.dot_dimension_numbers<[1], [0], [0], [1], [0, 0, 1, 1], [], []>} : vector<64x64xf32>, vector<64x24xf32>, vector<64x24xf32> -> vector<64x24xf32>
    %c0_73 = arith.constant 0 : index
    %c1_74 = arith.constant 1 : index
    %72 = vector.load %arg12[%c0_73, %c1_74] : memref<64x38xf32, #tpu.memory_space<vmem>>, vector<64x24xf32>
    %c1_75 = arith.constant 1 : index
    %c0_76 = arith.constant 0 : index
    %c0_77 = arith.constant 0 : index
    %73 = vector.load %arg3[%c1_75, %c0_76, %c0_77] : memref<9x64x64xf32, #tpu.memory_space<vmem>>, vector<1x64x64xf32>
    %74 = vector.shape_cast %73 : vector<1x64x64xf32> to vector<64x64xf32>
    %cst_78 = arith.constant dense<0.000000e+00> : vector<64x24xf32>
    %75 = tpu.matmul %74, %72, %cst_78 {dimension_numbers = #tpu.dot_dimension_numbers<[1], [0], [0], [1], [0, 0, 1, 1], [], []>} : vector<64x64xf32>, vector<64x24xf32>, vector<64x24xf32> -> vector<64x24xf32>
    %76 = arith.addf %71, %75 : vector<64x24xf32>
    %c0_79 = arith.constant 0 : index
    %c2_80 = arith.constant 2 : index
    %77 = vector.load %arg12[%c0_79, %c2_80] : memref<64x38xf32, #tpu.memory_space<vmem>>, vector<64x24xf32>
    %c2_81 = arith.constant 2 : index
    %c0_82 = arith.constant 0 : index
    %c0_83 = arith.constant 0 : index
    %78 = vector.load %arg3[%c2_81, %c0_82, %c0_83] : memref<9x64x64xf32, #tpu.memory_space<vmem>>, vector<1x64x64xf32>
    %79 = vector.shape_cast %78 : vector<1x64x64xf32> to vector<64x64xf32>
    %cst_84 = arith.constant dense<0.000000e+00> : vector<64x24xf32>
    %80 = tpu.matmul %79, %77, %cst_84 {dimension_numbers = #tpu.dot_dimension_numbers<[1], [0], [0], [1], [0, 0, 1, 1], [], []>} : vector<64x64xf32>, vector<64x24xf32>, vector<64x24xf32> -> vector<64x24xf32>
    %81 = arith.addf %76, %80 : vector<64x24xf32>
    %c0_85 = arith.constant 0 : index
    %c6_86 = arith.constant 6 : index
    %82 = vector.load %arg12[%c0_85, %c6_86] : memref<64x38xf32, #tpu.memory_space<vmem>>, vector<64x24xf32>
    %c3_87 = arith.constant 3 : index
    %c0_88 = arith.constant 0 : index
    %c0_89 = arith.constant 0 : index
    %83 = vector.load %arg3[%c3_87, %c0_88, %c0_89] : memref<9x64x64xf32, #tpu.memory_space<vmem>>, vector<1x64x64xf32>
    %84 = vector.shape_cast %83 : vector<1x64x64xf32> to vector<64x64xf32>
    %cst_90 = arith.constant dense<0.000000e+00> : vector<64x24xf32>
    %85 = tpu.matmul %84, %82, %cst_90 {dimension_numbers = #tpu.dot_dimension_numbers<[1], [0], [0], [1], [0, 0, 1, 1], [], []>} : vector<64x64xf32>, vector<64x24xf32>, vector<64x24xf32> -> vector<64x24xf32>
    %86 = arith.addf %81, %85 : vector<64x24xf32>
    %c0_91 = arith.constant 0 : index
    %c7_92 = arith.constant 7 : index
    %87 = vector.load %arg12[%c0_91, %c7_92] : memref<64x38xf32, #tpu.memory_space<vmem>>, vector<64x24xf32>
    %c4_93 = arith.constant 4 : index
    %c0_94 = arith.constant 0 : index
    %c0_95 = arith.constant 0 : index
    %88 = vector.load %arg3[%c4_93, %c0_94, %c0_95] : memref<9x64x64xf32, #tpu.memory_space<vmem>>, vector<1x64x64xf32>
    %89 = vector.shape_cast %88 : vector<1x64x64xf32> to vector<64x64xf32>
    %cst_96 = arith.constant dense<0.000000e+00> : vector<64x24xf32>
    %90 = tpu.matmul %89, %87, %cst_96 {dimension_numbers = #tpu.dot_dimension_numbers<[1], [0], [0], [1], [0, 0, 1, 1], [], []>} : vector<64x64xf32>, vector<64x24xf32>, vector<64x24xf32> -> vector<64x24xf32>
    %91 = arith.addf %86, %90 : vector<64x24xf32>
    %c0_97 = arith.constant 0 : index
    %c8_98 = arith.constant 8 : index
    %92 = vector.load %arg12[%c0_97, %c8_98] : memref<64x38xf32, #tpu.memory_space<vmem>>, vector<64x24xf32>
    %c5_99 = arith.constant 5 : index
    %c0_100 = arith.constant 0 : index
    %c0_101 = arith.constant 0 : index
    %93 = vector.load %arg3[%c5_99, %c0_100, %c0_101] : memref<9x64x64xf32, #tpu.memory_space<vmem>>, vector<1x64x64xf32>
    %94 = vector.shape_cast %93 : vector<1x64x64xf32> to vector<64x64xf32>
    %cst_102 = arith.constant dense<0.000000e+00> : vector<64x24xf32>
    %95 = tpu.matmul %94, %92, %cst_102 {dimension_numbers = #tpu.dot_dimension_numbers<[1], [0], [0], [1], [0, 0, 1, 1], [], []>} : vector<64x64xf32>, vector<64x24xf32>, vector<64x24xf32> -> vector<64x24xf32>
    %96 = arith.addf %91, %95 : vector<64x24xf32>
    %c0_103 = arith.constant 0 : index
    %c12_104 = arith.constant 12 : index
    %97 = vector.load %arg12[%c0_103, %c12_104] : memref<64x38xf32, #tpu.memory_space<vmem>>, vector<64x24xf32>
    %c6_105 = arith.constant 6 : index
    %c0_106 = arith.constant 0 : index
    %c0_107 = arith.constant 0 : index
    %98 = vector.load %arg3[%c6_105, %c0_106, %c0_107] : memref<9x64x64xf32, #tpu.memory_space<vmem>>, vector<1x64x64xf32>
    %99 = vector.shape_cast %98 : vector<1x64x64xf32> to vector<64x64xf32>
    %cst_108 = arith.constant dense<0.000000e+00> : vector<64x24xf32>
    %100 = tpu.matmul %99, %97, %cst_108 {dimension_numbers = #tpu.dot_dimension_numbers<[1], [0], [0], [1], [0, 0, 1, 1], [], []>} : vector<64x64xf32>, vector<64x24xf32>, vector<64x24xf32> -> vector<64x24xf32>
    %101 = arith.addf %96, %100 : vector<64x24xf32>
    %c0_109 = arith.constant 0 : index
    %c13_110 = arith.constant 13 : index
    %102 = vector.load %arg12[%c0_109, %c13_110] : memref<64x38xf32, #tpu.memory_space<vmem>>, vector<64x24xf32>
    %c7_111 = arith.constant 7 : index
    %c0_112 = arith.constant 0 : index
    %c0_113 = arith.constant 0 : index
    %103 = vector.load %arg3[%c7_111, %c0_112, %c0_113] : memref<9x64x64xf32, #tpu.memory_space<vmem>>, vector<1x64x64xf32>
    %104 = vector.shape_cast %103 : vector<1x64x64xf32> to vector<64x64xf32>
    %cst_114 = arith.constant dense<0.000000e+00> : vector<64x24xf32>
    %105 = tpu.matmul %104, %102, %cst_114 {dimension_numbers = #tpu.dot_dimension_numbers<[1], [0], [0], [1], [0, 0, 1, 1], [], []>} : vector<64x64xf32>, vector<64x24xf32>, vector<64x24xf32> -> vector<64x24xf32>
    %106 = arith.addf %101, %105 : vector<64x24xf32>
    %c0_115 = arith.constant 0 : index
    %c14_116 = arith.constant 14 : index
    %107 = vector.load %arg12[%c0_115, %c14_116] : memref<64x38xf32, #tpu.memory_space<vmem>>, vector<64x24xf32>
    %c8_117 = arith.constant 8 : index
    %c0_118 = arith.constant 0 : index
    %c0_119 = arith.constant 0 : index
    %108 = vector.load %arg3[%c8_117, %c0_118, %c0_119] : memref<9x64x64xf32, #tpu.memory_space<vmem>>, vector<1x64x64xf32>
    %109 = vector.shape_cast %108 : vector<1x64x64xf32> to vector<64x64xf32>
    %cst_120 = arith.constant dense<0.000000e+00> : vector<64x24xf32>
    %110 = tpu.matmul %109, %107, %cst_120 {dimension_numbers = #tpu.dot_dimension_numbers<[1], [0], [0], [1], [0, 0, 1, 1], [], []>} : vector<64x64xf32>, vector<64x24xf32>, vector<64x24xf32> -> vector<64x24xf32>
    %111 = arith.addf %106, %110 : vector<64x24xf32>
    %112 = vector.broadcast %67 : vector<64x1xf32> to vector<64x24xf32>
    %113 = arith.addf %111, %112 : vector<64x24xf32>
    %cst_121 = arith.constant 0.000000e+00 : f32
    %114 = vector.broadcast %cst_121 : f32 to vector<64x24xf32>
    %115 = arith.maximumf %113, %114 : vector<64x24xf32>
    %c0_122 = arith.constant 0 : index
    %c0_123 = arith.constant 0 : index
    %116 = vector.load %arg8[%c0_122, %c0_123] : memref<1x24xf32, #tpu.memory_space<vmem>>, vector<1x24xf32>
    %117 = vector.broadcast %116 : vector<1x24xf32> to vector<64x24xf32>
    %118 = arith.mulf %115, %117 : vector<64x24xf32>
    %c0_124 = arith.constant 0 : index
    %c7_125 = arith.constant 7 : index
    %119 = vector.load %arg11[%c0_124, %c7_125] : memref<64x38xf32, #tpu.memory_space<vmem>>, vector<64x24xf32>
    tpu.vector_store %arg11[%c0_124, %c7_125], %118 {strides = array<i32>} : memref<64x38xf32, #tpu.memory_space<vmem>>, vector<64x24xf32>,
    %c0_126 = arith.constant 0 : index
    %120 = memref.load %arg9[%c0_126] : memref<4xf32, #tpu.memory_space<smem>>
    %c0_127 = arith.constant 0 : index
    %c0_128 = arith.constant 0 : index
    %121 = vector.load %arg11[%c0_127, %c0_128] : memref<64x38xf32, #tpu.memory_space<vmem>>, vector<64x24xf32>
    %c0_129 = arith.constant 0 : index
    %c0_130 = arith.constant 0 : index
    %c0_131 = arith.constant 0 : index
    %122 = vector.load %arg4[%c0_129, %c0_130, %c0_131] : memref<9x64x64xf32, #tpu.memory_space<vmem>>, vector<1x64x64xf32>
    %123 = vector.shape_cast %122 : vector<1x64x64xf32> to vector<64x64xf32>
    %cst_132 = arith.constant dense<0.000000e+00> : vector<64x24xf32>
    %124 = tpu.matmul %123, %121, %cst_132 {dimension_numbers = #tpu.dot_dimension_numbers<[1], [0], [0], [1], [0, 0, 1, 1], [], []>} : vector<64x64xf32>, vector<64x24xf32>, vector<64x24xf32> -> vector<64x24xf32>
    %c0_133 = arith.constant 0 : index
    %c1_134 = arith.constant 1 : index
    %125 = vector.load %arg11[%c0_133, %c1_134] : memref<64x38xf32, #tpu.memory_space<vmem>>, vector<64x24xf32>
    %c1_135 = arith.constant 1 : index
    %c0_136 = arith.constant 0 : index
    %c0_137 = arith.constant 0 : index
    %126 = vector.load %arg4[%c1_135, %c0_136, %c0_137] : memref<9x64x64xf32, #tpu.memory_space<vmem>>, vector<1x64x64xf32>
    %127 = vector.shape_cast %126 : vector<1x64x64xf32> to vector<64x64xf32>
    %cst_138 = arith.constant dense<0.000000e+00> : vector<64x24xf32>
    %128 = tpu.matmul %127, %125, %cst_138 {dimension_numbers = #tpu.dot_dimension_numbers<[1], [0], [0], [1], [0, 0, 1, 1], [], []>} : vector<64x64xf32>, vector<64x24xf32>, vector<64x24xf32> -> vector<64x24xf32>
    %129 = arith.addf %124, %128 : vector<64x24xf32>
    %c0_139 = arith.constant 0 : index
    %c2_140 = arith.constant 2 : index
    %130 = vector.load %arg11[%c0_139, %c2_140] : memref<64x38xf32, #tpu.memory_space<vmem>>, vector<64x24xf32>
    %c2_141 = arith.constant 2 : index
    %c0_142 = arith.constant 0 : index
    %c0_143 = arith.constant 0 : index
    %131 = vector.load %arg4[%c2_141, %c0_142, %c0_143] : memref<9x64x64xf32, #tpu.memory_space<vmem>>, vector<1x64x64xf32>
    %132 = vector.shape_cast %131 : vector<1x64x64xf32> to vector<64x64xf32>
    %cst_144 = arith.constant dense<0.000000e+00> : vector<64x24xf32>
    %133 = tpu.matmul %132, %130, %cst_144 {dimension_numbers = #tpu.dot_dimension_numbers<[1], [0], [0], [1], [0, 0, 1, 1], [], []>} : vector<64x64xf32>, vector<64x24xf32>, vector<64x24xf32> -> vector<64x24xf32>
    %134 = arith.addf %129, %133 : vector<64x24xf32>
    %c0_145 = arith.constant 0 : index
    %c6_146 = arith.constant 6 : index
    %135 = vector.load %arg11[%c0_145, %c6_146] : memref<64x38xf32, #tpu.memory_space<vmem>>, vector<64x24xf32>
    %c3_147 = arith.constant 3 : index
    %c0_148 = arith.constant 0 : index
    %c0_149 = arith.constant 0 : index
    %136 = vector.load %arg4[%c3_147, %c0_148, %c0_149] : memref<9x64x64xf32, #tpu.memory_space<vmem>>, vector<1x64x64xf32>
    %137 = vector.shape_cast %136 : vector<1x64x64xf32> to vector<64x64xf32>
    %cst_150 = arith.constant dense<0.000000e+00> : vector<64x24xf32>
    %138 = tpu.matmul %137, %135, %cst_150 {dimension_numbers = #tpu.dot_dimension_numbers<[1], [0], [0], [1], [0, 0, 1, 1], [], []>} : vector<64x64xf32>, vector<64x24xf32>, vector<64x24xf32> -> vector<64x24xf32>
    %139 = arith.addf %134, %138 : vector<64x24xf32>
    %c0_151 = arith.constant 0 : index
    %c7_152 = arith.constant 7 : index
    %140 = vector.load %arg11[%c0_151, %c7_152] : memref<64x38xf32, #tpu.memory_space<vmem>>, vector<64x24xf32>
    %c4_153 = arith.constant 4 : index
    %c0_154 = arith.constant 0 : index
    %c0_155 = arith.constant 0 : index
    %141 = vector.load %arg4[%c4_153, %c0_154, %c0_155] : memref<9x64x64xf32, #tpu.memory_space<vmem>>, vector<1x64x64xf32>
    %142 = vector.shape_cast %141 : vector<1x64x64xf32> to vector<64x64xf32>
    %cst_156 = arith.constant dense<0.000000e+00> : vector<64x24xf32>
    %143 = tpu.matmul %142, %140, %cst_156 {dimension_numbers = #tpu.dot_dimension_numbers<[1], [0], [0], [1], [0, 0, 1, 1], [], []>} : vector<64x64xf32>, vector<64x24xf32>, vector<64x24xf32> -> vector<64x24xf32>
    %144 = arith.addf %139, %143 : vector<64x24xf32>
    %c0_157 = arith.constant 0 : index
    %c8_158 = arith.constant 8 : index
    %145 = vector.load %arg11[%c0_157, %c8_158] : memref<64x38xf32, #tpu.memory_space<vmem>>, vector<64x24xf32>
    %c5_159 = arith.constant 5 : index
    %c0_160 = arith.constant 0 : index
    %c0_161 = arith.constant 0 : index
    %146 = vector.load %arg4[%c5_159, %c0_160, %c0_161] : memref<9x64x64xf32, #tpu.memory_space<vmem>>, vector<1x64x64xf32>
    %147 = vector.shape_cast %146 : vector<1x64x64xf32> to vector<64x64xf32>
    %cst_162 = arith.constant dense<0.000000e+00> : vector<64x24xf32>
    %148 = tpu.matmul %147, %145, %cst_162 {dimension_numbers = #tpu.dot_dimension_numbers<[1], [0], [0], [1], [0, 0, 1, 1], [], []>} : vector<64x64xf32>, vector<64x24xf32>, vector<64x24xf32> -> vector<64x24xf32>
    %149 = arith.addf %144, %148 : vector<64x24xf32>
    %c0_163 = arith.constant 0 : index
    %c12_164 = arith.constant 12 : index
    %150 = vector.load %arg11[%c0_163, %c12_164] : memref<64x38xf32, #tpu.memory_space<vmem>>, vector<64x24xf32>
    %c6_165 = arith.constant 6 : index
    %c0_166 = arith.constant 0 : index
    %c0_167 = arith.constant 0 : index
    %151 = vector.load %arg4[%c6_165, %c0_166, %c0_167] : memref<9x64x64xf32, #tpu.memory_space<vmem>>, vector<1x64x64xf32>
    %152 = vector.shape_cast %151 : vector<1x64x64xf32> to vector<64x64xf32>
    %cst_168 = arith.constant dense<0.000000e+00> : vector<64x24xf32>
    %153 = tpu.matmul %152, %150, %cst_168 {dimension_numbers = #tpu.dot_dimension_numbers<[1], [0], [0], [1], [0, 0, 1, 1], [], []>} : vector<64x64xf32>, vector<64x24xf32>, vector<64x24xf32> -> vector<64x24xf32>
    %154 = arith.addf %149, %153 : vector<64x24xf32>
    %c0_169 = arith.constant 0 : index
    %c13_170 = arith.constant 13 : index
    %155 = vector.load %arg11[%c0_169, %c13_170] : memref<64x38xf32, #tpu.memory_space<vmem>>, vector<64x24xf32>
    %c7_171 = arith.constant 7 : index
    %c0_172 = arith.constant 0 : index
    %c0_173 = arith.constant 0 : index
    %156 = vector.load %arg4[%c7_171, %c0_172, %c0_173] : memref<9x64x64xf32, #tpu.memory_space<vmem>>, vector<1x64x64xf32>
    %157 = vector.shape_cast %156 : vector<1x64x64xf32> to vector<64x64xf32>
    %cst_174 = arith.constant dense<0.000000e+00> : vector<64x24xf32>
    %158 = tpu.matmul %157, %155, %cst_174 {dimension_numbers = #tpu.dot_dimension_numbers<[1], [0], [0], [1], [0, 0, 1, 1], [], []>} : vector<64x64xf32>, vector<64x24xf32>, vector<64x24xf32> -> vector<64x24xf32>
    %159 = arith.addf %154, %158 : vector<64x24xf32>
    %c0_175 = arith.constant 0 : index
    %c14_176 = arith.constant 14 : index
    %160 = vector.load %arg11[%c0_175, %c14_176] : memref<64x38xf32, #tpu.memory_space<vmem>>, vector<64x24xf32>
    %c8_177 = arith.constant 8 : index
    %c0_178 = arith.constant 0 : index
    %c0_179 = arith.constant 0 : index
    %161 = vector.load %arg4[%c8_177, %c0_178, %c0_179] : memref<9x64x64xf32, #tpu.memory_space<vmem>>, vector<1x64x64xf32>
    %162 = vector.shape_cast %161 : vector<1x64x64xf32> to vector<64x64xf32>
    %cst_180 = arith.constant dense<0.000000e+00> : vector<64x24xf32>
    %163 = tpu.matmul %162, %160, %cst_180 {dimension_numbers = #tpu.dot_dimension_numbers<[1], [0], [0], [1], [0, 0, 1, 1], [], []>} : vector<64x64xf32>, vector<64x24xf32>, vector<64x24xf32> -> vector<64x24xf32>
    %164 = arith.addf %159, %163 : vector<64x24xf32>
    %165 = vector.broadcast %120 : f32 to vector<64x24xf32>
    %166 = arith.addf %164, %165 : vector<64x24xf32>
    %cst_181 = arith.constant 0.000000e+00 : f32
    %167 = vector.broadcast %cst_181 : f32 to vector<64x24xf32>
    %168 = arith.maximumf %166, %167 : vector<64x24xf32>
    %c0_182 = arith.constant 0 : index
    %c0_183 = arith.constant 0 : index
    %169 = vector.load %arg8[%c0_182, %c0_183] : memref<1x24xf32, #tpu.memory_space<vmem>>, vector<1x24xf32>
    %170 = vector.broadcast %169 : vector<1x24xf32> to vector<64x24xf32>
    %171 = arith.mulf %168, %170 : vector<64x24xf32>
    %c0_184 = arith.constant 0 : index
    %c7_185 = arith.constant 7 : index
    %172 = vector.load %arg12[%c0_184, %c7_185] : memref<64x38xf32, #tpu.memory_space<vmem>>, vector<64x24xf32>
    tpu.vector_store %arg12[%c0_184, %c7_185], %171 {strides = array<i32>} : memref<64x38xf32, #tpu.memory_space<vmem>>, vector<64x24xf32>,
    %c1_186 = arith.constant 1 : index
    %173 = memref.load %arg9[%c1_186] : memref<4xf32, #tpu.memory_space<smem>>
    %c0_187 = arith.constant 0 : index
    %c0_188 = arith.constant 0 : index
    %174 = vector.load %arg12[%c0_187, %c0_188] : memref<64x38xf32, #tpu.memory_space<vmem>>, vector<64x24xf32>
    %c0_189 = arith.constant 0 : index
    %c0_190 = arith.constant 0 : index
    %c0_191 = arith.constant 0 : index
    %175 = vector.load %arg5[%c0_189, %c0_190, %c0_191] : memref<9x64x64xf32, #tpu.memory_space<vmem>>, vector<1x64x64xf32>
    %176 = vector.shape_cast %175 : vector<1x64x64xf32> to vector<64x64xf32>
    %cst_192 = arith.constant dense<0.000000e+00> : vector<64x24xf32>
    %177 = tpu.matmul %176, %174, %cst_192 {dimension_numbers = #tpu.dot_dimension_numbers<[1], [0], [0], [1], [0, 0, 1, 1], [], []>} : vector<64x64xf32>, vector<64x24xf32>, vector<64x24xf32> -> vector<64x24xf32>
    %c0_193 = arith.constant 0 : index
    %c1_194 = arith.constant 1 : index
    %178 = vector.load %arg12[%c0_193, %c1_194] : memref<64x38xf32, #tpu.memory_space<vmem>>, vector<64x24xf32>
    %c1_195 = arith.constant 1 : index
    %c0_196 = arith.constant 0 : index
    %c0_197 = arith.constant 0 : index
    %179 = vector.load %arg5[%c1_195, %c0_196, %c0_197] : memref<9x64x64xf32, #tpu.memory_space<vmem>>, vector<1x64x64xf32>
    %180 = vector.shape_cast %179 : vector<1x64x64xf32> to vector<64x64xf32>
    %cst_198 = arith.constant dense<0.000000e+00> : vector<64x24xf32>
    %181 = tpu.matmul %180, %178, %cst_198 {dimension_numbers = #tpu.dot_dimension_numbers<[1], [0], [0], [1], [0, 0, 1, 1], [], []>} : vector<64x64xf32>, vector<64x24xf32>, vector<64x24xf32> -> vector<64x24xf32>
    %182 = arith.addf %177, %181 : vector<64x24xf32>
    %c0_199 = arith.constant 0 : index
    %c2_200 = arith.constant 2 : index
    %183 = vector.load %arg12[%c0_199, %c2_200] : memref<64x38xf32, #tpu.memory_space<vmem>>, vector<64x24xf32>
    %c2_201 = arith.constant 2 : index
    %c0_202 = arith.constant 0 : index
    %c0_203 = arith.constant 0 : index
    %184 = vector.load %arg5[%c2_201, %c0_202, %c0_203] : memref<9x64x64xf32, #tpu.memory_space<vmem>>, vector<1x64x64xf32>
    %185 = vector.shape_cast %184 : vector<1x64x64xf32> to vector<64x64xf32>
    %cst_204 = arith.constant dense<0.000000e+00> : vector<64x24xf32>
    %186 = tpu.matmul %185, %183, %cst_204 {dimension_numbers = #tpu.dot_dimension_numbers<[1], [0], [0], [1], [0, 0, 1, 1], [], []>} : vector<64x64xf32>, vector<64x24xf32>, vector<64x24xf32> -> vector<64x24xf32>
    %187 = arith.addf %182, %186 : vector<64x24xf32>
    %c0_205 = arith.constant 0 : index
    %c6_206 = arith.constant 6 : index
    %188 = vector.load %arg12[%c0_205, %c6_206] : memref<64x38xf32, #tpu.memory_space<vmem>>, vector<64x24xf32>
    %c3_207 = arith.constant 3 : index
    %c0_208 = arith.constant 0 : index
    %c0_209 = arith.constant 0 : index
    %189 = vector.load %arg5[%c3_207, %c0_208, %c0_209] : memref<9x64x64xf32, #tpu.memory_space<vmem>>, vector<1x64x64xf32>
    %190 = vector.shape_cast %189 : vector<1x64x64xf32> to vector<64x64xf32>
    %cst_210 = arith.constant dense<0.000000e+00> : vector<64x24xf32>
    %191 = tpu.matmul %190, %188, %cst_210 {dimension_numbers = #tpu.dot_dimension_numbers<[1], [0], [0], [1], [0, 0, 1, 1], [], []>} : vector<64x64xf32>, vector<64x24xf32>, vector<64x24xf32> -> vector<64x24xf32>
    %192 = arith.addf %187, %191 : vector<64x24xf32>
    %c0_211 = arith.constant 0 : index
    %c7_212 = arith.constant 7 : index
    %193 = vector.load %arg12[%c0_211, %c7_212] : memref<64x38xf32, #tpu.memory_space<vmem>>, vector<64x24xf32>
    %c4_213 = arith.constant 4 : index
    %c0_214 = arith.constant 0 : index
    %c0_215 = arith.constant 0 : index
    %194 = vector.load %arg5[%c4_213, %c0_214, %c0_215] : memref<9x64x64xf32, #tpu.memory_space<vmem>>, vector<1x64x64xf32>
    %195 = vector.shape_cast %194 : vector<1x64x64xf32> to vector<64x64xf32>
    %cst_216 = arith.constant dense<0.000000e+00> : vector<64x24xf32>
    %196 = tpu.matmul %195, %193, %cst_216 {dimension_numbers = #tpu.dot_dimension_numbers<[1], [0], [0], [1], [0, 0, 1, 1], [], []>} : vector<64x64xf32>, vector<64x24xf32>, vector<64x24xf32> -> vector<64x24xf32>
    %197 = arith.addf %192, %196 : vector<64x24xf32>
    %c0_217 = arith.constant 0 : index
    %c8_218 = arith.constant 8 : index
    %198 = vector.load %arg12[%c0_217, %c8_218] : memref<64x38xf32, #tpu.memory_space<vmem>>, vector<64x24xf32>
    %c5_219 = arith.constant 5 : index
    %c0_220 = arith.constant 0 : index
    %c0_221 = arith.constant 0 : index
    %199 = vector.load %arg5[%c5_219, %c0_220, %c0_221] : memref<9x64x64xf32, #tpu.memory_space<vmem>>, vector<1x64x64xf32>
    %200 = vector.shape_cast %199 : vector<1x64x64xf32> to vector<64x64xf32>
    %cst_222 = arith.constant dense<0.000000e+00> : vector<64x24xf32>
    %201 = tpu.matmul %200, %198, %cst_222 {dimension_numbers = #tpu.dot_dimension_numbers<[1], [0], [0], [1], [0, 0, 1, 1], [], []>} : vector<64x64xf32>, vector<64x24xf32>, vector<64x24xf32> -> vector<64x24xf32>
    %202 = arith.addf %197, %201 : vector<64x24xf32>
    %c0_223 = arith.constant 0 : index
    %c12_224 = arith.constant 12 : index
    %203 = vector.load %arg12[%c0_223, %c12_224] : memref<64x38xf32, #tpu.memory_space<vmem>>, vector<64x24xf32>
    %c6_225 = arith.constant 6 : index
    %c0_226 = arith.constant 0 : index
    %c0_227 = arith.constant 0 : index
    %204 = vector.load %arg5[%c6_225, %c0_226, %c0_227] : memref<9x64x64xf32, #tpu.memory_space<vmem>>, vector<1x64x64xf32>
    %205 = vector.shape_cast %204 : vector<1x64x64xf32> to vector<64x64xf32>
    %cst_228 = arith.constant dense<0.000000e+00> : vector<64x24xf32>
    %206 = tpu.matmul %205, %203, %cst_228 {dimension_numbers = #tpu.dot_dimension_numbers<[1], [0], [0], [1], [0, 0, 1, 1], [], []>} : vector<64x64xf32>, vector<64x24xf32>, vector<64x24xf32> -> vector<64x24xf32>
    %207 = arith.addf %202, %206 : vector<64x24xf32>
    %c0_229 = arith.constant 0 : index
    %c13_230 = arith.constant 13 : index
    %208 = vector.load %arg12[%c0_229, %c13_230] : memref<64x38xf32, #tpu.memory_space<vmem>>, vector<64x24xf32>
    %c7_231 = arith.constant 7 : index
    %c0_232 = arith.constant 0 : index
    %c0_233 = arith.constant 0 : index
    %209 = vector.load %arg5[%c7_231, %c0_232, %c0_233] : memref<9x64x64xf32, #tpu.memory_space<vmem>>, vector<1x64x64xf32>
    %210 = vector.shape_cast %209 : vector<1x64x64xf32> to vector<64x64xf32>
    %cst_234 = arith.constant dense<0.000000e+00> : vector<64x24xf32>
    %211 = tpu.matmul %210, %208, %cst_234 {dimension_numbers = #tpu.dot_dimension_numbers<[1], [0], [0], [1], [0, 0, 1, 1], [], []>} : vector<64x64xf32>, vector<64x24xf32>, vector<64x24xf32> -> vector<64x24xf32>
    %212 = arith.addf %207, %211 : vector<64x24xf32>
    %c0_235 = arith.constant 0 : index
    %c14_236 = arith.constant 14 : index
    %213 = vector.load %arg12[%c0_235, %c14_236] : memref<64x38xf32, #tpu.memory_space<vmem>>, vector<64x24xf32>
    %c8_237 = arith.constant 8 : index
    %c0_238 = arith.constant 0 : index
    %c0_239 = arith.constant 0 : index
    %214 = vector.load %arg5[%c8_237, %c0_238, %c0_239] : memref<9x64x64xf32, #tpu.memory_space<vmem>>, vector<1x64x64xf32>
    %215 = vector.shape_cast %214 : vector<1x64x64xf32> to vector<64x64xf32>
    %cst_240 = arith.constant dense<0.000000e+00> : vector<64x24xf32>
    %216 = tpu.matmul %215, %213, %cst_240 {dimension_numbers = #tpu.dot_dimension_numbers<[1], [0], [0], [1], [0, 0, 1, 1], [], []>} : vector<64x64xf32>, vector<64x24xf32>, vector<64x24xf32> -> vector<64x24xf32>
    %217 = arith.addf %212, %216 : vector<64x24xf32>
    %218 = vector.broadcast %173 : f32 to vector<64x24xf32>
    %219 = arith.addf %217, %218 : vector<64x24xf32>
    %cst_241 = arith.constant 0.000000e+00 : f32
    %220 = vector.broadcast %cst_241 : f32 to vector<64x24xf32>
    %221 = arith.maximumf %219, %220 : vector<64x24xf32>
    %c0_242 = arith.constant 0 : index
    %c0_243 = arith.constant 0 : index
    %222 = vector.load %arg8[%c0_242, %c0_243] : memref<1x24xf32, #tpu.memory_space<vmem>>, vector<1x24xf32>
    %223 = vector.broadcast %222 : vector<1x24xf32> to vector<64x24xf32>
    %224 = arith.mulf %221, %223 : vector<64x24xf32>
    %c0_244 = arith.constant 0 : index
    %c7_245 = arith.constant 7 : index
    %225 = vector.load %arg11[%c0_244, %c7_245] : memref<64x38xf32, #tpu.memory_space<vmem>>, vector<64x24xf32>
    tpu.vector_store %arg11[%c0_244, %c7_245], %224 {strides = array<i32>} : memref<64x38xf32, #tpu.memory_space<vmem>>, vector<64x24xf32>,
    %c2_246 = arith.constant 2 : index
    %226 = memref.load %arg9[%c2_246] : memref<4xf32, #tpu.memory_space<smem>>
    %c3_247 = arith.constant 3 : index
    %227 = memref.load %arg9[%c3_247] : memref<4xf32, #tpu.memory_space<smem>>
    %c0_248 = arith.constant 0 : index
    %c0_249 = arith.constant 0 : index
    %228 = vector.load %arg11[%c0_248, %c0_249] : memref<64x38xf32, #tpu.memory_space<vmem>>, vector<64x38xf32>
    %229 = vector.broadcast %226 : f32 to vector<64x38xf32>
    %230 = arith.mulf %228, %229 : vector<64x38xf32>
    %231 = vector.broadcast %227 : f32 to vector<64x38xf32>
    %232 = arith.addf %230, %231 : vector<64x38xf32>
    %cst_250 = arith.constant 0.000000e+00 : f32
    %233 = vector.broadcast %cst_250 : f32 to vector<64x38xf32>
    %234 = arith.maximumf %232, %233 : vector<64x38xf32>
    %cst_251 = arith.constant 2.000000e+01 : f32
    %235 = vector.broadcast %cst_251 : f32 to vector<64x38xf32>
    %236 = arith.cmpf ogt, %234, %235 : vector<64x38xf32>
    %cst_252 = arith.constant 2.000000e+01 : f32
    %237 = vector.broadcast %cst_252 : f32 to vector<64x38xf32>
    %238 = arith.minimumf %234, %237 : vector<64x38xf32>
    %239 = math.exp %238 : vector<64x38xf32>
    %240 = math.log1p %239 : vector<64x38xf32>
    %241 = arith.select %236, %234, %240 : vector<64x38xi1>, vector<64x38xf32>
    %c0_253 = arith.constant 0 : index
    %c0_254 = arith.constant 0 : index
    %c0_255 = arith.constant 0 : index
    %242 = vector.load %arg10[%c0_253, %c0_254, %c0_255] : memref<1x64x38xf32, #tpu.memory_space<vmem>>, vector<1x64x38xf32>
    %243 = vector.shape_cast %242 : vector<1x64x38xf32> to vector<64x38xf32>
    %244 = vector.shape_cast %241 : vector<64x38xf32> to vector<1x64x38xf32>
    tpu.vector_store %arg10[%c0_253, %c0_254, %c0_255], %244 {strides = array<i32>} : memref<1x64x38xf32, #tpu.memory_space<vmem>>, vector<1x64x38xf32>,
    return
  }
  func.func @transform_0(%arg0: i32) -> (i32, i32, i32) {
    %c0_i32 = arith.constant 0 : i32
    %c0_i32_0 = arith.constant 0 : i32
    %c0_i32_1 = arith.constant 0 : i32
    return %arg0, %c0_i32, %c0_i32_0 : i32, i32, i32
  }
  func.func @transform_1(%arg0: i32) -> (i32, i32, i32) {
    %c0_i32 = arith.constant 0 : i32
    %c0_i32_0 = arith.constant 0 : i32
    %c0_i32_1 = arith.constant 0 : i32
    %c0_i32_2 = arith.constant 0 : i32
    return %c0_i32, %c0_i32_0, %c0_i32_1 : i32, i32, i32
  }
  func.func @transform_2(%arg0: i32) -> (i32, i32, i32) {
    %c0_i32 = arith.constant 0 : i32
    %c0_i32_0 = arith.constant 0 : i32
    %c0_i32_1 = arith.constant 0 : i32
    %c0_i32_2 = arith.constant 0 : i32
    return %c0_i32, %c0_i32_0, %c0_i32_1 : i32, i32, i32
  }
  func.func @transform_3(%arg0: i32) -> (i32, i32, i32) {
    %c0_i32 = arith.constant 0 : i32
    %c0_i32_0 = arith.constant 0 : i32
    %c0_i32_1 = arith.constant 0 : i32
    %c0_i32_2 = arith.constant 0 : i32
    return %c0_i32, %c0_i32_0, %c0_i32_1 : i32, i32, i32
  }
  func.func @transform_4(%arg0: i32) -> (i32, i32, i32) {
    %c0_i32 = arith.constant 0 : i32
    %c0_i32_0 = arith.constant 0 : i32
    %c0_i32_1 = arith.constant 0 : i32
    %c0_i32_2 = arith.constant 0 : i32
    return %c0_i32, %c0_i32_0, %c0_i32_1 : i32, i32, i32
  }
  func.func @transform_5(%arg0: i32) -> (i32, i32) {
    %c0_i32 = arith.constant 0 : i32
    %c0_i32_0 = arith.constant 0 : i32
    %c0_i32_1 = arith.constant 0 : i32
    return %c0_i32, %c0_i32_0 : i32, i32
  }
  func.func @transform_6(%arg0: i32) -> (i32, i32) {
    %c0_i32 = arith.constant 0 : i32
    %c0_i32_0 = arith.constant 0 : i32
    %c0_i32_1 = arith.constant 0 : i32
    return %c0_i32, %c0_i32_0 : i32, i32
  }
  func.func @transform_7(%arg0: i32) -> (i32, i32) {
    %c0_i32 = arith.constant 0 : i32
    %c0_i32_0 = arith.constant 0 : i32
    %c0_i32_1 = arith.constant 0 : i32
    return %c0_i32, %c0_i32_0 : i32, i32
  }
  func.func @transform_8(%arg0: i32) -> i32 {
    %c0_i32 = arith.constant 0 : i32
    %c0_i32_0 = arith.constant 0 : i32
    return %c0_i32 : i32
  }
  func.func @transform_9(%arg0: i32) -> (i32, i32, i32) {
    %c0_i32 = arith.constant 0 : i32
    %c0_i32_0 = arith.constant 0 : i32
    %c0_i32_1 = arith.constant 0 : i32
    return %arg0, %c0_i32, %c0_i32_0 : i32, i32, i32
  }
}

</mosaic_0001>

<bundles_post_ra>
// kernel: depth_predict_head2up.1
= control target key start
LH: loop header
LB: loop body
LE: loop exit
PB: predicated region body
PF: predicated region fallthrough
CT: control target
= control target key end

     0   :  { %14 = vsyncpa [#allocation5], 0  ;;  %s11960_s0 = inlined_call_operand.vmem [shape: f32[2,64,38], index: 0, kind: input, shape index: {}]   ;;  %s11961_s1 = inlined_call_operand.vmem [shape: f32[9,64,64], index: 1, kind: input, shape index: {}]   ;;  %s11962_s2 = inlined_call_operand.hbm [shape: f32[9,64,64], index: 2, kind: input, shape index: {}]   ;;  %s11963_s3 = inlined_call_operand.hbm [shape: f32[9,64,64], index: 3, kind: input, shape index: {}]   ;;  %s11964_s4 = inlined_call_operand.hbm [shape: f32[9,64,64], index: 4, kind: input, shape index: {}]   ;;  %s11965_s5 = inlined_call_operand.vmem [shape: f32[64,1], index: 5, kind: input, shape index: {}]   ;;  %s11966_s6 = inlined_call_operand.vmem [shape: f32[64,1], index: 6, kind: input, shape index: {}]   ;;  %s11967_s7 = inlined_call_operand.vmem [shape: f32[1,24], index: 7, kind: input, shape index: {}]   ;;  %s11968_s8 = inlined_call_operand.vmem [shape: f32[4], index: 8, kind: input, shape index: {}]   ;;  %s11969_s9 = inlined_call_operand.vmem [shape: f32[2,64,38], index: 9, kind: output, shape index: {}]  }
   0x1   :  { %15 = vsyncpa [#allocation8], 0 }
   0x2   :  { %16 = vsyncpa [#allocation6], 0  ;;  %s10805_s30 = smov 0  }
   0x3 LB: > { %s10811_s10 = sadd.s32 4294967295, %s10736_s30   ;;  %p7088_p0 = scmp.ge.s32.totalorder %s10736_s30, 1  ;;  %s10736_s30 = sphi %s10805_s30, %s22_s30  }
   0x4   : > { %p247_p1 = scmp.lt.s32.totalorder %s10736_s30, 3  ;;  %p9911_p2 = scmp.eq.s32.totalorder %s10811_s10, 0 }
   0x5   : > { %s10738_s12 = smov [#allocation7]   ;;  %s10739_s14 = smov [#allocation4]  }
   0x6   : > { %p10816_p3 = pnand %p7088_p0, %p247_p1  ;;  %s275_s13 = sshll.u32 %s10738_s12, 4  ;;  %s10820_s13 = int_to_ptr.vmem [resolvable:$true] %s275_s13 }
   0x7   : > { %s262_s15 = sshll.u32 %s10739_s14, 4  ;;  %s10740_s17 = smov [#allocation9]   ;;  %s10824_s15 = int_to_ptr.vmem [resolvable:$true] %s262_s15 }
   0x8   : > { %p9898_p4 = pneg %p10816_p3  ;;  %s288_s18 = sshll.u32 %s10740_s17, 4  ;;  %s10832_s18 = int_to_ptr.vmem [resolvable:$true] %s288_s18 }
   0x9   : > { %s311_s21 = sshll.u32 %s11968_s8, 4  ;;  %s10619_s24 = scalar_lea.hbm %s11963_s3, 9216  ;;  %s10837_s21 = int_to_ptr.vmem [resolvable:$true] %s311_s21 }
   0xa   : > { %p10828_p5 = pnand %p9911_p2, %p9898_p4  ;;  %p10620_p6 = scmp.ne.s32.totalorder %s11963_s3, %s10619_s24 }
   0xb   : > { %p10626_p10 = scmp.lt.u32.totalorder %s10619_s24, %s11963_s3 }
   0xc   : > { %p10847_p7 = pneg %p10828_p5 }
   0xe   : > { %p10622_p8 = pnand %p10847_p7, %p10620_p6 }
  0x10   : > { %p10623_p9 = pneg %p10622_p8 }
  0x12   : > { %p10628_p11 = pnand %p10626_p10, %p10623_p9 }
  0x14   : > { %10631 = shalt.err (!%p10628_p11)
}
  0x15   : > { %s10632_s12 = scalar_lea.vmem %s10820_s13, 9216  ;;  %p10640_p1 = scmp.lt.s32.totalorder %s10820_s13, %s10820_s13 }
  0x16   : > { %p10633_p12 = scmp.ne.s32.totalorder %s10820_s13, %s10632_s12  ;;  %p10641_p4 = scmp.lt.s32.totalorder %s10632_s12, %s10632_s12 }
  0x18   : > { %p10635_p13 = pnand %p10633_p12, %p10847_p7  ;;  %p10642_p6 = por %p10641_p4, %p10640_p1 }
  0x1a   : > { %p10636_p0 = pneg %p10635_p13 }
  0x1c   : > { %p10643_p8 = pnand %p10642_p6, %p10636_p0 }
  0x1e   : > { %10646 = shalt.err (!%p10643_p8)
}
  0x1f   : > { %s10741_s14 = smov 128   ;;  %s10742_s17 = smov 8  }
  0x20   : > { %9904 = dma.hbm_to_vmem [thread:$0]  (!%p10828_p5), %s11963_s3, 9216, %s10820_s13, [#allocation8], %s10741_s14, %s10741_s14, %s10742_s17  }
  0x21   : > { %s10647_s24 = scalar_lea.hbm %s11962_s2, 9216 }
  0x22   : > { %p10648_p9 = scmp.ne.s32.totalorder %s11962_s2, %s10647_s24  ;;  %p10654_p12 = scmp.lt.u32.totalorder %s10647_s24, %s11962_s2 }
  0x24   : > { %p10650_p10 = pnand %p10648_p9, %p10847_p7 }
  0x26   : > { %p10651_p11 = pneg %p10650_p10 }
  0x28   : > { %p10656_p13 = pnand %p10654_p12, %p10651_p11 }
  0x2a   : > { %10659 = shalt.err (!%p10656_p13)
}
  0x2b   : > { %s10660_s13 = scalar_lea.vmem %s10824_s15, 9216  ;;  %p10668_p6 = scmp.lt.s32.totalorder %s10824_s15, %s10824_s15 }
  0x2c   : > { %p10661_p0 = scmp.ne.s32.totalorder %s10824_s15, %s10660_s13  ;;  %p10669_p8 = scmp.lt.s32.totalorder %s10660_s13, %s10660_s13 }
  0x2e   : > { %p10663_p1 = pnand %p10661_p0, %p10847_p7  ;;  %p10670_p9 = por %p10669_p8, %p10668_p6 }
  0x30   : > { %p10664_p4 = pneg %p10663_p1 }
  0x32   : > { %p10671_p10 = pnand %p10670_p9, %p10664_p4 }
  0x34   : > { %10674 = shalt.err (!%p10671_p10)
}
  0x35   : > { %9901 = dma.hbm_to_vmem [thread:$0]  (!%p10828_p5), %s11962_s2, 9216, %s10824_s15, [#allocation5], %s10741_s14, %s10741_s14, %s10742_s17  }
  0x36   : > { %s10675_s23 = scalar_lea.hbm %s11964_s4, 9216 }
  0x37   : > { %p10676_p11 = scmp.ne.s32.totalorder %s11964_s4, %s10675_s23  ;;  %p10682_p0 = scmp.lt.u32.totalorder %s10675_s23, %s11964_s4 }
  0x39   : > { %p10678_p12 = pnand %p10676_p11, %p10847_p7 }
  0x3b   : > { %p10679_p13 = pneg %p10678_p12 }
  0x3d   : > { %p10684_p1 = pnand %p10682_p0, %p10679_p13 }
  0x3f   : > { %10687 = shalt.err (!%p10684_p1)
}
  0x40   : > { %s10688_s15 = scalar_lea.vmem %s10832_s18, 9216  ;;  %p10696_p9 = scmp.lt.s32.totalorder %s10832_s18, %s10832_s18 }
  0x41   : > { %p10689_p4 = scmp.ne.s32.totalorder %s10832_s18, %s10688_s15  ;;  %p10697_p10 = scmp.lt.s32.totalorder %s10688_s15, %s10688_s15 }
  0x43   : > { %p10691_p6 = pnand %p10689_p4, %p10847_p7  ;;  %p10698_p11 = por %p10697_p10, %p10696_p9 }
  0x45   : > { %p10692_p8 = pneg %p10691_p6 }
  0x47   : > { %p10699_p12 = pnand %p10698_p11, %p10692_p8 }
  0x49   : > { %10702 = shalt.err (!%p10699_p12)
}
  0x4a   : > { %9907 = dma.hbm_to_vmem [thread:$0]  (!%p10828_p5), %s11964_s4, 9216, %s10832_s18, [#allocation8], %s10741_s14, %s10741_s14, %s10742_s17  }
  0x4b   : > { %s10703_s12 = scalar_lea.vmem %s10837_s21, 16  ;;  %p10711_p4 = scmp.lt.s32.totalorder %s10837_s21, %s10837_s21 }
  0x4c   : > { %p10704_p13 = scmp.ne.s32.totalorder %s10837_s21, %s10703_s12  ;;  %p10712_p6 = scmp.lt.s32.totalorder %s10703_s12, %s10703_s12 }
  0x4e   : > { %p10706_p0 = pnand %p10704_p13, %p10847_p7  ;;  %p10713_p8 = por %p10712_p6, %p10711_p4 }
  0x50   : > { %p10707_p1 = pneg %p10706_p0 }
  0x52   : > { %p10714_p9 = pnand %p10713_p8, %p10707_p1 }
  0x54   : > { %10717 = shalt.err (!%p10714_p9)
}
  0x55   : > { %s10743_s19 = smov [#allocation10]   ;;  %332 = sbr.rel (%p10816_p3) target bundleno = 2594 (0xa22), region = 56 }
  0x56   : > { %9910 = dma.vmem_to_smem (!%p10828_p5), %s10837_s21, 16, %s10743_s19, [#allocation6]  }
  0x5c   : > { %10723 = dma.done.wait (%p9911_p2), [#allocation5], 9216  }
  0x5d   : > { %10725 = vsyncadd (%p9911_p2), [#allocation5], 4294958080 }
  0x5e   : > { %10727 = dma.done.wait (%p9911_p2), [#allocation8], 18432  }
  0x5f   : > { %10729 = vsyncadd (%p9911_p2), [#allocation8], 4294948864 }
  0x60   : > { %10731 = dma.done.wait (%p9911_p2), [#allocation6], 16  }
  0x61   : > { %10733 = vsyncadd (%p9911_p2), [#allocation6], 4294967280 }
  0x62   : > { %350 = sfence }
  0x63   : > { %p381_p3 = scmp.lt.s32.totalorder %s10811_s10, 1  ;;  %s10744_s27 = smov 127   ;;  %v7103_v12 = vld [vmem:[%s11961_s1 + $0x40] sm:$0xff]  ;;  %vm490_vm0 = vcmask 523264   ;;  %v7104_v33 = vld [vmem:[%s11961_s1 + $0x48] sm:$0xff]  ;;  %v7105_v34 = vld [vmem:[%s11961_s1 + $0x50] sm:$0xff] }
  0x64   : > { %8058 = vmatprep.mubr.msk.f32.mxu0 %vm490_vm0, %v7103_v12  ;;  %s10745_s20 = smov 126   ;;  %s10746_s22 = smov 122   ;;  %v7106_v35 = vld [vmem:[%s11961_s1 + $0x58] sm:$0xff]  ;;  %v7107_v36 = vld [vmem:[%s11961_s1 + $0x60] sm:$0xff]  ;;  %v7108_v38 = vld [vmem:[%s11961_s1 + $0x68] sm:$0xff]  ;;  %v10752_v56 = vmov 0  }
  0x65   : > { %s11980_s10 = smov (!%p381_p3, %s10811_s10), 1  ;;  %s10747_s23 = smov 121   ;;  %v7109_v41 = vld [vmem:[%s11961_s1 + $0x70] sm:$0xff]  ;;  %v7110_v43 = vld [vmem:[%s11961_s1 + $0x78] sm:$0xff]  ;;  %v441_v46 = vld [vmem:[%s11961_s1] sm:$0xff]  ;;  %10105 = vset.pattern.permute.xlu1 %v10752_v56  ;;  %10104 = vset.pattern.permute.xlu0 %v10752_v56  ;;  %vm391_vm1 = vcmask 56320  }
  0x66   : > { %s11970_s11 = sshll.u32 %s11980_s10, 6  ;;  %s10748_s24 = smov 120   ;;  %v426_v49 = vld [vmem:[%s11965_s5 + $0x8] sm:$0xff]  ;;  %v425_v51 = vld [vmem:[%s11965_s5] sm:$0xff]  ;;  %v443_v54 = vld [vmem:[%s11961_s1 + $0x10] sm:$0xff]  ;;  %vm400_vm2 = vcmask 310520  }
  0x67   : > { %s385_s21 = scalar_lea.vmem %s11960_s0, %s11970_s11  ;;  %s10749_s25 = smov 116   ;;  %v442_v50 = vld [vmem:[%s11961_s1 + $0x8] sm:$0xff]  ;;  %v427_v58 = vld [vmem:[%s11965_s5 + $0x10] sm:$0xff]  ;;  %v444_v59 = vld [vmem:[%s11961_s1 + $0x18] sm:$0xff]  ;;  %vm2042_vm3 = vcmask 252984   ;;  %vm6979_vm4 = vcmask 310272  }
  0x68   : > { %v433_v0 = vld [vmem:[%s385_s21] sm:$0xff]  ;;  %v434_v1 = vld [vmem:[%s385_s21 + $0x8] sm:$0xff]  ;;  %v435_v2 = vld [vmem:[%s385_s21 + $0x10] sm:$0xff]  ;;  %s10750_s26 = smov 115   ;;  %s10751_s28 = smov 114  }
  0x69   : > { %v9944_v3 = vpack.i.bf16 %v434_v1, %v433_v0  ;;  %v436_v4 = vld [vmem:[%s385_s21 + $0x18] sm:$0xff]  ;;  %v437_v5 = vld [vmem:[%s385_s21 + $0x20] sm:$0xff]  ;;  %v438_v6 = vld [vmem:[%s385_s21 + $0x28] sm:$0xff]  ;;  %v10963_v13 = vpack.c.bf16 %v434_v1, %v433_v0  ;;  %s10754_s15 = smov 7   ;;  %s3675_s14 = sld [smem:[#allocation10]] }
  0x6a   : > { %v9954_v7 = vpack.i.bf16 %v438_v6, %v437_v5  ;;  %v439_v8 = vld [vmem:[%s385_s21 + $0x30] sm:$0xff]  ;;  %v440_v9 = vld [vmem:[%s385_s21 + $0x38] sm:$0xff]  ;;  %v9949_v10 = vpack.i.bf16 %v436_v4, %v435_v2  ;;  %v10968_v14 = vpack.c.bf16 %v436_v4, %v435_v2  ;;  %v10972_v15 = vpack.c.bf16 %v438_v6, %v437_v5  ;;  %v445_v63 = vld [vmem:[%s11961_s1 + $0x20] sm:$0xff] }
  0x6b   : > { %9945 = vrot.lane.b32.xlu0 %v9944_v3, %s10744_s27  ;;  %v9959_v11 = vpack.i.bf16 %v440_v9, %v439_v8  ;;  %v10976_v16 = vpack.c.bf16 %v440_v9, %v439_v8  ;;  %v428_v60 = vld [vmem:[%s11965_s5 + $0x18] sm:$0xff]  ;;  %v429_v2 = vld [vmem:[%s11965_s5 + $0x20] sm:$0xff]  ;;  %v430_v4 = vld [vmem:[%s11965_s5 + $0x28] sm:$0xff] }
  0x6c   : > { %9955 = vrot.lane.b32.xlu1 %v9954_v7, %s10744_s27  ;;  %v432_v12 = vld [vmem:[%s11965_s5 + $0x38] sm:$0xff] }
  0x6f   : > { %9950 = vrot.lane.b32.xlu0 %v9949_v10, %s10744_s27 }
  0x70   : > { %9960 = vrot.lane.b32.xlu1 %v9959_v11, %s10744_s27 }
  0x73   : > { %9965 = vrot.lane.b32.xlu0 %v9944_v3, %s10745_s20 }
  0x74   : > { %9970 = vrot.lane.b32.xlu1 %v9949_v10, %s10745_s20 }
  0x77   : > { %9975 = vrot.lane.b32.xlu0 %v9954_v7, %s10745_s20 }
  0x78   : > { %9980 = vrot.lane.b32.xlu1 %v9959_v11, %s10745_s20 }
  0x7b   : > { %9985 = vrot.lane.b32.xlu0 %v9944_v3, %s10746_s22 }
  0x7c   : > { %9990 = vrot.lane.b32.xlu1 %v9949_v10, %s10746_s22 }
  0x7f   : > { %9995 = vrot.lane.b32.xlu0 %v9954_v7, %s10746_s22 }
  0x80   : > { %10000 = vrot.lane.b32.xlu1 %v9959_v11, %s10746_s22 }
  0x83   : > { %10005 = vrot.lane.b32.xlu0 %v9944_v3, %s10747_s23 }
  0x84   : > { %10010 = vrot.lane.b32.xlu1 %v9949_v10, %s10747_s23 }
  0x87   : > { %10015 = vrot.lane.b32.xlu0 %v9954_v7, %s10747_s23 }
  0x88   : > { %10020 = vrot.lane.b32.xlu1 %v9959_v11, %s10747_s23 }
  0x8b   : > { %10025 = vrot.lane.b32.xlu0 %v9944_v3, %s10748_s24 }
  0x8c   : > { %10030 = vrot.lane.b32.xlu1 %v9949_v10, %s10748_s24 }
  0x8f   : > { %10035 = vrot.lane.b32.xlu0 %v9954_v7, %s10748_s24 }
  0x90   : > { %10040 = vrot.lane.b32.xlu1 %v9959_v11, %s10748_s24 }
  0x93   : > { %10045 = vrot.lane.b32.xlu0 %v9944_v3, %s10749_s25 }
  0x94   : > { %10050 = vrot.lane.b32.xlu1 %v9949_v10, %s10749_s25 }
  0x97   : > { %10055 = vrot.lane.b32.xlu0 %v9954_v7, %s10749_s25 }
  0x98   : > { %10060 = vrot.lane.b32.xlu1 %v9959_v11, %s10749_s25 }
  0x9b   : > { %10065 = vrot.lane.b32.xlu0 %v9944_v3, %s10750_s26 }
  0x9c   : > { %10070 = vrot.lane.b32.xlu1 %v9949_v10, %s10750_s26 }
  0x9f   : > { %10075 = vrot.lane.b32.xlu0 %v9954_v7, %s10750_s26 }
  0xa0   : > { %10080 = vrot.lane.b32.xlu1 %v9959_v11, %s10750_s26 }
  0xa3   : > { %10085 = vrot.lane.b32.xlu0 %v9944_v3, %s10751_s28  ;;  %v446_v3 = vld [vmem:[%s11961_s1 + $0x28] sm:$0xff] }
  0xa4   : > { %10090 = vrot.lane.b32.xlu1 %v9949_v10, %s10751_s28  ;;  %v431_v10 = vld [vmem:[%s11965_s5 + $0x30] sm:$0xff] }
  0xa7   : > { %10095 = vrot.lane.b32.xlu0 %v9954_v7, %s10751_s28  ;;  %v447_v7 = vld [vmem:[%s11961_s1 + $0x30] sm:$0xff] }
  0xa8   : > { %10100 = vrot.lane.b32.xlu1 %v9959_v11, %s10751_s28  ;;  %v448_v11 = vld [vmem:[%s11961_s1 + $0x38] sm:$0xff] }
  0xab   : > { %1941 = vperm.xlu0 %10104, %v425_v51   ;;  %v7147_v51 = vld [vmem:[%s11961_s1 + $0xe0] sm:$0xff] }
  0xac   : > { %1946 = vperm.xlu1 %10105, %v426_v49  }
  0xaf   : > { %1956 = vperm.xlu0 %10104, %v428_v60   ;;  %v7150_v60 = vld [vmem:[%s11961_s1 + $0xf8] sm:$0xff] }
  0xb0   : > { %1951 = vperm.xlu1 %10105, %v427_v58  }
  0xb3   : > { %1966 = vperm.xlu0 %10104, %v430_v4  }
  0xb4   : > { %1961 = vperm.xlu1 %10105, %v429_v2   ;;  %v7160_v2 = vld [vmem:[%s11961_s1 + $0x108] sm:$0xff] }
  0xb7   : > { %1976 = vperm.xlu0 %10104, %v432_v12  }
  0xb8   : > { %1971 = vperm.xlu1 %10105, %v431_v10  }
  0xdd   : > { %v9946_v17 = vpop.permute.xlu0 %9945 }
  0xde   : > { %v9948_v18 = vunpack.i.h.bf16 %v9946_v17  ;;  %v9947_v19 = vunpack.i.l.bf16 %v9946_v17  ;;  %v9956_v20 = vpop.permute.xlu1 %9955 }
  0xdf   : > { %v9958_v22 = vunpack.i.h.bf16 %v9956_v20  ;;  %v9957_v23 = vunpack.i.l.bf16 %v9956_v20 }
  0xe0   : > { %v9050_v21 = vpack.c.bf16 %v9948_v18, %v9947_v19  ;;  %v7128_v18 = vld [vmem:[%s11961_s1 + $0x88] sm:$0xff] }
  0xe1   : > { %v9951_v24 = vpop.permute.xlu0 %9950  ;;  %v9058_v31 = vpack.c.bf16 %v9958_v22, %v9957_v23 }
  0xe2   : > { %v9953_v25 = vunpack.i.h.bf16 %v9951_v24  ;;  %v9952_v26 = vunpack.i.l.bf16 %v9951_v24  ;;  %9051 = vmatprep.subr.bf16.mxu0 %v9050_v21  ;;  %v9961_v27 = vpop.permute.xlu1 %9960  ;;  %v7130_v24 = vld [vmem:[%s11961_s1 + $0x98] sm:$0xff] }
  0xe3   : > { %9053 = vmatpush3.bf16.msra.mxu0 %v9050_v21  ;;  %v9963_v29 = vunpack.i.h.bf16 %v9961_v27  ;;  %v9962_v30 = vunpack.i.l.bf16 %v9961_v27  ;;  %v7129_v21 = vld [vmem:[%s11961_s1 + $0x90] sm:$0xff]  ;;  %v7131_v27 = vld [vmem:[%s11961_s1 + $0xa0] sm:$0xff] }
  0xe4   : > { %v9054_v28 = vpack.c.bf16 %v9953_v25, %v9952_v26 }
  0xe5   : > { %v9062_v32 = vpack.c.bf16 %v9963_v29, %v9962_v30  ;;  %v9966_v37 = vpop.permute.xlu0 %9965  ;;  %v7132_v30 = vld [vmem:[%s11961_s1 + $0xa8] sm:$0xff] }
  0xe6   : > { %9055 = vmatprep.subr.bf16.mxu0 %v9054_v28  ;;  %v9968_v39 = vunpack.i.h.bf16 %v9966_v37  ;;  %v9967_v40 = vunpack.i.l.bf16 %v9966_v37  ;;  %v9971_v42 = vpop.permute.xlu1 %9970 }
  0xe7   : > { %9057 = vmatpush3.bf16.msra.mxu0 %v9054_v28  ;;  %v9973_v44 = vunpack.i.h.bf16 %v9971_v42  ;;  %v9972_v45 = vunpack.i.l.bf16 %v9971_v42  ;;  %v7144_v42 = vld [vmem:[%s11961_s1 + $0xc8] sm:$0xff] }
  0xe8   : > { %9059 = vmatprep.subr.bf16.mxu0 %v9058_v31  ;;  %v9082_v47 = vpack.c.bf16 %v9968_v39, %v9967_v40  ;;  %v7143_v39 = vld [vmem:[%s11961_s1 + $0xc0] sm:$0xff] }
  0xe9   : > { %v9976_v48 = vpop.permute.xlu0 %9975  ;;  %v9086_v55 = vpack.c.bf16 %v9973_v44, %v9972_v45  ;;  %v7145_v45 = vld [vmem:[%s11961_s1 + $0xd0] sm:$0xff] }
  0xea   : > { %v9978_v52 = vunpack.i.h.bf16 %v9976_v48  ;;  %v9977_v53 = vunpack.i.l.bf16 %v9976_v48  ;;  %v9981_v57 = vpop.permute.xlu1 %9980  ;;  %v7146_v48 = vld [vmem:[%s11961_s1 + $0xd8] sm:$0xff] }
  0xeb   : > { %9061 = vmatpush3.bf16.msra.mxu0 %v9058_v31  ;;  %v9983_v61 = vunpack.i.h.bf16 %v9981_v57  ;;  %v9982_v62 = vunpack.i.l.bf16 %v9981_v57  ;;  %v7149_v57 = vld [vmem:[%s11961_s1 + $0xf0] sm:$0xff] }
  0xec   : > { %9063 = vmatprep.subr.bf16.mxu0 %v9062_v32  ;;  %v9090_v0 = vpack.c.bf16 %v9978_v52, %v9977_v53 }
  0xed   : > { %v9986_v1 = vpop.permute.xlu0 %9985  ;;  %v9094_v8 = vpack.c.bf16 %v9983_v61, %v9982_v62 }
  0xee   : > { %v9988_v5 = vunpack.i.h.bf16 %v9986_v1  ;;  %v9987_v6 = vunpack.i.l.bf16 %v9986_v1  ;;  %v9991_v9 = vpop.permute.xlu1 %9990 }
  0xef   : > { %9065 = vmatpush3.bf16.msra.mxu0 %v9062_v32 }
  0xf0   : > { %9067 = vmatprep.subr.bf16.mxu0 %v10963_v13 }
  0xf1   : > { %v9996_v17 = vpop.permute.xlu0 %9995 }
  0xf2   : > { %8059 = vmatmul.mubr.msk.f32.vlgmr.msra.gmra.mrb[0].mxu0 %vm490_vm0, %v7104_v33  ;;  %v9998_v19 = vunpack.i.h.bf16 %v9996_v17  ;;  %v9997_v20 = vunpack.i.l.bf16 %v9996_v17  ;;  %v10001_v23 = vpop.permute.xlu1 %10000  ;;  %v7133_v33 = vld [vmem:[%s11961_s1 + $0xb0] sm:$0xff] }
  0xf3   : > { %9069 = vmatpush3.bf16.msra.mxu0 %v10963_v13  ;;  %8061 = vmatprep.mubr.msk.f32.mxu0 %vm490_vm0, %v7105_v34  ;;  %v9993_v13 = vunpack.i.h.bf16 %v9991_v9  ;;  %v10003_v25 = vunpack.i.h.bf16 %v10001_v23  ;;  %v10002_v26 = vunpack.i.l.bf16 %v10001_v23  ;;  %v7165_v17 = vld [vmem:[%s11961_s1 + $0x130] sm:$0xff]  ;;  %v7175_v23 = vld [vmem:[%s11961_s1 + $0x140] sm:$0xff] }
  0xf4   : > { %9071 = vmatprep.subr.bf16.mxu0 %v10968_v14  ;;  %v9106_v28 = vpack.c.bf16 %v9998_v19, %v9997_v20  ;;  %v7166_v20 = vld [vmem:[%s11961_s1 + $0x138] sm:$0xff] }
  0xf5   : > { %v10006_v29 = vpop.permute.xlu0 %10005  ;;  %v9110_v34 = vpack.c.bf16 %v10003_v25, %v10002_v26  ;;  %v7176_v26 = vld [vmem:[%s11961_s1 + $0x148] sm:$0xff] }
  0xf6   : > { %8062 = vmatmul.mubr.msk.f32.gmra.mrb[2].mxu0 %vm490_vm0, %v7106_v35  ;;  %v10008_v31 = vunpack.i.h.bf16 %v10006_v29  ;;  %v10007_v32 = vunpack.i.l.bf16 %v10006_v29  ;;  %v10011_v35 = vpop.permute.xlu1 %10010  ;;  %v7177_v29 = vld [vmem:[%s11961_s1 + $0x150] sm:$0xff] }
  0xf7   : > { %9073 = vmatpush3.bf16.msra.mxu0 %v10968_v14  ;;  %8064 = vmatprep.mubr.msk.f32.mxu0 %vm490_vm0, %v7107_v36  ;;  %v9992_v14 = vunpack.i.l.bf16 %v9991_v9  ;;  %v7134_v36 = vld [vmem:[%s11961_s1 + $0xb8] sm:$0xff]  ;;  %v10013_v37 = vunpack.i.h.bf16 %v10011_v35 }
  0xf8   : > { %9075 = vmatprep.subr.bf16.mxu0 %v10972_v15  ;;  %v9114_v40 = vpack.c.bf16 %v10008_v31, %v10007_v32  ;;  %v7178_v32 = vld [vmem:[%s11961_s1 + $0x158] sm:$0xff] }
  0xf9   : > { %v9102_v22 = vpack.c.bf16 %v9993_v13, %v9992_v14  ;;  %v7164_v14 = vld [vmem:[%s11961_s1 + $0x128] sm:$0xff] }
  0xfa   : > { %8065 = vmatmul.mubr.msk.f32.gmra.mrb[4].mxu0 %vm490_vm0, %v7108_v38  ;;  %v10012_v38 = vunpack.i.l.bf16 %v10011_v35  ;;  %v7179_v35 = vld [vmem:[%s11961_s1 + $0x160] sm:$0xff] }
  0xfb   : > { %9077 = vmatpush3.bf16.msra.mxu0 %v10972_v15  ;;  %8067 = vmatprep.mubr.msk.f32.mxu0 %vm490_vm0, %v7109_v41  ;;  %v7127_v15 = vld [vmem:[%s11961_s1 + $0x80] sm:$0xff]  ;;  %v10016_v41 = vpop.permute.xlu0 %10015 }
  0xfc   : > { %9079 = vmatprep.subr.bf16.mxu0 %v10976_v16  ;;  %v10017_v44 = vunpack.i.l.bf16 %v10016_v41 }
  0xfe   : > { %8068 = vmatmul.mubr.msk.f32.gmra.mrb[6].mxu0 %vm490_vm0, %v7110_v43  ;;  %v10018_v43 = vunpack.i.h.bf16 %v10016_v41  ;;  %v7181_v41 = vld [vmem:[%s11961_s1 + $0x170] sm:$0xff] }
  0xff   : > { %9081 = vmatpush3.bf16.msra.mxu0 %v10976_v16  ;;  %8086 = vmatprep.mubr.msk.f32.mxu0 %vm490_vm0, %v441_v46  ;;  %v9098_v16 = vpack.c.bf16 %v9988_v5, %v9987_v6  ;;  %v9118_v46 = vpack.c.bf16 %v10013_v37, %v10012_v38  ;;  %v10026_v53 = vpop.permute.xlu0 %10025  ;;  %v7161_v5 = vld [vmem:[%s11961_s1 + $0x110] sm:$0xff]  ;;  %v7180_v38 = vld [vmem:[%s11961_s1 + $0x168] sm:$0xff] }
 0x100   : > { %9083 = vmatprep.subr.bf16.mxu0 %v9082_v47  ;;  %v9122_v52 = vpack.c.bf16 %v10018_v43, %v10017_v44  ;;  %v10027_v56 = vunpack.i.l.bf16 %v10026_v53  ;;  %v7182_v44 = vld [vmem:[%s11961_s1 + $0x178] sm:$0xff] }
 0x102   : > { %8087 = vmatmul.mubr.msk.f32.vlgmr.msra.gmra.mrb[0].mxu0 %vm490_vm0, %v442_v50 }
 0x103   : > { %9085 = vmatpush3.bf16.msra.mxu0 %v9082_v47  ;;  %8089 = vmatprep.mubr.msk.f32.mxu0 %vm490_vm0, %v443_v54  ;;  %v10021_v47 = vpop.permute.xlu1 %10020  ;;  %v7148_v54 = vld [vmem:[%s11961_s1 + $0xe8] sm:$0xff]  ;;  %v10036_v1 = vpop.permute.xlu0 %10035 }
 0x104   : > { %9087 = vmatprep.subr.bf16.mxu0 %v9086_v55  ;;  %v10023_v49 = vunpack.i.h.bf16 %v10021_v47  ;;  %v10022_v50 = vunpack.i.l.bf16 %v10021_v47  ;;  %v10037_v4 = vunpack.i.l.bf16 %v10036_v1  ;;  %v7191_v47 = vld [vmem:[%s11961_s1 + $0x180] sm:$0xff] }
 0x106   : > { %8090 = vmatmul.mubr.msk.f32.gmra.mrb[2].mxu0 %vm490_vm0, %v444_v59  ;;  %v9126_v58 = vpack.c.bf16 %v10023_v49, %v10022_v50  ;;  %v7192_v50 = vld [vmem:[%s11961_s1 + $0x188] sm:$0xff] }
 0x107   : > { %9089 = vmatpush3.bf16.msra.mxu0 %v9086_v55  ;;  %8092 = vmatprep.mubr.msk.f32.mxu0 %vm490_vm0, %v445_v63  ;;  %v10028_v55 = vunpack.i.h.bf16 %v10026_v53  ;;  %v10031_v59 = vpop.permute.xlu1 %10030  ;;  %v7159_v63 = vld [vmem:[%s11961_s1 + $0x100] sm:$0xff]  ;;  %v10046_v13 = vpop.permute.xlu0 %10045  ;;  %v7193_v53 = vld [vmem:[%s11961_s1 + $0x190] sm:$0xff] }
 0x108   : > { %9091 = vmatprep.subr.bf16.mxu0 %v9090_v0  ;;  %v10033_v61 = vunpack.i.h.bf16 %v10031_v59  ;;  %v10032_v62 = vunpack.i.l.bf16 %v10031_v59  ;;  %v7195_v59 = vld [vmem:[%s11961_s1 + $0x1a0] sm:$0xff] }
 0x10a   : > { %8093 = vmatmul.mubr.msk.f32.gmra.mrb[4].mxu0 %vm490_vm0, %v446_v3  ;;  %v10038_v3 = vunpack.i.h.bf16 %v10036_v1  ;;  %v9134_v6 = vpack.c.bf16 %v10033_v61, %v10032_v62  ;;  %v7196_v62 = vld [vmem:[%s11961_s1 + $0x1a8] sm:$0xff]  ;;  %v7197_v1 = vld [vmem:[%s11961_s1 + $0x1b0] sm:$0xff] }
 0x10b   : > { %9093 = vmatpush3.bf16.msra.mxu0 %v9090_v0  ;;  %8095 = vmatprep.mubr.msk.f32.mxu0 %vm490_vm0, %v447_v7  ;;  %v9130_v0 = vpack.c.bf16 %v10028_v55, %v10027_v56  ;;  %v10041_v7 = vpop.permute.xlu1 %10040  ;;  %v10056_v25 = vpop.permute.xlu0 %10055  ;;  %v7194_v56 = vld [vmem:[%s11961_s1 + $0x198] sm:$0xff] }
 0x10c   : > { %9095 = vmatprep.subr.bf16.mxu0 %v9094_v8  ;;  %v10043_v9 = vunpack.i.h.bf16 %v10041_v7  ;;  %v10042_v10 = vunpack.i.l.bf16 %v10041_v7  ;;  %v9138_v12 = vpack.c.bf16 %v10038_v3, %v10037_v4  ;;  %v7198_v4 = vld [vmem:[%s11961_s1 + $0x1b8] sm:$0xff]  ;;  %v7207_v7 = vld [vmem:[%s11961_s1 + $0x1c0] sm:$0xff] }
 0x10e   : > { %8096 = vmatmul.mubr.msk.f32.gmra.mrb[6].mxu0 %vm490_vm0, %v448_v11  ;;  %v7163_v11 = vld [vmem:[%s11961_s1 + $0x120] sm:$0xff] }
 0x10f   : > { %9097 = vmatpush3.bf16.msra.mxu0 %v9094_v8  ;;  %8114 = vmatprep.mubr.msk.f32.mxu0 %vm490_vm0, %v7127_v15  ;;  %v7162_v8 = vld [vmem:[%s11961_s1 + $0x118] sm:$0xff]  ;;  %v10048_v15 = vunpack.i.h.bf16 %v10046_v13  ;;  %v10051_v19 = vpop.permute.xlu1 %10050  ;;  %v10066_v37 = vpop.permute.xlu0 %10065 }
 0x110   : > { %9099 = vmatprep.subr.bf16.mxu0 %v9098_v16 }
 0x112   : > { %8115 = vmatmul.mubr.msk.f32.vlgmr.msra.gmra.mrb[0].mxu0 %vm490_vm0, %v7128_v18  ;;  %v9142_v18 = vpack.c.bf16 %v10043_v9, %v10042_v10  ;;  %v7208_v10 = vld [vmem:[%s11961_s1 + $0x1c8] sm:$0xff] }
 0x113   : > { %9101 = vmatpush3.bf16.msra.mxu0 %v9098_v16  ;;  %8117 = vmatprep.mubr.msk.f32.mxu0 %vm490_vm0, %v7129_v21  ;;  %v10047_v16 = vunpack.i.l.bf16 %v10046_v13  ;;  %v10053_v21 = vunpack.i.h.bf16 %v10051_v19  ;;  %v10061_v31 = vpop.permute.xlu1 %10060  ;;  %v10076_v49 = vpop.permute.xlu0 %10075  ;;  %v7209_v13 = vld [vmem:[%s11961_s1 + $0x1d0] sm:$0xff] }
 0x114   : > { %9103 = vmatprep.subr.bf16.mxu0 %v9102_v22 }
 0x116   : > { %8118 = vmatmul.mubr.msk.f32.gmra.mrb[2].mxu0 %vm490_vm0, %v7130_v24  ;;  %v9146_v24 = vpack.c.bf16 %v10048_v15, %v10047_v16  ;;  %v7210_v16 = vld [vmem:[%s11961_s1 + $0x1d8] sm:$0xff] }
 0x117   : > { %9105 = vmatpush3.bf16.msra.mxu0 %v9102_v22  ;;  %8120 = vmatprep.mubr.msk.f32.mxu0 %vm490_vm0, %v7131_v27  ;;  %v10052_v22 = vunpack.i.l.bf16 %v10051_v19  ;;  %v10058_v27 = vunpack.i.h.bf16 %v10056_v25  ;;  %v10071_v43 = vpop.permute.xlu1 %10070  ;;  %v10086_v61 = vpop.permute.xlu0 %10085  ;;  %v7211_v19 = vld [vmem:[%s11961_s1 + $0x1e0] sm:$0xff] }
 0x118   : > { %9107 = vmatprep.subr.bf16.mxu0 %v9106_v28 }
 0x11a   : > { %8121 = vmatmul.mubr.msk.f32.gmra.mrb[4].mxu0 %vm490_vm0, %v7132_v30  ;;  %v9150_v30 = vpack.c.bf16 %v10053_v21, %v10052_v22  ;;  %v7212_v21 = vld [vmem:[%s11961_s1 + $0x1e8] sm:$0xff]  ;;  %v7213_v22 = vld [vmem:[%s11961_s1 + $0x1f0] sm:$0xff] }
 0x11b   : > { %9109 = vmatpush3.bf16.msra.mxu0 %v9106_v28  ;;  %8123 = vmatprep.mubr.msk.f32.mxu0 %vm490_vm0, %v7133_v33  ;;  %v10057_v28 = vunpack.i.l.bf16 %v10056_v25  ;;  %v10063_v33 = vunpack.i.h.bf16 %v10061_v31  ;;  %v10081_v55 = vpop.permute.xlu1 %10080  ;;  %v10096_v9 = vpop.permute.xlu0 %10095  ;;  %v7223_v25 = vld [vmem:[%s11961_s1 + $0x200] sm:$0xff] }
 0x11c   : > { %9111 = vmatprep.subr.bf16.mxu0 %v9110_v34 }
 0x11e   : > { %8124 = vmatmul.mubr.msk.f32.gmra.mrb[6].mxu0 %vm490_vm0, %v7134_v36  ;;  %v9154_v36 = vpack.c.bf16 %v10058_v27, %v10057_v28  ;;  %v7225_v27 = vld [vmem:[%s11961_s1 + $0x210] sm:$0xff]  ;;  %v7226_v28 = vld [vmem:[%s11961_s1 + $0x218] sm:$0xff] }
 0x11f   : > { %9113 = vmatpush3.bf16.msra.mxu0 %v9110_v34  ;;  %8142 = vmatprep.mubr.msk.f32.mxu0 %vm490_vm0, %v7143_v39  ;;  %v10062_v34 = vunpack.i.l.bf16 %v10061_v31  ;;  %v10068_v39 = vunpack.i.h.bf16 %v10066_v37  ;;  %v10091_v3 = vpop.permute.xlu1 %10090  ;;  %v7229_v31 = vld [vmem:[%s11961_s1 + $0x230] sm:$0xff] }
 0x120   : > { %9115 = vmatprep.subr.bf16.mxu0 %v9114_v40 }
 0x122   : > { %8143 = vmatmul.mubr.msk.f32.vlgmr.msra.gmra.mrb[0].mxu0 %vm490_vm0, %v7144_v42  ;;  %v9158_v42 = vpack.c.bf16 %v10063_v33, %v10062_v34  ;;  %v10753_v33 = vmov 0.0  }
 0x123   : > { %9117 = vmatpush3.bf16.msra.mxu0 %v9114_v40  ;;  %8145 = vmatprep.mubr.msk.f32.mxu0 %vm490_vm0, %v7145_v45  ;;  %v10067_v40 = vunpack.i.l.bf16 %v10066_v37  ;;  %v10073_v45 = vunpack.i.h.bf16 %v10071_v43  ;;  %v10101_v15 = vpop.permute.xlu1 %10100  ;;  %410 = vst.msk [vmem:[#allocation3 + $0x8] sm:$0xff] %vm391_vm1, %v10753_v33  ;;  %392 = vst.msk [vmem:[#allocation2] sm:$0xff] %vm391_vm1, %v10753_v33 }
 0x124   : > { %9119 = vmatprep.subr.bf16.mxu0 %v9118_v46  ;;  %393 = vst.msk [vmem:[#allocation2 + $0x8] sm:$0xff] %vm391_vm1, %v10753_v33  ;;  %394 = vst.msk [vmem:[#allocation2 + $0x10] sm:$0xff] %vm391_vm1, %v10753_v33 }
 0x125   : > { %395 = vst.msk [vmem:[#allocation2 + $0x18] sm:$0xff] %vm391_vm1, %v10753_v33  ;;  %396 = vst.msk [vmem:[#allocation2 + $0x20] sm:$0xff] %vm391_vm1, %v10753_v33 }
 0x126   : > { %8146 = vmatmul.mubr.msk.f32.gmra.mrb[2].mxu0 %vm490_vm0, %v7146_v48  ;;  %v9162_v48 = vpack.c.bf16 %v10068_v39, %v10067_v40  ;;  %397 = vst.msk [vmem:[#allocation2 + $0x28] sm:$0xff] %vm391_vm1, %v10753_v33  ;;  %398 = vst.msk [vmem:[#allocation2 + $0x30] sm:$0xff] %vm391_vm1, %v10753_v33 }
 0x127   : > { %9121 = vmatpush3.bf16.msra.mxu0 %v9118_v46  ;;  %8148 = vmatprep.mubr.msk.f32.mxu0 %vm490_vm0, %v7147_v51  ;;  %v10072_v46 = vunpack.i.l.bf16 %v10071_v43  ;;  %v10078_v51 = vunpack.i.h.bf16 %v10076_v49  ;;  %399 = vst.msk [vmem:[#allocation2 + $0x38] sm:$0xff] %vm391_vm1, %v10753_v33  ;;  %409 = vst.msk [vmem:[#allocation3] sm:$0xff] %vm391_vm1, %v10753_v33 }
 0x128   : > { %9123 = vmatprep.subr.bf16.mxu0 %v9122_v52  ;;  %411 = vst.msk [vmem:[#allocation3 + $0x10] sm:$0xff] %vm391_vm1, %v10753_v33  ;;  %412 = vst.msk [vmem:[#allocation3 + $0x18] sm:$0xff] %vm391_vm1, %v10753_v33 }
 0x129   : > { %413 = vst.msk [vmem:[#allocation3 + $0x20] sm:$0xff] %vm391_vm1, %v10753_v33  ;;  %414 = vst.msk [vmem:[#allocation3 + $0x28] sm:$0xff] %vm391_vm1, %v10753_v33 }
 0x12a   : > { %8149 = vmatmul.mubr.msk.f32.gmra.mrb[4].mxu0 %vm490_vm0, %v7148_v54  ;;  %v9166_v54 = vpack.c.bf16 %v10073_v45, %v10072_v46  ;;  %415 = vst.msk [vmem:[#allocation3 + $0x30] sm:$0xff] %vm391_vm1, %v10753_v33  ;;  %416 = vst.msk [vmem:[#allocation3 + $0x38] sm:$0xff] %vm391_vm1, %v10753_v33  ;;  %v1942_v34 = vpop.permute.xlu0 %1941 }
 0x12b   : > { %9125 = vmatpush3.bf16.msra.mxu0 %v9122_v52  ;;  %8151 = vmatprep.mubr.msk.f32.mxu0 %vm490_vm0, %v7149_v57  ;;  %v10077_v52 = vunpack.i.l.bf16 %v10076_v49  ;;  %v10083_v57 = vunpack.i.h.bf16 %v10081_v55  ;;  %418 = vst.msk [vmem:[#allocation3 + $0x8] sm:$0xff] %vm400_vm2, %v10753_v33  ;;  %417 = vst.msk [vmem:[#allocation3] sm:$0xff] %vm400_vm2, %v10753_v33 }
 0x12c   : > { %9127 = vmatprep.subr.bf16.mxu0 %v9126_v58  ;;  %401 = vst.msk [vmem:[#allocation2] sm:$0xff] %vm400_vm2, %v10753_v33  ;;  %402 = vst.msk [vmem:[#allocation2 + $0x8] sm:$0xff] %vm400_vm2, %v10753_v33 }
 0x12d   : > { %403 = vst.msk [vmem:[#allocation2 + $0x10] sm:$0xff] %vm400_vm2, %v10753_v33  ;;  %404 = vst.msk [vmem:[#allocation2 + $0x18] sm:$0xff] %vm400_vm2, %v10753_v33 }
 0x12e   : > { %8152 = vmatmul.mubr.msk.f32.gmra.mrb[6].mxu0 %vm490_vm0, %v7150_v60  ;;  %v9170_v60 = vpack.c.bf16 %v10078_v51, %v10077_v52  ;;  %405 = vst.msk [vmem:[#allocation2 + $0x20] sm:$0xff] %vm400_vm2, %v10753_v33  ;;  %406 = vst.msk [vmem:[#allocation2 + $0x28] sm:$0xff] %vm400_vm2, %v10753_v33 }
 0x12f   : > { %9129 = vmatpush3.bf16.msra.mxu0 %v9126_v58  ;;  %8170 = vmatprep.mubr.msk.f32.mxu0 %vm490_vm0, %v7159_v63  ;;  %v10082_v58 = vunpack.i.l.bf16 %v10081_v55  ;;  %v10088_v63 = vunpack.i.h.bf16 %v10086_v61  ;;  %407 = vst.msk [vmem:[#allocation2 + $0x30] sm:$0xff] %vm400_vm2, %v10753_v33  ;;  %408 = vst.msk [vmem:[#allocation2 + $0x38] sm:$0xff] %vm400_vm2, %v10753_v33 }
 0x130   : > { %9131 = vmatprep.subr.bf16.mxu0 %v9130_v0  ;;  %419 = vst.msk [vmem:[#allocation3 + $0x10] sm:$0xff] %vm400_vm2, %v10753_v33  ;;  %420 = vst.msk [vmem:[#allocation3 + $0x18] sm:$0xff] %vm400_vm2, %v10753_v33 }
 0x131   : > { %421 = vst.msk [vmem:[#allocation3 + $0x20] sm:$0xff] %vm400_vm2, %v10753_v33  ;;  %422 = vst.msk [vmem:[#allocation3 + $0x28] sm:$0xff] %vm400_vm2, %v10753_v33 }
 0x132   : > { %8171 = vmatmul.mubr.msk.f32.vlgmr.msra.gmra.mrb[0].mxu0 %vm490_vm0, %v7160_v2  ;;  %v9174_v2 = vpack.c.bf16 %v10083_v57, %v10082_v58  ;;  %423 = vst.msk [vmem:[#allocation3 + $0x30] sm:$0xff] %vm400_vm2, %v10753_v33  ;;  %424 = vst.msk [vmem:[#allocation3 + $0x38] sm:$0xff] %vm400_vm2, %v10753_v33  ;;  %v2053_v33 = vld [vmem:[%s11966_s6 + $0x10] sm:$0xff] }
 0x133   : > { %9133 = vmatpush3.bf16.msra.mxu0 %v9130_v0  ;;  %8173 = vmatprep.mubr.msk.f32.mxu0 %vm490_vm0, %v7161_v5  ;;  %v10087_v0 = vunpack.i.l.bf16 %v10086_v61  ;;  %v10093_v5 = vunpack.i.h.bf16 %v10091_v3 }
 0x134   : > { %9135 = vmatprep.subr.bf16.mxu0 %v9134_v6 }
 0x136   : > { %8174 = vmatmul.mubr.msk.f32.gmra.mrb[2].mxu0 %vm490_vm0, %v7162_v8  ;;  %v9178_v8 = vpack.c.bf16 %v10088_v63, %v10087_v0 }
 0x137   : > { %9137 = vmatpush3.bf16.msra.mxu0 %v9134_v6  ;;  %8176 = vmatprep.mubr.msk.f32.mxu0 %vm490_vm0, %v7163_v11  ;;  %v10092_v6 = vunpack.i.l.bf16 %v10091_v3  ;;  %v10098_v11 = vunpack.i.h.bf16 %v10096_v9 }
 0x138   : > { %9139 = vmatprep.subr.bf16.mxu0 %v9138_v12 }
 0x13a   : > { %8177 = vmatmul.mubr.msk.f32.gmra.mrb[4].mxu0 %vm490_vm0, %v7164_v14  ;;  %v9182_v14 = vpack.c.bf16 %v10093_v5, %v10092_v6 }
 0x13b   : > { %9141 = vmatpush3.bf16.msra.mxu0 %v9138_v12  ;;  %8179 = vmatprep.mubr.msk.f32.mxu0 %vm490_vm0, %v7165_v17  ;;  %v10097_v12 = vunpack.i.l.bf16 %v10096_v9  ;;  %v10103_v17 = vunpack.i.h.bf16 %v10101_v15 }
 0x13c   : > { %9143 = vmatprep.subr.bf16.mxu0 %v9142_v18 }
 0x13e   : > { %8180 = vmatmul.mubr.msk.f32.gmra.mrb[6].mxu0 %vm490_vm0, %v7166_v20  ;;  %v9186_v20 = vpack.c.bf16 %v10098_v11, %v10097_v12 }
 0x13f   : > { %9145 = vmatpush3.bf16.msra.mxu0 %v9142_v18  ;;  %8198 = vmatprep.mubr.msk.f32.mxu0 %vm490_vm0, %v7175_v23  ;;  %v10102_v18 = vunpack.i.l.bf16 %v10101_v15 }
 0x140   : > { %9147 = vmatprep.subr.bf16.mxu0 %v9146_v24 }
 0x141   : > { %v9190_v23 = vpack.c.bf16 %v10103_v17, %v10102_v18 }
 0x142   : > { %8199 = vmatmul.mubr.msk.f32.vlgmr.msra.gmra.mrb[0].mxu0 %vm490_vm0, %v7176_v26  ;;  %v7224_v26 = vld [vmem:[%s11961_s1 + $0x208] sm:$0xff] }
 0x143   : > { %9149 = vmatpush3.bf16.msra.mxu0 %v9146_v24  ;;  %8201 = vmatprep.mubr.msk.f32.mxu0 %vm490_vm0, %v7177_v29  ;;  %v7214_v24 = vld [vmem:[%s11961_s1 + $0x1f8] sm:$0xff]  ;;  %v7227_v29 = vld [vmem:[%s11961_s1 + $0x220] sm:$0xff] }
 0x144   : > { %9151 = vmatprep.subr.bf16.mxu0 %v9150_v30 }
 0x146   : > { %8202 = vmatmul.mubr.msk.f32.gmra.mrb[2].mxu0 %vm490_vm0, %v7178_v32  ;;  %v7230_v32 = vld [vmem:[%s11961_s1 + $0x238] sm:$0xff] }
 0x147   : > { %9153 = vmatpush3.bf16.msra.mxu0 %v9150_v30  ;;  %8204 = vmatprep.mubr.msk.f32.mxu0 %vm490_vm0, %v7179_v35  ;;  %v7228_v30 = vld [vmem:[%s11961_s1 + $0x228] sm:$0xff]  ;;  %v1947_v35 = vpop.permute.xlu1 %1946 }
 0x148   : > { %9155 = vmatprep.subr.bf16.mxu0 %v9154_v36 }
 0x14a   : > { %8205 = vmatmul.mubr.msk.f32.gmra.mrb[4].mxu0 %vm490_vm0, %v7180_v38 }
 0x14b   : > { %9157 = vmatpush3.bf16.msra.mxu0 %v9154_v36  ;;  %8207 = vmatprep.mubr.msk.f32.mxu0 %vm490_vm0, %v7181_v41  ;;  %v1957_v36 = vpop.permute.xlu0 %1956  ;;  %v1952_v38 = vpop.permute.xlu1 %1951  ;;  %v7239_v41 = vld [vmem:[%s11967_s7] ss:$0 sm:$0xff] }
 0x14c   : > { %9159 = vmatprep.subr.bf16.mxu0 %v9158_v42 }
 0x14e   : > { %8208 = vmatmul.mubr.msk.f32.gmra.mrb[6].mxu0 %vm490_vm0, %v7182_v44 }
 0x14f   : > { %9161 = vmatpush3.bf16.msra.mxu0 %v9158_v42  ;;  %8226 = vmatprep.mubr.msk.f32.mxu0 %vm490_vm0, %v7191_v47  ;;  %v1967_v49 = vpop.permute.xlu0 %1966  ;;  %v1962_v52 = vpop.permute.xlu1 %1961 }
 0x150   : > { %9163 = vmatprep.subr.bf16.mxu0 %v9162_v48 }
 0x152   : > { %8227 = vmatmul.mubr.msk.f32.vlgmr.msra.gmra.mrb[0].mxu0 %vm490_vm0, %v7192_v50 }
 0x153   : > { %9165 = vmatpush3.bf16.msra.mxu0 %v9162_v48  ;;  %8229 = vmatprep.mubr.msk.f32.mxu0 %vm490_vm0, %v7193_v53 }
 0x154   : > { %9167 = vmatprep.subr.bf16.mxu0 %v9166_v54 }
 0x156   : > { %8230 = vmatmul.mubr.msk.f32.gmra.mrb[2].mxu0 %vm490_vm0, %v7194_v56 }
 0x157   : > { %9169 = vmatpush3.bf16.msra.mxu0 %v9166_v54  ;;  %8232 = vmatprep.mubr.msk.f32.mxu0 %vm490_vm0, %v7195_v59 }
 0x158   : > { %9171 = vmatprep.subr.bf16.mxu0 %v9170_v60 }
 0x15a   : > { %8233 = vmatmul.mubr.msk.f32.gmra.mrb[4].mxu0 %vm490_vm0, %v7196_v62  ;;  %v1977_v62 = vpop.permute.xlu0 %1976 }
 0x15b   : > { %9173 = vmatpush3.bf16.msra.mxu0 %v9170_v60  ;;  %8235 = vmatprep.mubr.msk.f32.mxu0 %vm490_vm0, %v7197_v1  ;;  %v1972_v1 = vpop.permute.xlu1 %1971 }
 0x15c   : > { %9175 = vmatprep.subr.bf16.mxu0 %v9174_v2 }
 0x15e   : > { %8236 = vmatmul.mubr.msk.f32.gmra.mrb[6].mxu0 %vm490_vm0, %v7198_v4 }
 0x15f   : > { %9177 = vmatpush3.bf16.msra.mxu0 %v9174_v2  ;;  %8254 = vmatprep.mubr.msk.f32.mxu0 %vm490_vm0, %v7207_v7 }
 0x160   : > { %9179 = vmatprep.subr.bf16.mxu0 %v9178_v8 }
 0x162   : > { %8255 = vmatmul.mubr.msk.f32.vlgmr.msra.gmra.mrb[0].mxu0 %vm490_vm0, %v7208_v10 }
 0x163   : > { %9181 = vmatpush3.bf16.msra.mxu0 %v9178_v8  ;;  %8257 = vmatprep.mubr.msk.f32.mxu0 %vm490_vm0, %v7209_v13 }
 0x164   : > { %9183 = vmatprep.subr.bf16.mxu0 %v9182_v14 }
 0x166   : > { %8258 = vmatmul.mubr.msk.f32.gmra.mrb[2].mxu0 %vm490_vm0, %v7210_v16 }
 0x167   : > { %9185 = vmatpush3.bf16.msra.mxu0 %v9182_v14  ;;  %8260 = vmatprep.mubr.msk.f32.mxu0 %vm490_vm0, %v7211_v19 }
 0x168   : > { %9187 = vmatprep.subr.bf16.mxu0 %v9186_v20 }
 0x16a   : > { %8261 = vmatmul.mubr.msk.f32.gmra.mrb[4].mxu0 %vm490_vm0, %v7212_v21 }
 0x16b   : > { %9189 = vmatpush3.bf16.msra.mxu0 %v9186_v20  ;;  %8263 = vmatprep.mubr.msk.f32.mxu0 %vm490_vm0, %v7213_v22 }
 0x16c   : > { %9191 = vmatprep.subr.bf16.mxu0 %v9190_v23 }
 0x16e   : > { %8264 = vmatmul.mubr.msk.f32.gmra.mrb[6].mxu0 %vm490_vm0, %v7214_v24 }
 0x16f   : > { %9193 = vmatpush3.bf16.msra.mxu0 %v9190_v23  ;;  %8282 = vmatprep.mubr.msk.f32.mxu0 %vm490_vm0, %v7223_v25 }
 0x172   : > { %8283 = vmatmul.mubr.msk.f32.vlgmr.msra.gmra.mrb[0].mxu0 %vm490_vm0, %v7224_v26 }
 0x173   : > { %8285 = vmatprep.mubr.msk.f32.mxu0 %vm490_vm0, %v7225_v27  ;;  %v2076_v27 = vld [vmem:[#allocation4 + $0x40] sm:$0xff] }
 0x174   : > { %8310 = vmatprep.mubr.msk.f32.mxu1 %vm490_vm0, %v2076_v27 }
 0x176   : > { %8286 = vmatmul.mubr.msk.f32.gmra.mrb[2].mxu0 %vm490_vm0, %v7226_v28 }
 0x177   : > { %8288 = vmatprep.mubr.msk.f32.mxu0 %vm490_vm0, %v7227_v29 }
 0x17a   : > { %8289 = vmatmul.mubr.msk.f32.gmra.mrb[4].mxu0 %vm490_vm0, %v7228_v30 }
 0x17b   : > { %8291 = vmatprep.mubr.msk.f32.mxu0 %vm490_vm0, %v7229_v31 }
 0x17e   : > { %8292 = vmatmul.mubr.msk.f32.gmra.mrb[6].mxu0 %vm490_vm0, %v7230_v32  ;;  %v2051_v32 = vld [vmem:[%s11966_s6] sm:$0xff] }
 0x245   : > { %v8284_v37 = vpop.f32.mrb[0].mxu0 }
 0x246   : > { %v1980_v39 = vadd.f32 %v8284_v37, %v1947_v35  ;;  %v1892_v40 = vpop.f32.mrb[1].mxu0  ;;  %v2055_v35 = vld [vmem:[%s11966_s6 + $0x20] sm:$0xff]  ;;  %v2057_v37 = vld [vmem:[%s11966_s6 + $0x30] sm:$0xff] }
 0x247   : > { %v1979_v42 = vadd.f32 %v1942_v34, %v1892_v40  ;;  %v2052_v34 = vld [vmem:[%s11966_s6 + $0x8] sm:$0xff] }
 0x248   : > { %v1988_v43 = vmax.f32 %v1980_v39, 0.0  ;;  %v2058_v39 = vld [vmem:[%s11966_s6 + $0x38] sm:$0xff] }
 0x249   : > { %v1987_v44 = vmax.f32 %v1979_v42, 0.0  ;;  %v8287_v45 = vpop.f32.mrb[2].mxu0 }
 0x24a   : > { %v2003_v46 = vmul.f32 %v7239_v41, %v1988_v43  ;;  %v1982_v47 = vadd.f32 %v8287_v45, %v1957_v36  ;;  %v1902_v48 = vpop.f32.mrb[3].mxu0  ;;  %v2054_v36 = vld [vmem:[%s11966_s6 + $0x18] sm:$0xff] }
 0x24b   : > { %v2002_v50 = vmul.f32 %v7239_v41, %v1987_v44  ;;  %v1981_v51 = vadd.f32 %v1952_v38, %v1902_v48  ;;  %v2056_v38 = vld [vmem:[%s11966_s6 + $0x28] sm:$0xff] }
 0x24c   : > { %v1990_v53 = vmax.f32 %v1982_v47, 0.0  ;;  %2020 = vrot.lane.b32.xlu0 %v2003_v46, %s10754_s15 }
 0x24d   : > { %v1989_v54 = vmax.f32 %v1981_v51, 0.0  ;;  %2018 = vrot.lane.b32.xlu1 %v2002_v50, %s10754_s15  ;;  %v8290_v55 = vpop.f32.mrb[4].mxu0 }
 0x24e   : > { %v2005_v56 = vmul.f32 %v7239_v41, %v1990_v53  ;;  %v1984_v57 = vadd.f32 %v8290_v55, %v1967_v49  ;;  %v1912_v58 = vpop.f32.mrb[5].mxu0 }
 0x24f   : > { %v2004_v59 = vmul.f32 %v7239_v41, %v1989_v54  ;;  %v1983_v60 = vadd.f32 %v1962_v52, %v1912_v58  ;;  %v2078_v58 = vld [vmem:[#allocation4 + $0x50] sm:$0xff] }
 0x250   : > { %v1992_v61 = vmax.f32 %v1984_v57, 0.0  ;;  %2024 = vrot.lane.b32.xlu0 %v2005_v56, %s10754_s15  ;;  %v2077_v57 = vld [vmem:[#allocation4 + $0x48] sm:$0xff] }
 0x251   : > { %v1991_v63 = vmax.f32 %v1983_v60, 0.0  ;;  %2022 = vrot.lane.b32.xlu1 %v2004_v59, %s10754_s15  ;;  %v8293_v0 = vpop.f32.mrb[6].mxu0  ;;  %v2079_v60 = vld [vmem:[#allocation4 + $0x58] sm:$0xff] }
 0x252   : > { %v2007_v2 = vmul.f32 %v7239_v41, %v1992_v61  ;;  %v1986_v3 = vadd.f32 %v8293_v0, %v1977_v62  ;;  %v1922_v4 = vpop.f32.mrb[7].mxu0  ;;  %v2080_v61 = vld [vmem:[#allocation4 + $0x60] sm:$0xff]  ;;  %v2081_v0 = vld [vmem:[#allocation4 + $0x68] sm:$0xff] }
 0x253   : > { %v2006_v5 = vmul.f32 %v7239_v41, %v1991_v63  ;;  %v1985_v6 = vadd.f32 %v1972_v1, %v1922_v4  ;;  %v2082_v1 = vld [vmem:[#allocation4 + $0x70] sm:$0xff] }
 0x254   : > { %v1994_v7 = vmax.f32 %v1986_v3, 0.0  ;;  %2028 = vrot.lane.b32.xlu0 %v2007_v2, %s10754_s15 }
 0x255   : > { %v1993_v8 = vmax.f32 %v1985_v6, 0.0  ;;  %2026 = vrot.lane.b32.xlu1 %v2006_v5, %s10754_s15  ;;  %v2083_v6 = vld [vmem:[#allocation4 + $0x78] sm:$0xff] }
 0x256   : > { %v2009_v9 = vmul.f32 %v7239_v41, %v1994_v7  ;;  %v2067_v7 = vld [vmem:[#allocation4] sm:$0xff] }
 0x257   : > { %v2008_v10 = vmul.f32 %v7239_v41, %v1993_v8 }
 0x258   : > { %2032 = vrot.lane.b32.xlu0 %v2009_v9, %s10754_s15 }
 0x259   : > { %2030 = vrot.lane.b32.xlu1 %v2008_v10, %s10754_s15 }
 0x2be   : > { %v2021_v11 = vpop.permute.xlu0 %2020 }
 0x2bf   : > { %2044 = vst.msk [vmem:[#allocation3 + $0x8] sm:$0xff] %vm2042_vm3, %v2021_v11  ;;  %v2019_v12 = vpop.permute.xlu1 %2018 }
 0x2c0   : > { %2043 = vst.msk [vmem:[#allocation3] sm:$0xff] %vm2042_vm3, %v2019_v12  ;;  %v2068_v12 = vld [vmem:[#allocation4 + $0x8] sm:$0xff] }
 0x2c2   : > { %v2025_v13 = vpop.permute.xlu0 %2024 }
 0x2c3   : > { %2046 = vst.msk [vmem:[#allocation3 + $0x18] sm:$0xff] %vm2042_vm3, %v2025_v13  ;;  %v2023_v14 = vpop.permute.xlu1 %2022  ;;  %v2069_v13 = vld [vmem:[#allocation4 + $0x10] sm:$0xff] }
 0x2c4   : > { %2045 = vst.msk [vmem:[#allocation3 + $0x10] sm:$0xff] %vm2042_vm3, %v2023_v14 }
 0x2c6   : > { %v2029_v15 = vpop.permute.xlu0 %2028  ;;  %v11363_v16 = vld [vmem:[#allocation3 + $0x8] sm:$0xff] }
 0x2c7   : > { %2048 = vst.msk [vmem:[#allocation3 + $0x28] sm:$0xff] %vm2042_vm3, %v2029_v15  ;;  %v2027_v17 = vpop.permute.xlu1 %2026  ;;  %v11366_v18 = vld [vmem:[#allocation3] sm:$0xff] }
 0x2c8   : > { %2047 = vst.msk [vmem:[#allocation3 + $0x20] sm:$0xff] %vm2042_vm3, %v2027_v17  ;;  %v10106_v19 = vpack.i.bf16 %v11363_v16, %v11366_v18  ;;  %v9210_v56 = vpack.c.bf16 %v11363_v16, %v11366_v18  ;;  %v2070_v18 = vld [vmem:[#allocation4 + $0x18] sm:$0xff] }
 0x2ca   : > { %v2033_v20 = vpop.permute.xlu0 %2032  ;;  %10107 = vrot.lane.b32.xlu1 %v10106_v19, %s10744_s27  ;;  %v11372_v21 = vld [vmem:[#allocation3 + $0x18] sm:$0xff] }
 0x2cb   : > { %2050 = vst.msk [vmem:[#allocation3 + $0x38] sm:$0xff] %vm2042_vm3, %v2033_v20  ;;  %v2031_v22 = vpop.permute.xlu1 %2030  ;;  %v11375_v23 = vld [vmem:[#allocation3 + $0x10] sm:$0xff] }
 0x2cc   : > { %2049 = vst.msk [vmem:[#allocation3 + $0x30] sm:$0xff] %vm2042_vm3, %v2031_v22  ;;  %v10111_v24 = vpack.i.bf16 %v11372_v21, %v11375_v23  ;;  %v9214_v59 = vpack.c.bf16 %v11372_v21, %v11375_v23 }
 0x2ce   : > { %10112 = vrot.lane.b32.xlu0 %v10111_v24, %s10744_s27  ;;  %v11381_v25 = vld [vmem:[#allocation3 + $0x28] sm:$0xff] }
 0x2cf   : > { %v11383_v26 = vld [vmem:[#allocation3 + $0x20] sm:$0xff] }
 0x2d0   : > { %v10116_v28 = vpack.i.bf16 %v11381_v25, %v11383_v26  ;;  %v9218_v62 = vpack.c.bf16 %v11381_v25, %v11383_v26  ;;  %v2073_v25 = vld [vmem:[#allocation4 + $0x30] sm:$0xff] }
 0x2d2   : > { %10117 = vrot.lane.b32.xlu1 %v10116_v28, %s10744_s27  ;;  %v11389_v29 = vld [vmem:[#allocation3 + $0x38] sm:$0xff] }
 0x2d3   : > { %v11391_v30 = vld [vmem:[#allocation3 + $0x30] sm:$0xff] }
 0x2d4   : > { %v10121_v31 = vpack.i.bf16 %v11389_v29, %v11391_v30  ;;  %v9222_v4 = vpack.c.bf16 %v11389_v29, %v11391_v30  ;;  %v2074_v30 = vld [vmem:[#allocation4 + $0x38] sm:$0xff] }
 0x2d6   : > { %10127 = vrot.lane.b32.xlu1 %v10106_v19, %s10745_s20  ;;  %10122 = vrot.lane.b32.xlu0 %v10121_v31, %s10744_s27 }
 0x2da   : > { %10137 = vrot.lane.b32.xlu1 %v10116_v28, %s10745_s20  ;;  %10132 = vrot.lane.b32.xlu0 %v10111_v24, %s10745_s20 }
 0x2de   : > { %10147 = vrot.lane.b32.xlu1 %v10106_v19, %s10746_s22  ;;  %10142 = vrot.lane.b32.xlu0 %v10121_v31, %s10745_s20 }
 0x2e2   : > { %10157 = vrot.lane.b32.xlu1 %v10116_v28, %s10746_s22  ;;  %10152 = vrot.lane.b32.xlu0 %v10111_v24, %s10746_s22 }
 0x2e6   : > { %10167 = vrot.lane.b32.xlu1 %v10106_v19, %s10747_s23  ;;  %10162 = vrot.lane.b32.xlu0 %v10121_v31, %s10746_s22 }
 0x2ea   : > { %10177 = vrot.lane.b32.xlu1 %v10116_v28, %s10747_s23  ;;  %10172 = vrot.lane.b32.xlu0 %v10111_v24, %s10747_s23 }
 0x2ee   : > { %10187 = vrot.lane.b32.xlu1 %v10106_v19, %s10748_s24  ;;  %10182 = vrot.lane.b32.xlu0 %v10121_v31, %s10747_s23 }
 0x2f2   : > { %10197 = vrot.lane.b32.xlu1 %v10116_v28, %s10748_s24  ;;  %10192 = vrot.lane.b32.xlu0 %v10111_v24, %s10748_s24 }
 0x2f6   : > { %10207 = vrot.lane.b32.xlu1 %v10106_v19, %s10749_s25  ;;  %10202 = vrot.lane.b32.xlu0 %v10121_v31, %s10748_s24 }
 0x2fa   : > { %10217 = vrot.lane.b32.xlu1 %v10116_v28, %s10749_s25  ;;  %10212 = vrot.lane.b32.xlu0 %v10111_v24, %s10749_s25 }
 0x2fe   : > { %10227 = vrot.lane.b32.xlu1 %v10106_v19, %s10750_s26  ;;  %10222 = vrot.lane.b32.xlu0 %v10121_v31, %s10749_s25 }
 0x302   : > { %10237 = vrot.lane.b32.xlu1 %v10116_v28, %s10750_s26  ;;  %10232 = vrot.lane.b32.xlu0 %v10111_v24, %s10750_s26 }
 0x306   : > { %10247 = vrot.lane.b32.xlu1 %v10106_v19, %s10751_s28  ;;  %10242 = vrot.lane.b32.xlu0 %v10121_v31, %s10750_s26  ;;  %v2071_v19 = vld [vmem:[#allocation4 + $0x20] sm:$0xff] }
 0x30a   : > { %10257 = vrot.lane.b32.xlu1 %v10116_v28, %s10751_s28  ;;  %10252 = vrot.lane.b32.xlu0 %v10111_v24, %s10751_s28  ;;  %v2072_v24 = vld [vmem:[#allocation4 + $0x28] sm:$0xff] }
 0x30e   : > { %3566 = vperm.xlu1 %10105, %v2051_v32   ;;  %10262 = vrot.lane.b32.xlu0 %v10121_v31, %s10751_s28  ;;  %v2375_v31 = vld [vmem:[#allocation4 + $0x80] sm:$0xff] }
 0x312   : > { %3576 = vperm.xlu1 %10105, %v2053_v33   ;;  %3571 = vperm.xlu0 %10104, %v2052_v34  }
 0x316   : > { %3586 = vperm.xlu1 %10105, %v2055_v35   ;;  %3581 = vperm.xlu0 %10104, %v2054_v36   ;;  %v2376_v36 = vld [vmem:[#allocation4 + $0x88] sm:$0xff] }
 0x31a   : > { %3596 = vperm.xlu1 %10105, %v2057_v37   ;;  %3591 = vperm.xlu0 %10104, %v2056_v38   ;;  %v2377_v37 = vld [vmem:[#allocation4 + $0x90] sm:$0xff] }
 0x31e   : > { %3601 = vperm.xlu0 %10104, %v2058_v39  }
 0x33c   : > { %v10108_v40 = vpop.permute.xlu1 %10107 }
 0x33d   : > { %v10110_v41 = vunpack.i.h.bf16 %v10108_v40  ;;  %v10109_v42 = vunpack.i.l.bf16 %v10108_v40 }
 0x33f   : > { %v9194_v43 = vpack.c.bf16 %v10110_v41, %v10109_v42  ;;  %v2378_v42 = vld [vmem:[#allocation4 + $0x98] sm:$0xff] }
 0x340   : > { %v10113_v44 = vpop.permute.xlu0 %10112 }
 0x341   : > { %v10115_v45 = vunpack.i.h.bf16 %v10113_v44  ;;  %v10114_v46 = vunpack.i.l.bf16 %v10113_v44  ;;  %9195 = vmatprep.subr.bf16.mxu1 %v9194_v43 }
 0x342   : > { %9197 = vmatpush3.bf16.msra.mxu1 %v9194_v43  ;;  %v2379_v43 = vld [vmem:[#allocation4 + $0xa0] sm:$0xff] }
 0x343   : > { %v9198_v47 = vpack.c.bf16 %v10115_v45, %v10114_v46 }
 0x344   : > { %v10118_v48 = vpop.permute.xlu1 %10117 }
 0x345   : > { %v10120_v49 = vunpack.i.h.bf16 %v10118_v48  ;;  %v10119_v50 = vunpack.i.l.bf16 %v10118_v48  ;;  %9199 = vmatprep.subr.bf16.mxu1 %v9198_v47  ;;  %v2380_v48 = vld [vmem:[#allocation4 + $0xa8] sm:$0xff] }
 0x346   : > { %9201 = vmatpush3.bf16.msra.mxu1 %v9198_v47 }
 0x347   : > { %v9202_v51 = vpack.c.bf16 %v10120_v49, %v10119_v50  ;;  %v2381_v49 = vld [vmem:[#allocation4 + $0xb0] sm:$0xff] }
 0x348   : > { %v10123_v52 = vpop.permute.xlu0 %10122  ;;  %v10128_v63 = vpop.permute.xlu1 %10127 }
 0x349   : > { %v10125_v53 = vunpack.i.h.bf16 %v10123_v52  ;;  %v10124_v54 = vunpack.i.l.bf16 %v10123_v52  ;;  %9203 = vmatprep.subr.bf16.mxu1 %v9202_v51  ;;  %v10130_v2 = vunpack.i.h.bf16 %v10128_v63  ;;  %v10129_v3 = vunpack.i.l.bf16 %v10128_v63 }
 0x34a   : > { %9205 = vmatpush3.bf16.msra.mxu1 %v9202_v51 }
 0x34b   : > { %v9206_v55 = vpack.c.bf16 %v10125_v53, %v10124_v54  ;;  %v9226_v10 = vpack.c.bf16 %v10130_v2, %v10129_v3  ;;  %v2382_v54 = vld [vmem:[#allocation4 + $0xb8] sm:$0xff]  ;;  %v2549_v3 = vld [vmem:[#allocation4 + $0xe0] sm:$0xff] }
 0x34c   : > { %v10133_v5 = vpop.permute.xlu0 %10132  ;;  %v10138_v11 = vpop.permute.xlu1 %10137  ;;  %v2548_v2 = vld [vmem:[#allocation4 + $0xd8] sm:$0xff] }
 0x34d   : > { %9207 = vmatprep.subr.bf16.mxu1 %v9206_v55  ;;  %v10135_v8 = vunpack.i.h.bf16 %v10133_v5  ;;  %v10134_v9 = vunpack.i.l.bf16 %v10133_v5  ;;  %v10140_v14 = vunpack.i.h.bf16 %v10138_v11  ;;  %v10139_v15 = vunpack.i.l.bf16 %v10138_v11 }
 0x34e   : > { %9209 = vmatpush3.bf16.msra.mxu1 %v9206_v55  ;;  %v2545_v55 = vld [vmem:[#allocation4 + $0xc0] sm:$0xff] }
 0x34f   : > { %9211 = vmatprep.subr.bf16.mxu1 %v9210_v56  ;;  %v9230_v16 = vpack.c.bf16 %v10135_v8, %v10134_v9  ;;  %v9234_v22 = vpack.c.bf16 %v10140_v14, %v10139_v15  ;;  %v2550_v8 = vld [vmem:[#allocation4 + $0xe8] sm:$0xff]  ;;  %v2551_v9 = vld [vmem:[#allocation4 + $0xf0] sm:$0xff]  ;;  %v2552_v14 = vld [vmem:[#allocation4 + $0xf8] sm:$0xff] }
 0x350   : > { %v10143_v17 = vpop.permute.xlu0 %10142  ;;  %v10148_v23 = vpop.permute.xlu1 %10147  ;;  %v2715_v15 = vld [vmem:[#allocation4 + $0x100] sm:$0xff] }
 0x351   : > { %8311 = vmatmul.mubr.msk.f32.vlgmr.msra.gmra.mrb[0].mxu1 %vm490_vm0, %v2077_v57  ;;  %v10145_v20 = vunpack.i.h.bf16 %v10143_v17  ;;  %v10144_v21 = vunpack.i.l.bf16 %v10143_v17  ;;  %v10150_v26 = vunpack.i.h.bf16 %v10148_v23  ;;  %v10149_v27 = vunpack.i.l.bf16 %v10148_v23 }
 0x352   : > { %9213 = vmatpush3.bf16.msra.mxu1 %v9210_v56  ;;  %8313 = vmatprep.mubr.msk.f32.mxu1 %vm490_vm0, %v2078_v58 }
 0x353   : > { %9215 = vmatprep.subr.bf16.mxu1 %v9214_v59  ;;  %v9238_v28 = vpack.c.bf16 %v10145_v20, %v10144_v21  ;;  %v9242_v34 = vpack.c.bf16 %v10150_v26, %v10149_v27  ;;  %v2716_v20 = vld [vmem:[#allocation4 + $0x108] sm:$0xff]  ;;  %v2717_v21 = vld [vmem:[#allocation4 + $0x110] sm:$0xff]  ;;  %v2718_v26 = vld [vmem:[#allocation4 + $0x118] sm:$0xff] }
 0x354   : > { %v10153_v29 = vpop.permute.xlu0 %10152  ;;  %v10158_v35 = vpop.permute.xlu1 %10157  ;;  %v2719_v27 = vld [vmem:[#allocation4 + $0x120] sm:$0xff] }
 0x355   : > { %8314 = vmatmul.mubr.msk.f32.gmra.mrb[2].mxu1 %vm490_vm0, %v2079_v60  ;;  %v10155_v32 = vunpack.i.h.bf16 %v10153_v29  ;;  %v10154_v33 = vunpack.i.l.bf16 %v10153_v29  ;;  %v10160_v38 = vunpack.i.h.bf16 %v10158_v35  ;;  %v10159_v39 = vunpack.i.l.bf16 %v10158_v35  ;;  %v2546_v60 = vld [vmem:[#allocation4 + $0xc8] sm:$0xff] }
 0x356   : > { %9217 = vmatpush3.bf16.msra.mxu1 %v9214_v59  ;;  %8316 = vmatprep.mubr.msk.f32.mxu1 %vm490_vm0, %v2080_v61  ;;  %v2547_v61 = vld [vmem:[#allocation4 + $0xd0] sm:$0xff] }
 0x357   : > { %9219 = vmatprep.subr.bf16.mxu1 %v9218_v62  ;;  %v9246_v40 = vpack.c.bf16 %v10155_v32, %v10154_v33  ;;  %v9250_v46 = vpack.c.bf16 %v10160_v38, %v10159_v39  ;;  %v2720_v32 = vld [vmem:[#allocation4 + $0x128] sm:$0xff]  ;;  %v2721_v33 = vld [vmem:[#allocation4 + $0x130] sm:$0xff]  ;;  %v2722_v38 = vld [vmem:[#allocation4 + $0x138] sm:$0xff] }
 0x358   : > { %v10163_v41 = vpop.permute.xlu0 %10162  ;;  %v10168_v47 = vpop.permute.xlu1 %10167  ;;  %v2885_v39 = vld [vmem:[#allocation4 + $0x140] sm:$0xff] }
 0x359   : > { %8317 = vmatmul.mubr.msk.f32.gmra.mrb[4].mxu1 %vm490_vm0, %v2081_v0  ;;  %v10165_v44 = vunpack.i.h.bf16 %v10163_v41  ;;  %v10164_v45 = vunpack.i.l.bf16 %v10163_v41  ;;  %v10170_v50 = vunpack.i.h.bf16 %v10168_v47  ;;  %v10169_v51 = vunpack.i.l.bf16 %v10168_v47 }
 0x35a   : > { %9221 = vmatpush3.bf16.msra.mxu1 %v9218_v62  ;;  %8319 = vmatprep.mubr.msk.f32.mxu1 %vm490_vm0, %v2082_v1 }
 0x35b   : > { %9223 = vmatprep.subr.bf16.mxu1 %v9222_v4  ;;  %v9254_v52 = vpack.c.bf16 %v10165_v44, %v10164_v45  ;;  %v9258_v58 = vpack.c.bf16 %v10170_v50, %v10169_v51  ;;  %v2886_v44 = vld [vmem:[#allocation4 + $0x148] sm:$0xff]  ;;  %v2887_v45 = vld [vmem:[#allocation4 + $0x150] sm:$0xff]  ;;  %v2888_v50 = vld [vmem:[#allocation4 + $0x158] sm:$0xff] }
 0x35c   : > { %v10173_v53 = vpop.permute.xlu0 %10172  ;;  %v10178_v59 = vpop.permute.xlu1 %10177  ;;  %v2889_v51 = vld [vmem:[#allocation4 + $0x160] sm:$0xff] }
 0x35d   : > { %8320 = vmatmul.mubr.msk.f32.gmra.mrb[6].mxu1 %vm490_vm0, %v2083_v6  ;;  %v10175_v56 = vunpack.i.h.bf16 %v10173_v53  ;;  %v10174_v57 = vunpack.i.l.bf16 %v10173_v53  ;;  %v10180_v62 = vunpack.i.h.bf16 %v10178_v59  ;;  %v10179_v63 = vunpack.i.l.bf16 %v10178_v59 }
 0x35e   : > { %9225 = vmatpush3.bf16.msra.mxu1 %v9222_v4  ;;  %8338 = vmatprep.mubr.msk.f32.mxu1 %vm490_vm0, %v2067_v7 }
 0x35f   : > { %9227 = vmatprep.subr.bf16.mxu1 %v9226_v10  ;;  %v9262_v0 = vpack.c.bf16 %v10175_v56, %v10174_v57  ;;  %v9266_v6 = vpack.c.bf16 %v10180_v62, %v10179_v63  ;;  %v2890_v56 = vld [vmem:[#allocation4 + $0x168] sm:$0xff]  ;;  %v2891_v57 = vld [vmem:[#allocation4 + $0x170] sm:$0xff]  ;;  %v2892_v62 = vld [vmem:[#allocation4 + $0x178] sm:$0xff] }
 0x360   : > { %v10183_v1 = vpop.permute.xlu0 %10182  ;;  %v10188_v7 = vpop.permute.xlu1 %10187  ;;  %v3055_v63 = vld [vmem:[#allocation4 + $0x180] sm:$0xff] }
 0x361   : > { %8339 = vmatmul.mubr.msk.f32.vlgmr.msra.gmra.mrb[0].mxu1 %vm490_vm0, %v2068_v12  ;;  %v10185_v4 = vunpack.i.h.bf16 %v10183_v1  ;;  %v10184_v5 = vunpack.i.l.bf16 %v10183_v1  ;;  %v10189_v11 = vunpack.i.l.bf16 %v10188_v7 }
 0x362   : > { %9229 = vmatpush3.bf16.msra.mxu1 %v9226_v10  ;;  %8341 = vmatprep.mubr.msk.f32.mxu1 %vm490_vm0, %v2069_v13  ;;  %v10190_v10 = vunpack.i.h.bf16 %v10188_v7 }
 0x363   : > { %9231 = vmatprep.subr.bf16.mxu1 %v9230_v16  ;;  %v9270_v12 = vpack.c.bf16 %v10185_v4, %v10184_v5  ;;  %v3056_v4 = vld [vmem:[#allocation4 + $0x188] sm:$0xff]  ;;  %v3057_v5 = vld [vmem:[#allocation4 + $0x190] sm:$0xff] }
 0x364   : > { %v10193_v13 = vpop.permute.xlu0 %10192 }
 0x365   : > { %8342 = vmatmul.mubr.msk.f32.gmra.mrb[2].mxu1 %vm490_vm0, %v2070_v18  ;;  %v10194_v17 = vunpack.i.l.bf16 %v10193_v13  ;;  %v9274_v18 = vpack.c.bf16 %v10190_v10, %v10189_v11  ;;  %v3058_v10 = vld [vmem:[#allocation4 + $0x198] sm:$0xff]  ;;  %v3059_v11 = vld [vmem:[#allocation4 + $0x1a0] sm:$0xff] }
 0x366   : > { %9233 = vmatpush3.bf16.msra.mxu1 %v9230_v16  ;;  %8344 = vmatprep.mubr.msk.f32.mxu1 %vm490_vm0, %v2071_v19  ;;  %v10195_v16 = vunpack.i.h.bf16 %v10193_v13  ;;  %v10198_v19 = vpop.permute.xlu1 %10197 }
 0x367   : > { %9235 = vmatprep.subr.bf16.mxu1 %v9234_v22  ;;  %v10199_v23 = vunpack.i.l.bf16 %v10198_v19 }
 0x369   : > { %8345 = vmatmul.mubr.msk.f32.gmra.mrb[4].mxu1 %vm490_vm0, %v2072_v24  ;;  %v9278_v24 = vpack.c.bf16 %v10195_v16, %v10194_v17  ;;  %v3060_v16 = vld [vmem:[#allocation4 + $0x1a8] sm:$0xff]  ;;  %v3061_v17 = vld [vmem:[#allocation4 + $0x1b0] sm:$0xff] }
 0x36a   : > { %9237 = vmatpush3.bf16.msra.mxu1 %v9234_v22  ;;  %8347 = vmatprep.mubr.msk.f32.mxu1 %vm490_vm0, %v2073_v25  ;;  %v10200_v22 = vunpack.i.h.bf16 %v10198_v19  ;;  %v10203_v25 = vpop.permute.xlu0 %10202 }
 0x36b   : > { %9239 = vmatprep.subr.bf16.mxu1 %v9238_v28  ;;  %v10204_v29 = vunpack.i.l.bf16 %v10203_v25 }
 0x36d   : > { %8348 = vmatmul.mubr.msk.f32.gmra.mrb[6].mxu1 %vm490_vm0, %v2074_v30  ;;  %v9282_v30 = vpack.c.bf16 %v10200_v22, %v10199_v23  ;;  %v3062_v22 = vld [vmem:[#allocation4 + $0x1b8] sm:$0xff]  ;;  %v3225_v23 = vld [vmem:[#allocation4 + $0x1c0] sm:$0xff] }
 0x36e   : > { %9241 = vmatpush3.bf16.msra.mxu1 %v9238_v28  ;;  %8366 = vmatprep.mubr.msk.f32.mxu1 %vm490_vm0, %v2375_v31  ;;  %v10205_v28 = vunpack.i.h.bf16 %v10203_v25  ;;  %v10208_v31 = vpop.permute.xlu1 %10207 }
 0x36f   : > { %9243 = vmatprep.subr.bf16.mxu1 %v9242_v34  ;;  %v10209_v35 = vunpack.i.l.bf16 %v10208_v31 }
 0x371   : > { %8367 = vmatmul.mubr.msk.f32.vlgmr.msra.gmra.mrb[0].mxu1 %vm490_vm0, %v2376_v36  ;;  %v9286_v36 = vpack.c.bf16 %v10205_v28, %v10204_v29  ;;  %v3226_v28 = vld [vmem:[#allocation4 + $0x1c8] sm:$0xff]  ;;  %v3227_v29 = vld [vmem:[#allocation4 + $0x1d0] sm:$0xff] }
 0x372   : > { %9245 = vmatpush3.bf16.msra.mxu1 %v9242_v34  ;;  %8369 = vmatprep.mubr.msk.f32.mxu1 %vm490_vm0, %v2377_v37  ;;  %v10210_v34 = vunpack.i.h.bf16 %v10208_v31  ;;  %v10213_v37 = vpop.permute.xlu0 %10212 }
 0x373   : > { %9247 = vmatprep.subr.bf16.mxu1 %v9246_v40  ;;  %v10214_v41 = vunpack.i.l.bf16 %v10213_v37 }
 0x375   : > { %8370 = vmatmul.mubr.msk.f32.gmra.mrb[2].mxu1 %vm490_vm0, %v2378_v42  ;;  %v9290_v42 = vpack.c.bf16 %v10210_v34, %v10209_v35  ;;  %v3228_v34 = vld [vmem:[#allocation4 + $0x1d8] sm:$0xff]  ;;  %v3229_v35 = vld [vmem:[#allocation4 + $0x1e0] sm:$0xff] }
 0x376   : > { %9249 = vmatpush3.bf16.msra.mxu1 %v9246_v40  ;;  %8372 = vmatprep.mubr.msk.f32.mxu1 %vm490_vm0, %v2379_v43  ;;  %v10215_v40 = vunpack.i.h.bf16 %v10213_v37  ;;  %v10218_v43 = vpop.permute.xlu1 %10217 }
 0x377   : > { %9251 = vmatprep.subr.bf16.mxu1 %v9250_v46  ;;  %v10219_v47 = vunpack.i.l.bf16 %v10218_v43 }
 0x379   : > { %8373 = vmatmul.mubr.msk.f32.gmra.mrb[4].mxu1 %vm490_vm0, %v2380_v48  ;;  %v9294_v48 = vpack.c.bf16 %v10215_v40, %v10214_v41  ;;  %v3231_v40 = vld [vmem:[#allocation4 + $0x1f0] sm:$0xff] }
 0x37a   : > { %9253 = vmatpush3.bf16.msra.mxu1 %v9250_v46  ;;  %8375 = vmatprep.mubr.msk.f32.mxu1 %vm490_vm0, %v2381_v49  ;;  %v10220_v46 = vunpack.i.h.bf16 %v10218_v43  ;;  %v10223_v49 = vpop.permute.xlu0 %10222  ;;  %v3395_v43 = vld [vmem:[#allocation4 + $0x200] sm:$0xff] }
 0x37b   : > { %9255 = vmatprep.subr.bf16.mxu1 %v9254_v52  ;;  %v10224_v53 = vunpack.i.l.bf16 %v10223_v49 }
 0x37d   : > { %8376 = vmatmul.mubr.msk.f32.gmra.mrb[6].mxu1 %vm490_vm0, %v2382_v54  ;;  %v9298_v54 = vpack.c.bf16 %v10220_v46, %v10219_v47  ;;  %v3398_v46 = vld [vmem:[#allocation4 + $0x218] sm:$0xff]  ;;  %v3399_v47 = vld [vmem:[#allocation4 + $0x220] sm:$0xff] }
 0x37e   : > { %9257 = vmatpush3.bf16.msra.mxu1 %v9254_v52  ;;  %8394 = vmatprep.mubr.msk.f32.mxu1 %vm490_vm0, %v2545_v55  ;;  %v10225_v52 = vunpack.i.h.bf16 %v10223_v49  ;;  %v10228_v55 = vpop.permute.xlu1 %10227  ;;  %v3401_v49 = vld [vmem:[#allocation4 + $0x230] sm:$0xff] }
 0x37f   : > { %9259 = vmatprep.subr.bf16.mxu1 %v9258_v58  ;;  %v10229_v59 = vunpack.i.l.bf16 %v10228_v55 }
 0x381   : > { %8395 = vmatmul.mubr.msk.f32.vlgmr.msra.gmra.mrb[0].mxu1 %vm490_vm0, %v2546_v60  ;;  %v9302_v60 = vpack.c.bf16 %v10225_v52, %v10224_v53 }
 0x382   : > { %9261 = vmatpush3.bf16.msra.mxu1 %v9258_v58  ;;  %8397 = vmatprep.mubr.msk.f32.mxu1 %vm490_vm0, %v2547_v61  ;;  %v10230_v58 = vunpack.i.h.bf16 %v10228_v55  ;;  %v10233_v61 = vpop.permute.xlu0 %10232 }
 0x383   : > { %9263 = vmatprep.subr.bf16.mxu1 %v9262_v0  ;;  %v10234_v1 = vunpack.i.l.bf16 %v10233_v61 }
 0x385   : > { %8398 = vmatmul.mubr.msk.f32.gmra.mrb[2].mxu1 %vm490_vm0, %v2548_v2  ;;  %v9306_v2 = vpack.c.bf16 %v10230_v58, %v10229_v59  ;;  %v11530_v58 = vld [vmem:[%s11967_s7] ss:$0 sm:$0xff] }
 0x386   : > { %9265 = vmatpush3.bf16.msra.mxu1 %v9262_v0  ;;  %8400 = vmatprep.mubr.msk.f32.mxu1 %vm490_vm0, %v2549_v3  ;;  %v10235_v0 = vunpack.i.h.bf16 %v10233_v61  ;;  %v10238_v3 = vpop.permute.xlu1 %10237 }
 0x387   : > { %9267 = vmatprep.subr.bf16.mxu1 %v9266_v6  ;;  %v10239_v7 = vunpack.i.l.bf16 %v10238_v3 }
 0x389   : > { %8401 = vmatmul.mubr.msk.f32.gmra.mrb[4].mxu1 %vm490_vm0, %v2550_v8  ;;  %v9310_v8 = vpack.c.bf16 %v10235_v0, %v10234_v1 }
 0x38a   : > { %9269 = vmatpush3.bf16.msra.mxu1 %v9266_v6  ;;  %8403 = vmatprep.mubr.msk.f32.mxu1 %vm490_vm0, %v2551_v9  ;;  %v10240_v6 = vunpack.i.h.bf16 %v10238_v3  ;;  %v10243_v9 = vpop.permute.xlu0 %10242 }
 0x38b   : > { %9271 = vmatprep.subr.bf16.mxu1 %v9270_v12  ;;  %v10244_v13 = vunpack.i.l.bf16 %v10243_v9 }
 0x38d   : > { %8404 = vmatmul.mubr.msk.f32.gmra.mrb[6].mxu1 %vm490_vm0, %v2552_v14  ;;  %v9314_v14 = vpack.c.bf16 %v10240_v6, %v10239_v7 }
 0x38e   : > { %9273 = vmatpush3.bf16.msra.mxu1 %v9270_v12  ;;  %8422 = vmatprep.mubr.msk.f32.mxu1 %vm490_vm0, %v2715_v15  ;;  %v10245_v12 = vunpack.i.h.bf16 %v10243_v9  ;;  %v10248_v15 = vpop.permute.xlu1 %10247 }
 0x38f   : > { %9275 = vmatprep.subr.bf16.mxu1 %v9274_v18  ;;  %v10249_v19 = vunpack.i.l.bf16 %v10248_v15 }
 0x391   : > { %8423 = vmatmul.mubr.msk.f32.vlgmr.msra.gmra.mrb[0].mxu1 %vm490_vm0, %v2716_v20  ;;  %v9318_v20 = vpack.c.bf16 %v10245_v12, %v10244_v13 }
 0x392   : > { %9277 = vmatpush3.bf16.msra.mxu1 %v9274_v18  ;;  %8425 = vmatprep.mubr.msk.f32.mxu1 %vm490_vm0, %v2717_v21  ;;  %v10250_v18 = vunpack.i.h.bf16 %v10248_v15  ;;  %v10253_v21 = vpop.permute.xlu0 %10252 }
 0x393   : > { %9279 = vmatprep.subr.bf16.mxu1 %v9278_v24  ;;  %v10254_v25 = vunpack.i.l.bf16 %v10253_v21 }
 0x395   : > { %8426 = vmatmul.mubr.msk.f32.gmra.mrb[2].mxu1 %vm490_vm0, %v2718_v26  ;;  %v9322_v26 = vpack.c.bf16 %v10250_v18, %v10249_v19 }
 0x396   : > { %9281 = vmatpush3.bf16.msra.mxu1 %v9278_v24  ;;  %8428 = vmatprep.mubr.msk.f32.mxu1 %vm490_vm0, %v2719_v27  ;;  %v10255_v24 = vunpack.i.h.bf16 %v10253_v21  ;;  %v10258_v27 = vpop.permute.xlu1 %10257 }
 0x397   : > { %9283 = vmatprep.subr.bf16.mxu1 %v9282_v30  ;;  %v10259_v31 = vunpack.i.l.bf16 %v10258_v27 }
 0x399   : > { %8429 = vmatmul.mubr.msk.f32.gmra.mrb[4].mxu1 %vm490_vm0, %v2720_v32  ;;  %v9326_v32 = vpack.c.bf16 %v10255_v24, %v10254_v25 }
 0x39a   : > { %9285 = vmatpush3.bf16.msra.mxu1 %v9282_v30  ;;  %8431 = vmatprep.mubr.msk.f32.mxu1 %vm490_vm0, %v2721_v33  ;;  %v10260_v30 = vunpack.i.h.bf16 %v10258_v27  ;;  %v10263_v33 = vpop.permute.xlu0 %10262  ;;  %v3567_v52 = vpop.permute.xlu1 %3566 }
 0x39b   : > { %9287 = vmatprep.subr.bf16.mxu1 %v9286_v36  ;;  %v10265_v37 = vunpack.i.h.bf16 %v10263_v33 }
 0x39d   : > { %8432 = vmatmul.mubr.msk.f32.gmra.mrb[6].mxu1 %vm490_vm0, %v2722_v38  ;;  %v10264_v38 = vunpack.i.l.bf16 %v10263_v33 }
 0x39e   : > { %9289 = vmatpush3.bf16.msra.mxu1 %v9286_v36  ;;  %8450 = vmatprep.mubr.msk.f32.mxu1 %vm490_vm0, %v2885_v39  ;;  %v9330_v36 = vpack.c.bf16 %v10260_v30, %v10259_v31  ;;  %v3230_v39 = vld [vmem:[#allocation4 + $0x1e8] sm:$0xff]  ;;  %v3577_v55 = vpop.permute.xlu1 %3576 }
 0x39f   : > { %9291 = vmatprep.subr.bf16.mxu1 %v9290_v42  ;;  %v9334_v41 = vpack.c.bf16 %v10265_v37, %v10264_v38 }
 0x3a1   : > { %8451 = vmatmul.mubr.msk.f32.vlgmr.msra.gmra.mrb[0].mxu1 %vm490_vm0, %v2886_v44  ;;  %v3396_v44 = vld [vmem:[#allocation4 + $0x208] sm:$0xff] }
 0x3a2   : > { %9293 = vmatpush3.bf16.msra.mxu1 %v9290_v42  ;;  %8453 = vmatprep.mubr.msk.f32.mxu1 %vm490_vm0, %v2887_v45  ;;  %v3232_v42 = vld [vmem:[#allocation4 + $0x1f8] sm:$0xff]  ;;  %v3397_v45 = vld [vmem:[#allocation4 + $0x210] sm:$0xff] }
 0x3a3   : > { %9295 = vmatprep.subr.bf16.mxu1 %v9294_v48 }
 0x3a5   : > { %8454 = vmatmul.mubr.msk.f32.gmra.mrb[2].mxu1 %vm490_vm0, %v2888_v50  ;;  %v3402_v50 = vld [vmem:[#allocation4 + $0x238] sm:$0xff] }
 0x3a6   : > { %9297 = vmatpush3.bf16.msra.mxu1 %v9294_v48  ;;  %8456 = vmatprep.mubr.msk.f32.mxu1 %vm490_vm0, %v2889_v51  ;;  %v3400_v48 = vld [vmem:[#allocation4 + $0x228] sm:$0xff]  ;;  %v3572_v51 = vpop.permute.xlu0 %3571 }
 0x3a7   : > { %9299 = vmatprep.subr.bf16.mxu1 %v9298_v54 }
 0x3a9   : > { %8457 = vmatmul.mubr.msk.f32.gmra.mrb[4].mxu1 %vm490_vm0, %v2890_v56 }
 0x3aa   : > { %9301 = vmatpush3.bf16.msra.mxu1 %v9298_v54  ;;  %8459 = vmatprep.mubr.msk.f32.mxu1 %vm490_vm0, %v2891_v57  ;;  %v3582_v53 = vpop.permute.xlu0 %3581 }
 0x3ab   : > { %9303 = vmatprep.subr.bf16.mxu1 %v9302_v60 }
 0x3ad   : > { %8460 = vmatmul.mubr.msk.f32.gmra.mrb[6].mxu1 %vm490_vm0, %v2892_v62 }
 0x3ae   : > { %9305 = vmatpush3.bf16.msra.mxu1 %v9302_v60  ;;  %8478 = vmatprep.mubr.msk.f32.mxu1 %vm490_vm0, %v3055_v63 }
 0x3af   : > { %9307 = vmatprep.subr.bf16.mxu1 %v9306_v2 }
 0x3b1   : > { %8479 = vmatmul.mubr.msk.f32.vlgmr.msra.gmra.mrb[0].mxu1 %vm490_vm0, %v3056_v4 }
 0x3b2   : > { %9309 = vmatpush3.bf16.msra.mxu1 %v9306_v2  ;;  %8481 = vmatprep.mubr.msk.f32.mxu1 %vm490_vm0, %v3057_v5  ;;  %v3592_v2 = vpop.permute.xlu0 %3591  ;;  %v3587_v5 = vpop.permute.xlu1 %3586 }
 0x3b3   : > { %9311 = vmatprep.subr.bf16.mxu1 %v9310_v8 }
 0x3b5   : > { %8482 = vmatmul.mubr.msk.f32.gmra.mrb[2].mxu1 %vm490_vm0, %v3058_v10 }
 0x3b6   : > { %9313 = vmatpush3.bf16.msra.mxu1 %v9310_v8  ;;  %8484 = vmatprep.mubr.msk.f32.mxu1 %vm490_vm0, %v3059_v11  ;;  %v3602_v15 = vpop.permute.xlu0 %3601  ;;  %v3597_v18 = vpop.permute.xlu1 %3596 }
 0x3b7   : > { %9315 = vmatprep.subr.bf16.mxu1 %v9314_v14 }
 0x3b9   : > { %8485 = vmatmul.mubr.msk.f32.gmra.mrb[4].mxu1 %vm490_vm0, %v3060_v16 }
 0x3ba   : > { %9317 = vmatpush3.bf16.msra.mxu1 %v9314_v14  ;;  %8487 = vmatprep.mubr.msk.f32.mxu1 %vm490_vm0, %v3061_v17 }
 0x3bb   : > { %9319 = vmatprep.subr.bf16.mxu1 %v9318_v20 }
 0x3bd   : > { %8488 = vmatmul.mubr.msk.f32.gmra.mrb[6].mxu1 %vm490_vm0, %v3062_v22 }
 0x3be   : > { %9321 = vmatpush3.bf16.msra.mxu1 %v9318_v20  ;;  %8506 = vmatprep.mubr.msk.f32.mxu1 %vm490_vm0, %v3225_v23 }
 0x3bf   : > { %9323 = vmatprep.subr.bf16.mxu1 %v9322_v26 }
 0x3c1   : > { %8507 = vmatmul.mubr.msk.f32.vlgmr.msra.gmra.mrb[0].mxu1 %vm490_vm0, %v3226_v28 }
 0x3c2   : > { %9325 = vmatpush3.bf16.msra.mxu1 %v9322_v26  ;;  %8509 = vmatprep.mubr.msk.f32.mxu1 %vm490_vm0, %v3227_v29 }
 0x3c3   : > { %9327 = vmatprep.subr.bf16.mxu1 %v9326_v32 }
 0x3c5   : > { %8510 = vmatmul.mubr.msk.f32.gmra.mrb[2].mxu1 %vm490_vm0, %v3228_v34 }
 0x3c6   : > { %9329 = vmatpush3.bf16.msra.mxu1 %v9326_v32  ;;  %8512 = vmatprep.mubr.msk.f32.mxu1 %vm490_vm0, %v3229_v35 }
 0x3c7   : > { %9331 = vmatprep.subr.bf16.mxu1 %v9330_v36 }
 0x3c9   : > { %8513 = vmatmul.mubr.msk.f32.gmra.mrb[4].mxu1 %vm490_vm0, %v3230_v39 }
 0x3ca   : > { %9333 = vmatpush3.bf16.msra.mxu1 %v9330_v36  ;;  %8515 = vmatprep.mubr.msk.f32.mxu1 %vm490_vm0, %v3231_v40 }
 0x3cb   : > { %9335 = vmatprep.subr.bf16.mxu1 %v9334_v41 }
 0x3cd   : > { %8516 = vmatmul.mubr.msk.f32.gmra.mrb[6].mxu1 %vm490_vm0, %v3232_v42 }
 0x3ce   : > { %9337 = vmatpush3.bf16.msra.mxu1 %v9334_v41  ;;  %8534 = vmatprep.mubr.msk.f32.mxu1 %vm490_vm0, %v3395_v43 }
 0x3d1   : > { %8535 = vmatmul.mubr.msk.f32.vlgmr.msra.gmra.mrb[0].mxu1 %vm490_vm0, %v3396_v44  ;;  %v3693_v44 = vld [vmem:[#allocation7 + $0x40] sm:$0xff] }
 0x3d2   : > { %8537 = vmatprep.mubr.msk.f32.mxu1 %vm490_vm0, %v3397_v45  ;;  %8562 = vmatprep.mubr.msk.f32.mxu0 %vm490_vm0, %v3693_v44 }
 0x3d5   : > { %8538 = vmatmul.mubr.msk.f32.gmra.mrb[2].mxu1 %vm490_vm0, %v3398_v46 }
 0x3d6   : > { %8540 = vmatprep.mubr.msk.f32.mxu1 %vm490_vm0, %v3399_v47 }
 0x3d9   : > { %8541 = vmatmul.mubr.msk.f32.gmra.mrb[4].mxu1 %vm490_vm0, %v3400_v48 }
 0x3da   : > { %8543 = vmatprep.mubr.msk.f32.mxu1 %vm490_vm0, %v3401_v49 }
 0x3dd   : > { %8544 = vmatmul.mubr.msk.f32.gmra.mrb[6].mxu1 %vm490_vm0, %v3402_v50 }
 0x4a4   : > { %v8536_v54 = vpop.f32.mrb[0].mxu1 }
 0x4a5   : > { %v3605_v56 = vadd.f32 %v8536_v54, %v3572_v51  ;;  %v3517_v57 = vpop.f32.mrb[1].mxu1 }
 0x4a6   : > { %v3604_v59 = vadd.f32 %v3567_v52, %v3517_v57 }
 0x4a7   : > { %v3613_v60 = vmax.f32 %v3605_v56, 0.0 }
 0x4a8   : > { %v3612_v61 = vmax.f32 %v3604_v59, 0.0  ;;  %v8539_v62 = vpop.f32.mrb[2].mxu1 }
 0x4a9   : > { %v3628_v63 = vmul.f32 %v11530_v58, %v3613_v60  ;;  %v3607_v0 = vadd.f32 %v8539_v62, %v3582_v53  ;;  %v3527_v1 = vpop.f32.mrb[3].mxu1 }
 0x4aa   : > { %v3627_v3 = vmul.f32 %v11530_v58, %v3612_v61  ;;  %v3606_v4 = vadd.f32 %v3577_v55, %v3527_v1 }
 0x4ab   : > { %v3615_v6 = vmax.f32 %v3607_v0, 0.0  ;;  %3645 = vrot.lane.b32.xlu0 %v3628_v63, %s10754_s15 }
 0x4ac   : > { %v3614_v7 = vmax.f32 %v3606_v4, 0.0  ;;  %3643 = vrot.lane.b32.xlu1 %v3627_v3, %s10754_s15  ;;  %v8542_v8 = vpop.f32.mrb[4].mxu1  ;;  %v3694_v3 = vld [vmem:[#allocation7 + $0x48] sm:$0xff]  ;;  %v3695_v4 = vld [vmem:[#allocation7 + $0x50] sm:$0xff] }
 0x4ad   : > { %v3630_v9 = vmul.f32 %v11530_v58, %v3615_v6  ;;  %v3609_v10 = vadd.f32 %v8542_v8, %v3592_v2  ;;  %v3537_v11 = vpop.f32.mrb[5].mxu1  ;;  %v3696_v6 = vld [vmem:[#allocation7 + $0x58] sm:$0xff] }
 0x4ae   : > { %v3629_v12 = vmul.f32 %v11530_v58, %v3614_v7  ;;  %v3608_v13 = vadd.f32 %v3587_v5, %v3537_v11  ;;  %v3697_v7 = vld [vmem:[#allocation7 + $0x60] sm:$0xff]  ;;  %v3699_v11 = vld [vmem:[#allocation7 + $0x70] sm:$0xff] }
 0x4af   : > { %v3617_v14 = vmax.f32 %v3609_v10, 0.0  ;;  %3649 = vrot.lane.b32.xlu0 %v3630_v9, %s10754_s15  ;;  %v3698_v10 = vld [vmem:[#allocation7 + $0x68] sm:$0xff] }
 0x4b0   : > { %v3616_v16 = vmax.f32 %v3608_v13, 0.0  ;;  %3647 = vrot.lane.b32.xlu1 %v3629_v12, %s10754_s15  ;;  %v8545_v17 = vpop.f32.mrb[6].mxu1 }
 0x4b1   : > { %v3632_v19 = vmul.f32 %v11530_v58, %v3617_v14  ;;  %v3611_v20 = vadd.f32 %v8545_v17, %v3602_v15  ;;  %v3547_v21 = vpop.f32.mrb[7].mxu1  ;;  %v3684_v17 = vld [vmem:[#allocation7] sm:$0xff] }
 0x4b2   : > { %v3631_v22 = vmul.f32 %v11530_v58, %v3616_v16  ;;  %v3610_v23 = vadd.f32 %v3597_v18, %v3547_v21  ;;  %v3700_v16 = vld [vmem:[#allocation7 + $0x78] sm:$0xff] }
 0x4b3   : > { %v3619_v24 = vmax.f32 %v3611_v20, 0.0  ;;  %3653 = vrot.lane.b32.xlu0 %v3632_v19, %s10754_s15 }
 0x4b4   : > { %v3618_v25 = vmax.f32 %v3610_v23, 0.0  ;;  %3651 = vrot.lane.b32.xlu1 %v3631_v22, %s10754_s15  ;;  %v3685_v22 = vld [vmem:[#allocation7 + $0x8] sm:$0xff]  ;;  %v3686_v23 = vld [vmem:[#allocation7 + $0x10] sm:$0xff] }
 0x4b5   : > { %v3634_v26 = vmul.f32 %v11530_v58, %v3619_v24 }
 0x4b6   : > { %v3633_v27 = vmul.f32 %v11530_v58, %v3618_v25 }
 0x4b7   : > { %3657 = vrot.lane.b32.xlu0 %v3634_v26, %s10754_s15 }
 0x4b8   : > { %3655 = vrot.lane.b32.xlu1 %v3633_v27, %s10754_s15 }
 0x51d   : > { %v3646_v28 = vpop.permute.xlu0 %3645 }
 0x51e   : > { %3668 = vst.msk [vmem:[#allocation2 + $0x8] sm:$0xff] %vm2042_vm3, %v3646_v28  ;;  %v3644_v29 = vpop.permute.xlu1 %3643  ;;  %v3687_v28 = vld [vmem:[#allocation7 + $0x18] sm:$0xff] }
 0x51f   : > { %3667 = vst.msk [vmem:[#allocation2] sm:$0xff] %vm2042_vm3, %v3644_v29  ;;  %v3688_v29 = vld [vmem:[#allocation7 + $0x20] sm:$0xff] }
 0x521   : > { %v3650_v30 = vpop.permute.xlu0 %3649 }
 0x522   : > { %3670 = vst.msk [vmem:[#allocation2 + $0x18] sm:$0xff] %vm2042_vm3, %v3650_v30  ;;  %v3648_v31 = vpop.permute.xlu1 %3647 }
 0x523   : > { %3669 = vst.msk [vmem:[#allocation2 + $0x10] sm:$0xff] %vm2042_vm3, %v3648_v31 }
 0x525   : > { %v3654_v32 = vpop.permute.xlu0 %3653  ;;  %v11552_v33 = vld [vmem:[#allocation2 + $0x8] sm:$0xff] }
 0x526   : > { %3672 = vst.msk [vmem:[#allocation2 + $0x28] sm:$0xff] %vm2042_vm3, %v3654_v32  ;;  %v3652_v34 = vpop.permute.xlu1 %3651  ;;  %v11555_v35 = vld [vmem:[#allocation2] sm:$0xff] }
 0x527   : > { %3671 = vst.msk [vmem:[#allocation2 + $0x20] sm:$0xff] %vm2042_vm3, %v3652_v34  ;;  %v10266_v36 = vpack.i.bf16 %v11552_v33, %v11555_v35  ;;  %v9354_v2 = vpack.c.bf16 %v11552_v33, %v11555_v35  ;;  %v3689_v34 = vld [vmem:[#allocation7 + $0x28] sm:$0xff]  ;;  %v3690_v35 = vld [vmem:[#allocation7 + $0x30] sm:$0xff] }
 0x529   : > { %v3658_v37 = vpop.permute.xlu0 %3657  ;;  %10267 = vrot.lane.b32.xlu1 %v10266_v36, %s10744_s27  ;;  %v11561_v38 = vld [vmem:[#allocation2 + $0x18] sm:$0xff] }
 0x52a   : > { %3674 = vst.msk [vmem:[#allocation2 + $0x38] sm:$0xff] %vm2042_vm3, %v3658_v37  ;;  %v3656_v39 = vpop.permute.xlu1 %3655  ;;  %v11564_v40 = vld [vmem:[#allocation2 + $0x10] sm:$0xff] }
 0x52b   : > { %3673 = vst.msk [vmem:[#allocation2 + $0x30] sm:$0xff] %vm2042_vm3, %v3656_v39  ;;  %v10271_v41 = vpack.i.bf16 %v11561_v38, %v11564_v40  ;;  %v9358_v5 = vpack.c.bf16 %v11561_v38, %v11564_v40  ;;  %v3691_v40 = vld [vmem:[#allocation7 + $0x38] sm:$0xff] }
 0x52d   : > { %10272 = vrot.lane.b32.xlu0 %v10271_v41, %s10744_s27  ;;  %v11570_v42 = vld [vmem:[#allocation2 + $0x28] sm:$0xff] }
 0x52e   : > { %v11572_v43 = vld [vmem:[#allocation2 + $0x20] sm:$0xff] }
 0x52f   : > { %v10276_v45 = vpack.i.bf16 %v11570_v42, %v11572_v43  ;;  %v9362_v8 = vpack.c.bf16 %v11570_v42, %v11572_v43 }
 0x531   : > { %10277 = vrot.lane.b32.xlu1 %v10276_v45, %s10744_s27  ;;  %v11578_v46 = vld [vmem:[#allocation2 + $0x38] sm:$0xff] }
 0x532   : > { %v11580_v47 = vld [vmem:[#allocation2 + $0x30] sm:$0xff] }
 0x533   : > { %v10281_v48 = vpack.i.bf16 %v11578_v46, %v11580_v47  ;;  %v9366_v14 = vpack.c.bf16 %v11578_v46, %v11580_v47  ;;  %v3993_v46 = vld [vmem:[#allocation7 + $0x88] sm:$0xff]  ;;  %v3994_v47 = vld [vmem:[#allocation7 + $0x90] sm:$0xff] }
 0x535   : > { %10287 = vrot.lane.b32.xlu1 %v10266_v36, %s10745_s20  ;;  %10282 = vrot.lane.b32.xlu0 %v10281_v48, %s10744_s27 }
 0x539   : > { %10297 = vrot.lane.b32.xlu1 %v10276_v45, %s10745_s20  ;;  %10292 = vrot.lane.b32.xlu0 %v10271_v41, %s10745_s20 }
 0x53d   : > { %10307 = vrot.lane.b32.xlu1 %v10266_v36, %s10746_s22  ;;  %10302 = vrot.lane.b32.xlu0 %v10281_v48, %s10745_s20 }
 0x541   : > { %10317 = vrot.lane.b32.xlu1 %v10276_v45, %s10746_s22  ;;  %10312 = vrot.lane.b32.xlu0 %v10271_v41, %s10746_s22 }
 0x545   : > { %10327 = vrot.lane.b32.xlu1 %v10266_v36, %s10747_s23  ;;  %10322 = vrot.lane.b32.xlu0 %v10281_v48, %s10746_s22 }
 0x549   : > { %10337 = vrot.lane.b32.xlu1 %v10276_v45, %s10747_s23  ;;  %10332 = vrot.lane.b32.xlu0 %v10271_v41, %s10747_s23 }
 0x54d   : > { %10347 = vrot.lane.b32.xlu1 %v10266_v36, %s10748_s24  ;;  %10342 = vrot.lane.b32.xlu0 %v10281_v48, %s10747_s23 }
 0x551   : > { %10357 = vrot.lane.b32.xlu1 %v10276_v45, %s10748_s24  ;;  %10352 = vrot.lane.b32.xlu0 %v10271_v41, %s10748_s24 }
 0x555   : > { %10367 = vrot.lane.b32.xlu1 %v10266_v36, %s10749_s25  ;;  %10362 = vrot.lane.b32.xlu0 %v10281_v48, %s10748_s24 }
 0x559   : > { %10377 = vrot.lane.b32.xlu1 %v10276_v45, %s10749_s25  ;;  %10372 = vrot.lane.b32.xlu0 %v10271_v41, %s10749_s25 }
 0x55d   : > { %10387 = vrot.lane.b32.xlu1 %v10266_v36, %s10750_s26  ;;  %10382 = vrot.lane.b32.xlu0 %v10281_v48, %s10749_s25 }
 0x561   : > { %10397 = vrot.lane.b32.xlu1 %v10276_v45, %s10750_s26  ;;  %10392 = vrot.lane.b32.xlu0 %v10271_v41, %s10750_s26 }
 0x565   : > { %10407 = vrot.lane.b32.xlu1 %v10266_v36, %s10751_s28  ;;  %10402 = vrot.lane.b32.xlu0 %v10281_v48, %s10750_s26 }
 0x569   : > { %10417 = vrot.lane.b32.xlu1 %v10276_v45, %s10751_s28  ;;  %10412 = vrot.lane.b32.xlu0 %v10271_v41, %s10751_s28  ;;  %v3992_v41 = vld [vmem:[#allocation7 + $0x80] sm:$0xff] }
 0x56d   : > { %10422 = vrot.lane.b32.xlu0 %v10281_v48, %s10751_s28 }
 0x59b   : > { %v10268_v49 = vpop.permute.xlu1 %10267 }
 0x59c   : > { %v10270_v50 = vunpack.i.h.bf16 %v10268_v49  ;;  %v10269_v51 = vunpack.i.l.bf16 %v10268_v49 }
 0x59e   : > { %v9338_v52 = vpack.c.bf16 %v10270_v50, %v10269_v51 }
 0x59f   : > { %v10273_v53 = vpop.permute.xlu0 %10272 }
 0x5a0   : > { %v10275_v54 = vunpack.i.h.bf16 %v10273_v53  ;;  %v10274_v55 = vunpack.i.l.bf16 %v10273_v53  ;;  %9339 = vmatprep.subr.bf16.mxu0 %v9338_v52  ;;  %v3996_v53 = vld [vmem:[#allocation7 + $0xa0] sm:$0xff] }
 0x5a1   : > { %9341 = vmatpush3.bf16.msra.mxu0 %v9338_v52  ;;  %v3995_v52 = vld [vmem:[#allocation7 + $0x98] sm:$0xff] }
 0x5a2   : > { %v9342_v56 = vpack.c.bf16 %v10275_v54, %v10274_v55 }
 0x5a3   : > { %v10278_v57 = vpop.permute.xlu1 %10277 }
 0x5a4   : > { %v10280_v59 = vunpack.i.h.bf16 %v10278_v57  ;;  %v10279_v60 = vunpack.i.l.bf16 %v10278_v57  ;;  %9343 = vmatprep.subr.bf16.mxu0 %v9342_v56 }
 0x5a5   : > { %9345 = vmatpush3.bf16.msra.mxu0 %v9342_v56 }
 0x5a6   : > { %v9346_v61 = vpack.c.bf16 %v10280_v59, %v10279_v60  ;;  %v3997_v59 = vld [vmem:[#allocation7 + $0xa8] sm:$0xff]  ;;  %v3998_v60 = vld [vmem:[#allocation7 + $0xb0] sm:$0xff] }
 0x5a7   : > { %v10283_v62 = vpop.permute.xlu0 %10282  ;;  %v10288_v9 = vpop.permute.xlu1 %10287 }
 0x5a8   : > { %v10285_v63 = vunpack.i.h.bf16 %v10283_v62  ;;  %v10284_v0 = vunpack.i.l.bf16 %v10283_v62  ;;  %9347 = vmatprep.subr.bf16.mxu0 %v9346_v61  ;;  %v10290_v12 = vunpack.i.h.bf16 %v10288_v9  ;;  %v10289_v13 = vunpack.i.l.bf16 %v10288_v9 }
 0x5a9   : > { %9349 = vmatpush3.bf16.msra.mxu0 %v9346_v61 }
 0x5aa   : > { %v9350_v1 = vpack.c.bf16 %v10285_v63, %v10284_v0  ;;  %v9370_v18 = vpack.c.bf16 %v10290_v12, %v10289_v13  ;;  %v4165_v13 = vld [vmem:[#allocation7 + $0xd8] sm:$0xff] }
 0x5ab   : > { %v10293_v15 = vpop.permute.xlu0 %10292  ;;  %v10298_v21 = vpop.permute.xlu1 %10297 }
 0x5ac   : > { %9351 = vmatprep.subr.bf16.mxu0 %v9350_v1  ;;  %v10295_v19 = vunpack.i.h.bf16 %v10293_v15  ;;  %v10294_v20 = vunpack.i.l.bf16 %v10293_v15  ;;  %v10300_v25 = vunpack.i.h.bf16 %v10298_v21  ;;  %v10299_v26 = vunpack.i.l.bf16 %v10298_v21 }
 0x5ad   : > { %9353 = vmatpush3.bf16.msra.mxu0 %v9350_v1  ;;  %v3999_v1 = vld [vmem:[#allocation7 + $0xb8] sm:$0xff] }
 0x5ae   : > { %9355 = vmatprep.subr.bf16.mxu0 %v9354_v2  ;;  %v9374_v24 = vpack.c.bf16 %v10295_v19, %v10294_v20  ;;  %v9378_v30 = vpack.c.bf16 %v10300_v25, %v10299_v26  ;;  %v4167_v19 = vld [vmem:[#allocation7 + $0xe8] sm:$0xff]  ;;  %v4168_v20 = vld [vmem:[#allocation7 + $0xf0] sm:$0xff]  ;;  %v4169_v25 = vld [vmem:[#allocation7 + $0xf8] sm:$0xff] }
 0x5af   : > { %v10303_v27 = vpop.permute.xlu0 %10302  ;;  %v10308_v33 = vpop.permute.xlu1 %10307  ;;  %v4332_v26 = vld [vmem:[#allocation7 + $0x100] sm:$0xff] }
 0x5b0   : > { %8563 = vmatmul.mubr.msk.f32.vlgmr.msra.gmra.mrb[8].mxu0 %vm490_vm0, %v3694_v3  ;;  %v10305_v31 = vunpack.i.h.bf16 %v10303_v27  ;;  %v10304_v32 = vunpack.i.l.bf16 %v10303_v27  ;;  %v10310_v37 = vunpack.i.h.bf16 %v10308_v33  ;;  %v10309_v38 = vunpack.i.l.bf16 %v10308_v33 }
 0x5b1   : > { %9357 = vmatpush3.bf16.msra.mxu0 %v9354_v2  ;;  %8565 = vmatprep.mubr.msk.f32.mxu0 %vm490_vm0, %v3695_v4  ;;  %v4162_v2 = vld [vmem:[#allocation7 + $0xc0] sm:$0xff] }
 0x5b2   : > { %9359 = vmatprep.subr.bf16.mxu0 %v9358_v5  ;;  %v9382_v36 = vpack.c.bf16 %v10305_v31, %v10304_v32  ;;  %v9386_v42 = vpack.c.bf16 %v10310_v37, %v10309_v38  ;;  %v4333_v31 = vld [vmem:[#allocation7 + $0x108] sm:$0xff]  ;;  %v4334_v32 = vld [vmem:[#allocation7 + $0x110] sm:$0xff]  ;;  %v4335_v37 = vld [vmem:[#allocation7 + $0x118] sm:$0xff] }
 0x5b3   : > { %v10313_v39 = vpop.permute.xlu0 %10312  ;;  %v10318_v45 = vpop.permute.xlu1 %10317  ;;  %v4336_v38 = vld [vmem:[#allocation7 + $0x120] sm:$0xff] }
 0x5b4   : > { %8566 = vmatmul.mubr.msk.f32.gmra.mrb[10].mxu0 %vm490_vm0, %v3696_v6  ;;  %v10315_v43 = vunpack.i.h.bf16 %v10313_v39  ;;  %v10314_v44 = vunpack.i.l.bf16 %v10313_v39  ;;  %v10320_v49 = vunpack.i.h.bf16 %v10318_v45  ;;  %v10319_v50 = vunpack.i.l.bf16 %v10318_v45 }
 0x5b5   : > { %9361 = vmatpush3.bf16.msra.mxu0 %v9358_v5  ;;  %8568 = vmatprep.mubr.msk.f32.mxu0 %vm490_vm0, %v3697_v7  ;;  %v4163_v7 = vld [vmem:[#allocation7 + $0xc8] sm:$0xff] }
 0x5b6   : > { %9363 = vmatprep.subr.bf16.mxu0 %v9362_v8  ;;  %v9390_v48 = vpack.c.bf16 %v10315_v43, %v10314_v44  ;;  %v9394_v54 = vpack.c.bf16 %v10320_v49, %v10319_v50  ;;  %v4337_v43 = vld [vmem:[#allocation7 + $0x128] sm:$0xff]  ;;  %v4338_v44 = vld [vmem:[#allocation7 + $0x130] sm:$0xff]  ;;  %v4339_v49 = vld [vmem:[#allocation7 + $0x138] sm:$0xff] }
 0x5b7   : > { %v10323_v51 = vpop.permute.xlu0 %10322  ;;  %v10328_v57 = vpop.permute.xlu1 %10327  ;;  %v4502_v50 = vld [vmem:[#allocation7 + $0x140] sm:$0xff] }
 0x5b8   : > { %8569 = vmatmul.mubr.msk.f32.gmra.mrb[12].mxu0 %vm490_vm0, %v3698_v10  ;;  %v10325_v55 = vunpack.i.h.bf16 %v10323_v51  ;;  %v10324_v56 = vunpack.i.l.bf16 %v10323_v51  ;;  %v10330_v62 = vunpack.i.h.bf16 %v10328_v57  ;;  %v10329_v63 = vunpack.i.l.bf16 %v10328_v57 }
 0x5b9   : > { %9365 = vmatpush3.bf16.msra.mxu0 %v9362_v8  ;;  %8571 = vmatprep.mubr.msk.f32.mxu0 %vm490_vm0, %v3699_v11  ;;  %v4164_v8 = vld [vmem:[#allocation7 + $0xd0] sm:$0xff] }
 0x5ba   : > { %9367 = vmatprep.subr.bf16.mxu0 %v9366_v14  ;;  %v9398_v61 = vpack.c.bf16 %v10325_v55, %v10324_v56  ;;  %v9402_v3 = vpack.c.bf16 %v10330_v62, %v10329_v63  ;;  %v4503_v55 = vld [vmem:[#allocation7 + $0x148] sm:$0xff]  ;;  %v4504_v56 = vld [vmem:[#allocation7 + $0x150] sm:$0xff]  ;;  %v4505_v62 = vld [vmem:[#allocation7 + $0x158] sm:$0xff] }
 0x5bb   : > { %v10333_v0 = vpop.permute.xlu0 %10332  ;;  %v10338_v6 = vpop.permute.xlu1 %10337  ;;  %v4506_v63 = vld [vmem:[#allocation7 + $0x160] sm:$0xff] }
 0x5bc   : > { %8572 = vmatmul.mubr.msk.f32.gmra.mrb[14].mxu0 %vm490_vm0, %v3700_v16  ;;  %v10335_v4 = vunpack.i.h.bf16 %v10333_v0  ;;  %v10334_v5 = vunpack.i.l.bf16 %v10333_v0  ;;  %v10340_v10 = vunpack.i.h.bf16 %v10338_v6  ;;  %v10339_v11 = vunpack.i.l.bf16 %v10338_v6 }
 0x5bd   : > { %9369 = vmatpush3.bf16.msra.mxu0 %v9366_v14  ;;  %8590 = vmatprep.mubr.msk.f32.mxu0 %vm490_vm0, %v3684_v17  ;;  %v4166_v14 = vld [vmem:[#allocation7 + $0xe0] sm:$0xff] }
 0x5be   : > { %9371 = vmatprep.subr.bf16.mxu0 %v9370_v18  ;;  %v9406_v9 = vpack.c.bf16 %v10335_v4, %v10334_v5  ;;  %v9410_v15 = vpack.c.bf16 %v10340_v10, %v10339_v11  ;;  %v4507_v4 = vld [vmem:[#allocation7 + $0x168] sm:$0xff]  ;;  %v4508_v5 = vld [vmem:[#allocation7 + $0x170] sm:$0xff]  ;;  %v4509_v10 = vld [vmem:[#allocation7 + $0x178] sm:$0xff] }
 0x5bf   : > { %v10343_v12 = vpop.permute.xlu0 %10342  ;;  %v4672_v11 = vld [vmem:[#allocation7 + $0x180] sm:$0xff] }
 0x5c0   : > { %8591 = vmatmul.mubr.msk.f32.vlgmr.msra.gmra.mrb[8].mxu0 %vm490_vm0, %v3685_v22  ;;  %v10345_v16 = vunpack.i.h.bf16 %v10343_v12  ;;  %v10344_v17 = vunpack.i.l.bf16 %v10343_v12 }
 0x5c1   : > { %9373 = vmatpush3.bf16.msra.mxu0 %v9370_v18  ;;  %8593 = vmatprep.mubr.msk.f32.mxu0 %vm490_vm0, %v3686_v23  ;;  %v10348_v18 = vpop.permute.xlu1 %10347 }
 0x5c2   : > { %9375 = vmatprep.subr.bf16.mxu0 %v9374_v24  ;;  %v9414_v21 = vpack.c.bf16 %v10345_v16, %v10344_v17  ;;  %v10350_v22 = vunpack.i.h.bf16 %v10348_v18  ;;  %v10349_v23 = vunpack.i.l.bf16 %v10348_v18  ;;  %v4673_v16 = vld [vmem:[#allocation7 + $0x188] sm:$0xff]  ;;  %v4674_v17 = vld [vmem:[#allocation7 + $0x190] sm:$0xff] }
 0x5c4   : > { %8594 = vmatmul.mubr.msk.f32.gmra.mrb[10].mxu0 %vm490_vm0, %v3687_v28  ;;  %v9418_v27 = vpack.c.bf16 %v10350_v22, %v10349_v23  ;;  %v4675_v22 = vld [vmem:[#allocation7 + $0x198] sm:$0xff]  ;;  %v4676_v23 = vld [vmem:[#allocation7 + $0x1a0] sm:$0xff] }
 0x5c5   : > { %9377 = vmatpush3.bf16.msra.mxu0 %v9374_v24  ;;  %8596 = vmatprep.mubr.msk.f32.mxu0 %vm490_vm0, %v3688_v29  ;;  %v10353_v24 = vpop.permute.xlu0 %10352 }
 0x5c6   : > { %9379 = vmatprep.subr.bf16.mxu0 %v9378_v30  ;;  %v10355_v28 = vunpack.i.h.bf16 %v10353_v24  ;;  %v10354_v29 = vunpack.i.l.bf16 %v10353_v24 }
 0x5c8   : > { %8597 = vmatmul.mubr.msk.f32.gmra.mrb[12].mxu0 %vm490_vm0, %v3689_v34  ;;  %v9422_v33 = vpack.c.bf16 %v10355_v28, %v10354_v29  ;;  %v4677_v28 = vld [vmem:[#allocation7 + $0x1a8] sm:$0xff]  ;;  %v4678_v29 = vld [vmem:[#allocation7 + $0x1b0] sm:$0xff] }
 0x5c9   : > { %9381 = vmatpush3.bf16.msra.mxu0 %v9378_v30  ;;  %8599 = vmatprep.mubr.msk.f32.mxu0 %vm490_vm0, %v3690_v35  ;;  %v10358_v30 = vpop.permute.xlu1 %10357 }
 0x5ca   : > { %9383 = vmatprep.subr.bf16.mxu0 %v9382_v36  ;;  %v10360_v34 = vunpack.i.h.bf16 %v10358_v30  ;;  %v10359_v35 = vunpack.i.l.bf16 %v10358_v30 }
 0x5cc   : > { %8600 = vmatmul.mubr.msk.f32.gmra.mrb[14].mxu0 %vm490_vm0, %v3691_v40  ;;  %v9426_v39 = vpack.c.bf16 %v10360_v34, %v10359_v35  ;;  %v4679_v34 = vld [vmem:[#allocation7 + $0x1b8] sm:$0xff]  ;;  %v4842_v35 = vld [vmem:[#allocation7 + $0x1c0] sm:$0xff] }
 0x5cd   : > { %9385 = vmatpush3.bf16.msra.mxu0 %v9382_v36  ;;  %8618 = vmatprep.mubr.msk.f32.mxu0 %vm490_vm0, %v3992_v41  ;;  %v10363_v36 = vpop.permute.xlu0 %10362 }
 0x5ce   : > { %9387 = vmatprep.subr.bf16.mxu0 %v9386_v42  ;;  %v10365_v40 = vunpack.i.h.bf16 %v10363_v36  ;;  %v10364_v41 = vunpack.i.l.bf16 %v10363_v36 }
 0x5d0   : > { %8619 = vmatmul.mubr.msk.f32.vlgmr.msra.gmra.mrb[8].mxu0 %vm490_vm0, %v3993_v46  ;;  %v9430_v45 = vpack.c.bf16 %v10365_v40, %v10364_v41  ;;  %v4843_v40 = vld [vmem:[#allocation7 + $0x1c8] sm:$0xff]  ;;  %v4844_v41 = vld [vmem:[#allocation7 + $0x1d0] sm:$0xff] }
 0x5d1   : > { %9389 = vmatpush3.bf16.msra.mxu0 %v9386_v42  ;;  %8621 = vmatprep.mubr.msk.f32.mxu0 %vm490_vm0, %v3994_v47  ;;  %v10368_v42 = vpop.permute.xlu1 %10367 }
 0x5d2   : > { %9391 = vmatprep.subr.bf16.mxu0 %v9390_v48  ;;  %v10370_v46 = vunpack.i.h.bf16 %v10368_v42  ;;  %v10369_v47 = vunpack.i.l.bf16 %v10368_v42 }
 0x5d4   : > { %8622 = vmatmul.mubr.msk.f32.gmra.mrb[10].mxu0 %vm490_vm0, %v3995_v52  ;;  %v9434_v51 = vpack.c.bf16 %v10370_v46, %v10369_v47  ;;  %v4845_v46 = vld [vmem:[#allocation7 + $0x1d8] sm:$0xff]  ;;  %v4846_v47 = vld [vmem:[#allocation7 + $0x1e0] sm:$0xff] }
 0x5d5   : > { %9393 = vmatpush3.bf16.msra.mxu0 %v9390_v48  ;;  %8624 = vmatprep.mubr.msk.f32.mxu0 %vm490_vm0, %v3996_v53  ;;  %v10373_v48 = vpop.permute.xlu0 %10372 }
 0x5d6   : > { %9395 = vmatprep.subr.bf16.mxu0 %v9394_v54  ;;  %v10375_v52 = vunpack.i.h.bf16 %v10373_v48  ;;  %v10374_v53 = vunpack.i.l.bf16 %v10373_v48 }
 0x5d8   : > { %8625 = vmatmul.mubr.msk.f32.gmra.mrb[12].mxu0 %vm490_vm0, %v3997_v59  ;;  %v9438_v57 = vpack.c.bf16 %v10375_v52, %v10374_v53  ;;  %v4848_v52 = vld [vmem:[#allocation7 + $0x1f0] sm:$0xff] }
 0x5d9   : > { %9397 = vmatpush3.bf16.msra.mxu0 %v9394_v54  ;;  %8627 = vmatprep.mubr.msk.f32.mxu0 %vm490_vm0, %v3998_v60  ;;  %v10378_v54 = vpop.permute.xlu1 %10377 }
 0x5da   : > { %9399 = vmatprep.subr.bf16.mxu0 %v9398_v61  ;;  %v10380_v59 = vunpack.i.h.bf16 %v10378_v54  ;;  %v10379_v60 = vunpack.i.l.bf16 %v10378_v54  ;;  %v4849_v54 = vld [vmem:[#allocation7 + $0x1f8] sm:$0xff] }
 0x5dc   : > { %8628 = vmatmul.mubr.msk.f32.gmra.mrb[14].mxu0 %vm490_vm0, %v3999_v1  ;;  %v9442_v0 = vpack.c.bf16 %v10380_v59, %v10379_v60  ;;  %v5015_v59 = vld [vmem:[#allocation7 + $0x218] sm:$0xff]  ;;  %v5016_v60 = vld [vmem:[#allocation7 + $0x220] sm:$0xff] }
 0x5dd   : > { %9401 = vmatpush3.bf16.msra.mxu0 %v9398_v61  ;;  %8646 = vmatprep.mubr.msk.f32.mxu0 %vm490_vm0, %v4162_v2  ;;  %v10383_v61 = vpop.permute.xlu0 %10382 }
 0x5de   : > { %9403 = vmatprep.subr.bf16.mxu0 %v9402_v3  ;;  %v10385_v1 = vunpack.i.h.bf16 %v10383_v61  ;;  %v10384_v2 = vunpack.i.l.bf16 %v10383_v61  ;;  %v5017_v61 = vld [vmem:[#allocation7 + $0x228] sm:$0xff] }
 0x5e0   : > { %8647 = vmatmul.mubr.msk.f32.vlgmr.msra.gmra.mrb[8].mxu0 %vm490_vm0, %v4163_v7  ;;  %v9446_v6 = vpack.c.bf16 %v10385_v1, %v10384_v2 }
 0x5e1   : > { %9405 = vmatpush3.bf16.msra.mxu0 %v9402_v3  ;;  %8649 = vmatprep.mubr.msk.f32.mxu0 %vm490_vm0, %v4164_v8  ;;  %v10388_v3 = vpop.permute.xlu1 %10387 }
 0x5e2   : > { %9407 = vmatprep.subr.bf16.mxu0 %v9406_v9  ;;  %v10390_v7 = vunpack.i.h.bf16 %v10388_v3  ;;  %v10389_v8 = vunpack.i.l.bf16 %v10388_v3 }
 0x5e4   : > { %8650 = vmatmul.mubr.msk.f32.gmra.mrb[10].mxu0 %vm490_vm0, %v4165_v13  ;;  %v9450_v12 = vpack.c.bf16 %v10390_v7, %v10389_v8 }
 0x5e5   : > { %9409 = vmatpush3.bf16.msra.mxu0 %v9406_v9  ;;  %8652 = vmatprep.mubr.msk.f32.mxu0 %vm490_vm0, %v4166_v14  ;;  %v10393_v9 = vpop.permute.xlu0 %10392 }
 0x5e6   : > { %9411 = vmatprep.subr.bf16.mxu0 %v9410_v15  ;;  %v10395_v13 = vunpack.i.h.bf16 %v10393_v9  ;;  %v10394_v14 = vunpack.i.l.bf16 %v10393_v9 }
 0x5e8   : > { %8653 = vmatmul.mubr.msk.f32.gmra.mrb[12].mxu0 %vm490_vm0, %v4167_v19  ;;  %v9454_v18 = vpack.c.bf16 %v10395_v13, %v10394_v14 }
 0x5e9   : > { %9413 = vmatpush3.bf16.msra.mxu0 %v9410_v15  ;;  %8655 = vmatprep.mubr.msk.f32.mxu0 %vm490_vm0, %v4168_v20  ;;  %v10398_v15 = vpop.permute.xlu1 %10397 }
 0x5ea   : > { %9415 = vmatprep.subr.bf16.mxu0 %v9414_v21  ;;  %v10400_v19 = vunpack.i.h.bf16 %v10398_v15  ;;  %v10399_v20 = vunpack.i.l.bf16 %v10398_v15 }
 0x5ec   : > { %8656 = vmatmul.mubr.msk.f32.gmra.mrb[14].mxu0 %vm490_vm0, %v4169_v25  ;;  %v9458_v24 = vpack.c.bf16 %v10400_v19, %v10399_v20 }
 0x5ed   : > { %9417 = vmatpush3.bf16.msra.mxu0 %v9414_v21  ;;  %8674 = vmatprep.mubr.msk.f32.mxu0 %vm490_vm0, %v4332_v26  ;;  %v10403_v21 = vpop.permute.xlu0 %10402 }
 0x5ee   : > { %9419 = vmatprep.subr.bf16.mxu0 %v9418_v27  ;;  %v10405_v25 = vunpack.i.h.bf16 %v10403_v21  ;;  %v10404_v26 = vunpack.i.l.bf16 %v10403_v21 }
 0x5f0   : > { %8675 = vmatmul.mubr.msk.f32.vlgmr.msra.gmra.mrb[8].mxu0 %vm490_vm0, %v4333_v31  ;;  %v9462_v30 = vpack.c.bf16 %v10405_v25, %v10404_v26 }
 0x5f1   : > { %9421 = vmatpush3.bf16.msra.mxu0 %v9418_v27  ;;  %8677 = vmatprep.mubr.msk.f32.mxu0 %vm490_vm0, %v4334_v32  ;;  %v10408_v27 = vpop.permute.xlu1 %10407 }
 0x5f2   : > { %9423 = vmatprep.subr.bf16.mxu0 %v9422_v33  ;;  %v10410_v31 = vunpack.i.h.bf16 %v10408_v27  ;;  %v10409_v32 = vunpack.i.l.bf16 %v10408_v27 }
 0x5f4   : > { %8678 = vmatmul.mubr.msk.f32.gmra.mrb[10].mxu0 %vm490_vm0, %v4335_v37  ;;  %v9466_v36 = vpack.c.bf16 %v10410_v31, %v10409_v32  ;;  %v10618_v31 = vld [vmem:[%s11967_s7] ss:$0 sm:$0xff] }
 0x5f5   : > { %9425 = vmatpush3.bf16.msra.mxu0 %v9422_v33  ;;  %8680 = vmatprep.mubr.msk.f32.mxu0 %vm490_vm0, %v4336_v38  ;;  %v10413_v33 = vpop.permute.xlu0 %10412 }
 0x5f6   : > { %9427 = vmatprep.subr.bf16.mxu0 %v9426_v39  ;;  %v10415_v37 = vunpack.i.h.bf16 %v10413_v33  ;;  %v10414_v38 = vunpack.i.l.bf16 %v10413_v33 }
 0x5f8   : > { %8681 = vmatmul.mubr.msk.f32.gmra.mrb[12].mxu0 %vm490_vm0, %v4337_v43  ;;  %v9470_v42 = vpack.c.bf16 %v10415_v37, %v10414_v38 }
 0x5f9   : > { %9429 = vmatpush3.bf16.msra.mxu0 %v9426_v39  ;;  %8683 = vmatprep.mubr.msk.f32.mxu0 %vm490_vm0, %v4338_v44  ;;  %v10418_v39 = vpop.permute.xlu1 %10417 }
 0x5fa   : > { %9431 = vmatprep.subr.bf16.mxu0 %v9430_v45  ;;  %v10420_v43 = vunpack.i.h.bf16 %v10418_v39  ;;  %v10419_v44 = vunpack.i.l.bf16 %v10418_v39 }
 0x5fc   : > { %8684 = vmatmul.mubr.msk.f32.gmra.mrb[14].mxu0 %vm490_vm0, %v4339_v49  ;;  %v9474_v48 = vpack.c.bf16 %v10420_v43, %v10419_v44 }
 0x5fd   : > { %9433 = vmatpush3.bf16.msra.mxu0 %v9430_v45  ;;  %8702 = vmatprep.mubr.msk.f32.mxu0 %vm490_vm0, %v4502_v50  ;;  %v10423_v45 = vpop.permute.xlu0 %10422 }
 0x5fe   : > { %9435 = vmatprep.subr.bf16.mxu0 %v9434_v51  ;;  %v10425_v49 = vunpack.i.h.bf16 %v10423_v45  ;;  %v10424_v50 = vunpack.i.l.bf16 %v10423_v45 }
 0x600   : > { %8703 = vmatmul.mubr.msk.f32.vlgmr.msra.gmra.mrb[8].mxu0 %vm490_vm0, %v4503_v55  ;;  %v9478_v53 = vpack.c.bf16 %v10425_v49, %v10424_v50  ;;  %v5012_v55 = vld [vmem:[#allocation7 + $0x200] sm:$0xff] }
 0x601   : > { %9437 = vmatpush3.bf16.msra.mxu0 %v9434_v51  ;;  %8705 = vmatprep.mubr.msk.f32.mxu0 %vm490_vm0, %v4504_v56  ;;  %v4847_v51 = vld [vmem:[#allocation7 + $0x1e8] sm:$0xff] }
 0x602   : > { %9439 = vmatprep.subr.bf16.mxu0 %v9438_v57  ;;  %v5013_v56 = vld [vmem:[#allocation7 + $0x208] sm:$0xff] }
 0x604   : > { %8706 = vmatmul.mubr.msk.f32.gmra.mrb[10].mxu0 %vm490_vm0, %v4505_v62  ;;  %v5018_v62 = vld [vmem:[#allocation7 + $0x230] sm:$0xff] }
 0x605   : > { %9441 = vmatpush3.bf16.msra.mxu0 %v9438_v57  ;;  %8708 = vmatprep.mubr.msk.f32.mxu0 %vm490_vm0, %v4506_v63  ;;  %v5014_v57 = vld [vmem:[#allocation7 + $0x210] sm:$0xff]  ;;  %v5019_v63 = vld [vmem:[#allocation7 + $0x238] sm:$0xff] }
 0x606   : > { %9443 = vmatprep.subr.bf16.mxu0 %v9442_v0 }
 0x608   : > { %8709 = vmatmul.mubr.msk.f32.gmra.mrb[12].mxu0 %vm490_vm0, %v4507_v4 }
 0x609   : > { %9445 = vmatpush3.bf16.msra.mxu0 %v9442_v0  ;;  %8711 = vmatprep.mubr.msk.f32.mxu0 %vm490_vm0, %v4508_v5  ;;  %v5181_v0 = vstv %s3675_s14 }
 0x60a   : > { %9447 = vmatprep.subr.bf16.mxu0 %v9446_v6 }
 0x60c   : > { %8712 = vmatmul.mubr.msk.f32.gmra.mrb[14].mxu0 %vm490_vm0, %v4509_v10 }
 0x60d   : > { %9449 = vmatpush3.bf16.msra.mxu0 %v9446_v6  ;;  %8730 = vmatprep.mubr.msk.f32.mxu0 %vm490_vm0, %v4672_v11 }
 0x60e   : > { %9451 = vmatprep.subr.bf16.mxu0 %v9450_v12 }
 0x610   : > { %8731 = vmatmul.mubr.msk.f32.vlgmr.msra.gmra.mrb[8].mxu0 %vm490_vm0, %v4673_v16 }
 0x611   : > { %9453 = vmatpush3.bf16.msra.mxu0 %v9450_v12  ;;  %8733 = vmatprep.mubr.msk.f32.mxu0 %vm490_vm0, %v4674_v17 }
 0x612   : > { %9455 = vmatprep.subr.bf16.mxu0 %v9454_v18 }
 0x614   : > { %8734 = vmatmul.mubr.msk.f32.gmra.mrb[10].mxu0 %vm490_vm0, %v4675_v22 }
 0x615   : > { %9457 = vmatpush3.bf16.msra.mxu0 %v9454_v18  ;;  %8736 = vmatprep.mubr.msk.f32.mxu0 %vm490_vm0, %v4676_v23 }
 0x616   : > { %9459 = vmatprep.subr.bf16.mxu0 %v9458_v24 }
 0x618   : > { %8737 = vmatmul.mubr.msk.f32.gmra.mrb[12].mxu0 %vm490_vm0, %v4677_v28 }
 0x619   : > { %9461 = vmatpush3.bf16.msra.mxu0 %v9458_v24  ;;  %8739 = vmatprep.mubr.msk.f32.mxu0 %vm490_vm0, %v4678_v29 }
 0x61a   : > { %9463 = vmatprep.subr.bf16.mxu0 %v9462_v30 }
 0x61c   : > { %8740 = vmatmul.mubr.msk.f32.gmra.mrb[14].mxu0 %vm490_vm0, %v4679_v34 }
 0x61d   : > { %9465 = vmatpush3.bf16.msra.mxu0 %v9462_v30  ;;  %8758 = vmatprep.mubr.msk.f32.mxu0 %vm490_vm0, %v4842_v35 }
 0x61e   : > { %9467 = vmatprep.subr.bf16.mxu0 %v9466_v36 }
 0x620   : > { %8759 = vmatmul.mubr.msk.f32.vlgmr.msra.gmra.mrb[8].mxu0 %vm490_vm0, %v4843_v40 }
 0x621   : > { %9469 = vmatpush3.bf16.msra.mxu0 %v9466_v36  ;;  %8761 = vmatprep.mubr.msk.f32.mxu0 %vm490_vm0, %v4844_v41 }
 0x622   : > { %9471 = vmatprep.subr.bf16.mxu0 %v9470_v42 }
 0x624   : > { %8762 = vmatmul.mubr.msk.f32.gmra.mrb[10].mxu0 %vm490_vm0, %v4845_v46 }
 0x625   : > { %9473 = vmatpush3.bf16.msra.mxu0 %v9470_v42  ;;  %8764 = vmatprep.mubr.msk.f32.mxu0 %vm490_vm0, %v4846_v47 }
 0x626   : > { %9475 = vmatprep.subr.bf16.mxu0 %v9474_v48 }
 0x628   : > { %8765 = vmatmul.mubr.msk.f32.gmra.mrb[12].mxu0 %vm490_vm0, %v4847_v51  ;;  %v5271_v51 = vld [vmem:[#allocation9 + $0x40] sm:$0xff] }
 0x629   : > { %9477 = vmatpush3.bf16.msra.mxu0 %v9474_v48  ;;  %8767 = vmatprep.mubr.msk.f32.mxu0 %vm490_vm0, %v4848_v52 }
 0x62a   : > { %9479 = vmatprep.subr.bf16.mxu0 %v9478_v53  ;;  %8814 = vmatprep.mubr.msk.f32.mxu1 %vm490_vm0, %v5271_v51  ;;  %v5572_v51 = vld [vmem:[#allocation9 + $0x90] sm:$0xff] }
 0x62c   : > { %8768 = vmatmul.mubr.msk.f32.gmra.mrb[14].mxu0 %vm490_vm0, %v4849_v54 }
 0x62d   : > { %9481 = vmatpush3.bf16.msra.mxu0 %v9478_v53  ;;  %8786 = vmatprep.mubr.msk.f32.mxu0 %vm490_vm0, %v5012_v55 }
 0x630   : > { %8787 = vmatmul.mubr.msk.f32.vlgmr.msra.gmra.mrb[8].mxu0 %vm490_vm0, %v5013_v56 }
 0x631   : > { %8789 = vmatprep.mubr.msk.f32.mxu0 %vm490_vm0, %v5014_v57 }
 0x634   : > { %8790 = vmatmul.mubr.msk.f32.gmra.mrb[10].mxu0 %vm490_vm0, %v5015_v59 }
 0x635   : > { %8792 = vmatprep.mubr.msk.f32.mxu0 %vm490_vm0, %v5016_v60 }
 0x638   : > { %8793 = vmatmul.mubr.msk.f32.gmra.mrb[12].mxu0 %vm490_vm0, %v5017_v61 }
 0x639   : > { %8795 = vmatprep.mubr.msk.f32.mxu0 %vm490_vm0, %v5018_v62 }
 0x63c   : > { %8796 = vmatmul.mubr.msk.f32.gmra.mrb[14].mxu0 %vm490_vm0, %v5019_v63 }
 0x703   : > { %v8788_v1 = vpop.f32.mrb[8].mxu0 }
 0x704   : > { %v5183_v2 = vadd.f32 %v8788_v1, %v5181_v0  ;;  %v5134_v3 = vpop.f32.mrb[9].mxu0 }
 0x705   : > { %v5182_v4 = vadd.f32 %v5181_v0, %v5134_v3 }
 0x706   : > { %v5191_v5 = vmax.f32 %v5183_v2, 0.0 }
 0x707   : > { %v5190_v6 = vmax.f32 %v5182_v4, 0.0  ;;  %v8791_v7 = vpop.f32.mrb[10].mxu0 }
 0x708   : > { %v5206_v8 = vmul.f32 %v11530_v58, %v5191_v5  ;;  %v5185_v9 = vadd.f32 %v8791_v7, %v5181_v0  ;;  %v5144_v10 = vpop.f32.mrb[11].mxu0 }
 0x709   : > { %v5205_v11 = vmul.f32 %v11530_v58, %v5190_v6  ;;  %v5184_v12 = vadd.f32 %v5181_v0, %v5144_v10 }
 0x70a   : > { %v5193_v13 = vmax.f32 %v5185_v9, 0.0  ;;  %5223 = vrot.lane.b32.xlu0 %v5206_v8, %s10754_s15 }
 0x70b   : > { %v5192_v14 = vmax.f32 %v5184_v12, 0.0  ;;  %5221 = vrot.lane.b32.xlu1 %v5205_v11, %s10754_s15  ;;  %v8794_v15 = vpop.f32.mrb[12].mxu0  ;;  %v5272_v11 = vld [vmem:[#allocation9 + $0x48] sm:$0xff]  ;;  %v5273_v12 = vld [vmem:[#allocation9 + $0x50] sm:$0xff] }
 0x70c   : > { %v5208_v16 = vmul.f32 %v11530_v58, %v5193_v13  ;;  %v5187_v17 = vadd.f32 %v8794_v15, %v5181_v0  ;;  %v5154_v18 = vpop.f32.mrb[13].mxu0  ;;  %v5274_v13 = vld [vmem:[#allocation9 + $0x58] sm:$0xff] }
 0x70d   : > { %v5207_v19 = vmul.f32 %v11530_v58, %v5192_v14  ;;  %v5186_v20 = vadd.f32 %v5181_v0, %v5154_v18  ;;  %v5275_v14 = vld [vmem:[#allocation9 + $0x60] sm:$0xff] }
 0x70e   : > { %v5195_v21 = vmax.f32 %v5187_v17, 0.0  ;;  %5227 = vrot.lane.b32.xlu0 %v5208_v16, %s10754_s15  ;;  %v5276_v16 = vld [vmem:[#allocation9 + $0x68] sm:$0xff]  ;;  %v5277_v17 = vld [vmem:[#allocation9 + $0x70] sm:$0xff] }
 0x70f   : > { %v5194_v22 = vmax.f32 %v5186_v20, 0.0  ;;  %5225 = vrot.lane.b32.xlu1 %v5207_v19, %s10754_s15  ;;  %v8797_v23 = vpop.f32.mrb[14].mxu0 }
 0x710   : > { %v5210_v24 = vmul.f32 %v11530_v58, %v5195_v21  ;;  %v5189_v25 = vadd.f32 %v8797_v23, %v5181_v0  ;;  %v5164_v26 = vpop.f32.mrb[15].mxu0  ;;  %v5278_v21 = vld [vmem:[#allocation9 + $0x78] sm:$0xff] }
 0x711   : > { %v5209_v27 = vmul.f32 %v11530_v58, %v5194_v22  ;;  %v5188_v28 = vadd.f32 %v5181_v0, %v5164_v26  ;;  %v5262_v22 = vld [vmem:[#allocation9] sm:$0xff] }
 0x712   : > { %v5197_v29 = vmax.f32 %v5189_v25, 0.0  ;;  %5231 = vrot.lane.b32.xlu0 %v5210_v24, %s10754_s15 }
 0x713   : > { %v5196_v30 = vmax.f32 %v5188_v28, 0.0  ;;  %5229 = vrot.lane.b32.xlu1 %v5209_v27, %s10754_s15  ;;  %v5263_v27 = vld [vmem:[#allocation9 + $0x8] sm:$0xff]  ;;  %v5264_v28 = vld [vmem:[#allocation9 + $0x10] sm:$0xff] }
 0x714   : > { %v5212_v32 = vmul.f32 %v10618_v31, %v5197_v29 }
 0x715   : > { %v5211_v33 = vmul.f32 %v10618_v31, %v5196_v30 }
 0x716   : > { %5235 = vrot.lane.b32.xlu0 %v5212_v32, %s10754_s15 }
 0x717   : > { %5233 = vrot.lane.b32.xlu1 %v5211_v33, %s10754_s15  ;;  %v5265_v33 = vld [vmem:[#allocation9 + $0x18] sm:$0xff] }
 0x77c   : > { %v5224_v34 = vpop.permute.xlu0 %5223 }
 0x77d   : > { %5246 = vst.msk [vmem:[#allocation3 + $0x8] sm:$0xff] %vm2042_vm3, %v5224_v34  ;;  %v5222_v58 = vpop.permute.xlu1 %5221  ;;  %v5266_v34 = vld [vmem:[#allocation9 + $0x20] sm:$0xff] }
 0x77e   : > { %5245 = vst.msk [vmem:[#allocation3] sm:$0xff] %vm2042_vm3, %v5222_v58 }
 0x780   : > { %v5228_v35 = vpop.permute.xlu0 %5227 }
 0x781   : > { %5248 = vst.msk [vmem:[#allocation3 + $0x18] sm:$0xff] %vm2042_vm3, %v5228_v35  ;;  %v5226_v36 = vpop.permute.xlu1 %5225 }
 0x782   : > { %5247 = vst.msk [vmem:[#allocation3 + $0x10] sm:$0xff] %vm2042_vm3, %v5226_v36 }
 0x784   : > { %v5232_v37 = vpop.permute.xlu0 %5231  ;;  %v5255_v38 = vld [vmem:[#allocation3 + $0x8] sm:$0xff] }
 0x785   : > { %5250 = vst.msk [vmem:[#allocation3 + $0x28] sm:$0xff] %vm2042_vm3, %v5232_v37  ;;  %v5230_v39 = vpop.permute.xlu1 %5229  ;;  %v5254_v40 = vld [vmem:[#allocation3] sm:$0xff] }
 0x786   : > { %5249 = vst.msk [vmem:[#allocation3 + $0x20] sm:$0xff] %vm2042_vm3, %v5230_v39  ;;  %v10426_v41 = vpack.i.bf16 %v5255_v38, %v5254_v40  ;;  %v11716_v44 = vpack.c.bf16 %v5255_v38, %v5254_v40  ;;  %v5267_v38 = vld [vmem:[#allocation9 + $0x28] sm:$0xff]  ;;  %v5268_v39 = vld [vmem:[#allocation9 + $0x30] sm:$0xff] }
 0x788   : > { %v5236_v42 = vpop.permute.xlu0 %5235  ;;  %10427 = vrot.lane.b32.xlu1 %v10426_v41, %s10744_s27  ;;  %v5257_v43 = vld [vmem:[#allocation3 + $0x18] sm:$0xff] }
 0x789   : > { %5252 = vst.msk [vmem:[#allocation3 + $0x38] sm:$0xff] %vm2042_vm3, %v5236_v42  ;;  %v5234_v45 = vpop.permute.xlu1 %5233  ;;  %v5256_v46 = vld [vmem:[#allocation3 + $0x10] sm:$0xff] }
 0x78a   : > { %5251 = vst.msk [vmem:[#allocation3 + $0x30] sm:$0xff] %vm2042_vm3, %v5234_v45  ;;  %v10431_v47 = vpack.i.bf16 %v5257_v43, %v5256_v46  ;;  %v11721_v49 = vpack.c.bf16 %v5257_v43, %v5256_v46  ;;  %v5570_v45 = vld [vmem:[#allocation9 + $0x80] sm:$0xff] }
 0x78c   : > { %10432 = vrot.lane.b32.xlu0 %v10431_v47, %s10744_s27  ;;  %v5259_v48 = vld [vmem:[#allocation3 + $0x28] sm:$0xff] }
 0x78d   : > { %v5258_v50 = vld [vmem:[#allocation3 + $0x20] sm:$0xff] }
 0x78e   : > { %v10436_v52 = vpack.i.bf16 %v5259_v48, %v5258_v50  ;;  %v11725_v54 = vpack.c.bf16 %v5259_v48, %v5258_v50  ;;  %v5571_v50 = vld [vmem:[#allocation9 + $0x88] sm:$0xff] }
 0x790   : > { %10437 = vrot.lane.b32.xlu1 %v10436_v52, %s10744_s27  ;;  %v5261_v53 = vld [vmem:[#allocation3 + $0x38] sm:$0xff] }
 0x791   : > { %v5260_v55 = vld [vmem:[#allocation3 + $0x30] sm:$0xff] }
 0x792   : > { %v10441_v56 = vpack.i.bf16 %v5261_v53, %v5260_v55  ;;  %v11729_v57 = vpack.c.bf16 %v5261_v53, %v5260_v55 }
 0x794   : > { %10447 = vrot.lane.b32.xlu1 %v10426_v41, %s10745_s20  ;;  %10442 = vrot.lane.b32.xlu0 %v10441_v56, %s10744_s27  ;;  %s7386_s27 = sld [smem:[#allocation10 + $0x1]] }
 0x798   : > { %10457 = vrot.lane.b32.xlu1 %v10436_v52, %s10745_s20  ;;  %10452 = vrot.lane.b32.xlu0 %v10431_v47, %s10745_s20 }
 0x79c   : > { %10467 = vrot.lane.b32.xlu1 %v10426_v41, %s10746_s22  ;;  %10462 = vrot.lane.b32.xlu0 %v10441_v56, %s10745_s20 }
 0x7a0   : > { %10477 = vrot.lane.b32.xlu1 %v10436_v52, %s10746_s22  ;;  %10472 = vrot.lane.b32.xlu0 %v10431_v47, %s10746_s22 }
 0x7a4   : > { %10487 = vrot.lane.b32.xlu1 %v10426_v41, %s10747_s23  ;;  %10482 = vrot.lane.b32.xlu0 %v10441_v56, %s10746_s22 }
 0x7a8   : > { %10497 = vrot.lane.b32.xlu1 %v10436_v52, %s10747_s23  ;;  %10492 = vrot.lane.b32.xlu0 %v10431_v47, %s10747_s23 }
 0x7ac   : > { %10507 = vrot.lane.b32.xlu1 %v10426_v41, %s10748_s24  ;;  %10502 = vrot.lane.b32.xlu0 %v10441_v56, %s10747_s23  ;;  %s7460_s23 = sld [smem:[#allocation10 + $0x2]] }
 0x7b0   : > { %10517 = vrot.lane.b32.xlu1 %v10436_v52, %s10748_s24  ;;  %10512 = vrot.lane.b32.xlu0 %v10431_v47, %s10748_s24 }
 0x7b4   : > { %10527 = vrot.lane.b32.xlu1 %v10426_v41, %s10749_s25  ;;  %10522 = vrot.lane.b32.xlu0 %v10441_v56, %s10748_s24  ;;  %s7461_s24 = sld [smem:[#allocation10 + $0x3]] }
 0x7b8   : > { %10537 = vrot.lane.b32.xlu1 %v10436_v52, %s10749_s25  ;;  %10532 = vrot.lane.b32.xlu0 %v10431_v47, %s10749_s25 }
 0x7bc   : > { %10547 = vrot.lane.b32.xlu1 %v10426_v41, %s10750_s26  ;;  %10542 = vrot.lane.b32.xlu0 %v10441_v56, %s10749_s25  ;;  %s11976_s25 = sshll.u32 %s11980_s10, 6 }
 0x7c0   : > { %10557 = vrot.lane.b32.xlu1 %v10436_v52, %s10750_s26  ;;  %10552 = vrot.lane.b32.xlu0 %v10431_v47, %s10750_s26 }
 0x7c4   : > { %10567 = vrot.lane.b32.xlu1 %v10426_v41, %s10751_s28  ;;  %10562 = vrot.lane.b32.xlu0 %v10441_v56, %s10750_s26 }
 0x7c8   : > { %10577 = vrot.lane.b32.xlu1 %v10436_v52, %s10751_s28  ;;  %10572 = vrot.lane.b32.xlu0 %v10431_v47, %s10751_s28 }
 0x7cc   : > { %10582 = vrot.lane.b32.xlu0 %v10441_v56, %s10751_s28  ;;  %v5573_v56 = vld [vmem:[#allocation9 + $0x98] sm:$0xff] }
 0x7fa   : > { %v10428_v59 = vpop.permute.xlu1 %10427 }
 0x7fb   : > { %v10430_v60 = vunpack.i.h.bf16 %v10428_v59  ;;  %v10429_v61 = vunpack.i.l.bf16 %v10428_v59 }
 0x7fd   : > { %v9482_v62 = vpack.c.bf16 %v10430_v60, %v10429_v61 }
 0x7fe   : > { %v10433_v63 = vpop.permute.xlu0 %10432 }
 0x7ff   : > { %v10435_v0 = vunpack.i.h.bf16 %v10433_v63  ;;  %v10434_v1 = vunpack.i.l.bf16 %v10433_v63  ;;  %9483 = vmatprep.subr.bf16.mxu1 %v9482_v62  ;;  %v5575_v63 = vld [vmem:[#allocation9 + $0xa8] sm:$0xff] }
 0x800   : > { %9485 = vmatpush3.bf16.msra.mxu1 %v9482_v62 }
 0x801   : > { %v9486_v2 = vpack.c.bf16 %v10435_v0, %v10434_v1  ;;  %v5576_v0 = vld [vmem:[#allocation9 + $0xb0] sm:$0xff] }
 0x802   : > { %v10438_v3 = vpop.permute.xlu1 %10437 }
 0x803   : > { %v10440_v4 = vunpack.i.h.bf16 %v10438_v3  ;;  %v10439_v5 = vunpack.i.l.bf16 %v10438_v3  ;;  %9487 = vmatprep.subr.bf16.mxu1 %v9486_v2 }
 0x804   : > { %9489 = vmatpush3.bf16.msra.mxu1 %v9486_v2 }
 0x805   : > { %v9490_v6 = vpack.c.bf16 %v10440_v4, %v10439_v5  ;;  %v5577_v5 = vld [vmem:[#allocation9 + $0xb8] sm:$0xff] }
 0x806   : > { %v10443_v7 = vpop.permute.xlu0 %10442  ;;  %v10448_v15 = vpop.permute.xlu1 %10447 }
 0x807   : > { %v10445_v8 = vunpack.i.h.bf16 %v10443_v7  ;;  %v10444_v9 = vunpack.i.l.bf16 %v10443_v7  ;;  %9491 = vmatprep.subr.bf16.mxu1 %v9490_v6  ;;  %v10450_v18 = vunpack.i.h.bf16 %v10448_v15  ;;  %v10449_v19 = vunpack.i.l.bf16 %v10448_v15 }
 0x808   : > { %9493 = vmatpush3.bf16.msra.mxu1 %v9490_v6  ;;  %v5740_v6 = vld [vmem:[#allocation9 + $0xc0] sm:$0xff] }
 0x809   : > { %v9494_v10 = vpack.c.bf16 %v10445_v8, %v10444_v9  ;;  %v9514_v23 = vpack.c.bf16 %v10450_v18, %v10449_v19  ;;  %v5744_v18 = vld [vmem:[#allocation9 + $0xe0] sm:$0xff] }
 0x80a   : > { %v10453_v20 = vpop.permute.xlu0 %10452  ;;  %v10458_v26 = vpop.permute.xlu1 %10457 }
 0x80b   : > { %9495 = vmatprep.subr.bf16.mxu1 %v9494_v10  ;;  %v10455_v24 = vunpack.i.h.bf16 %v10453_v20  ;;  %v10454_v25 = vunpack.i.l.bf16 %v10453_v20  ;;  %v10460_v30 = vunpack.i.h.bf16 %v10458_v26  ;;  %v10459_v31 = vunpack.i.l.bf16 %v10458_v26 }
 0x80c   : > { %9497 = vmatpush3.bf16.msra.mxu1 %v9494_v10 }
 0x80d   : > { %9499 = vmatprep.subr.bf16.mxu1 %v11716_v44  ;;  %v9518_v29 = vpack.c.bf16 %v10455_v24, %v10454_v25  ;;  %v9522_v58 = vpack.c.bf16 %v10460_v30, %v10459_v31  ;;  %v5746_v24 = vld [vmem:[#allocation9 + $0xf0] sm:$0xff]  ;;  %v5910_v30 = vld [vmem:[#allocation9 + $0x100] sm:$0xff] }
 0x80e   : > { %v10463_v32 = vpop.permute.xlu0 %10462  ;;  %v10468_v37 = vpop.permute.xlu1 %10467 }
 0x80f   : > { %8815 = vmatmul.mubr.msk.f32.vlgmr.msra.gmra.mrb[8].mxu1 %vm490_vm0, %v5272_v11  ;;  %v10465_v35 = vunpack.i.h.bf16 %v10463_v32  ;;  %v10464_v36 = vunpack.i.l.bf16 %v10463_v32  ;;  %v10470_v41 = vunpack.i.h.bf16 %v10468_v37  ;;  %v10469_v42 = vunpack.i.l.bf16 %v10468_v37  ;;  %v5741_v11 = vld [vmem:[#allocation9 + $0xc8] sm:$0xff] }
 0x810   : > { %9501 = vmatpush3.bf16.msra.mxu1 %v11716_v44  ;;  %8817 = vmatprep.mubr.msk.f32.mxu1 %vm490_vm0, %v5273_v12  ;;  %v5269_v44 = vld [vmem:[#allocation9 + $0x38] sm:$0xff]  ;;  %v5742_v12 = vld [vmem:[#allocation9 + $0xd0] sm:$0xff] }
 0x811   : > { %9503 = vmatprep.subr.bf16.mxu1 %v11721_v49  ;;  %v9526_v40 = vpack.c.bf16 %v10465_v35, %v10464_v36  ;;  %v9530_v46 = vpack.c.bf16 %v10470_v41, %v10469_v42  ;;  %v5912_v35 = vld [vmem:[#allocation9 + $0x110] sm:$0xff]  ;;  %v5914_v41 = vld [vmem:[#allocation9 + $0x120] sm:$0xff] }
 0x812   : > { %v10473_v43 = vpop.permute.xlu0 %10472 }
 0x813   : > { %8818 = vmatmul.mubr.msk.f32.gmra.mrb[10].mxu1 %vm490_vm0, %v5274_v13  ;;  %v10475_v47 = vunpack.i.h.bf16 %v10473_v43  ;;  %v10474_v48 = vunpack.i.l.bf16 %v10473_v43 }
 0x814   : > { %9505 = vmatpush3.bf16.msra.mxu1 %v11721_v49  ;;  %8820 = vmatprep.mubr.msk.f32.mxu1 %vm490_vm0, %v5275_v14  ;;  %v10478_v49 = vpop.permute.xlu1 %10477 }
 0x815   : > { %9507 = vmatprep.subr.bf16.mxu1 %v11725_v54  ;;  %v9534_v52 = vpack.c.bf16 %v10475_v47, %v10474_v48  ;;  %v10480_v53 = vunpack.i.h.bf16 %v10478_v49  ;;  %v5916_v47 = vld [vmem:[#allocation9 + $0x130] sm:$0xff] }
 0x816   : > { %v10483_v55 = vpop.permute.xlu0 %10482 }
 0x817   : > { %8821 = vmatmul.mubr.msk.f32.gmra.mrb[12].mxu1 %vm490_vm0, %v5276_v16  ;;  %v10485_v60 = vunpack.i.h.bf16 %v10483_v55  ;;  %v10484_v61 = vunpack.i.l.bf16 %v10483_v55 }
 0x818   : > { %9509 = vmatpush3.bf16.msra.mxu1 %v11725_v54  ;;  %8823 = vmatprep.mubr.msk.f32.mxu1 %vm490_vm0, %v5277_v17  ;;  %v10479_v54 = vunpack.i.l.bf16 %v10478_v49  ;;  %v10488_v62 = vpop.permute.xlu1 %10487  ;;  %v5743_v17 = vld [vmem:[#allocation9 + $0xd8] sm:$0xff] }
 0x819   : > { %9511 = vmatprep.subr.bf16.mxu1 %v11729_v57  ;;  %v9542_v1 = vpack.c.bf16 %v10485_v60, %v10484_v61  ;;  %v10490_v2 = vunpack.i.h.bf16 %v10488_v62  ;;  %v10489_v3 = vunpack.i.l.bf16 %v10488_v62  ;;  %v6082_v60 = vld [vmem:[#allocation9 + $0x150] sm:$0xff] }
 0x81a   : > { %v9538_v59 = vpack.c.bf16 %v10480_v53, %v10479_v54  ;;  %v10493_v4 = vpop.permute.xlu0 %10492  ;;  %v6080_v53 = vld [vmem:[#allocation9 + $0x140] sm:$0xff] }
 0x81b   : > { %8824 = vmatmul.mubr.msk.f32.gmra.mrb[14].mxu1 %vm490_vm0, %v5278_v21  ;;  %v9546_v7 = vpack.c.bf16 %v10490_v2, %v10489_v3  ;;  %v10495_v8 = vunpack.i.h.bf16 %v10493_v4  ;;  %v10494_v9 = vunpack.i.l.bf16 %v10493_v4  ;;  %v6084_v2 = vld [vmem:[#allocation9 + $0x160] sm:$0xff] }
 0x81c   : > { %9513 = vmatpush3.bf16.msra.mxu1 %v11729_v57  ;;  %8842 = vmatprep.mubr.msk.f32.mxu1 %vm490_vm0, %v5262_v22  ;;  %v5574_v57 = vld [vmem:[#allocation9 + $0xa0] sm:$0xff]  ;;  %v10498_v10 = vpop.permute.xlu1 %10497 }
 0x81d   : > { %9515 = vmatprep.subr.bf16.mxu1 %v9514_v23  ;;  %v9550_v13 = vpack.c.bf16 %v10495_v8, %v10494_v9  ;;  %v10500_v14 = vunpack.i.h.bf16 %v10498_v10  ;;  %v10499_v15 = vunpack.i.l.bf16 %v10498_v10  ;;  %v6086_v8 = vld [vmem:[#allocation9 + $0x170] sm:$0xff] }
 0x81e   : > { %v10503_v16 = vpop.permute.xlu0 %10502 }
 0x81f   : > { %8843 = vmatmul.mubr.msk.f32.vlgmr.msra.gmra.mrb[8].mxu1 %vm490_vm0, %v5263_v27  ;;  %v9554_v19 = vpack.c.bf16 %v10500_v14, %v10499_v15  ;;  %v10505_v20 = vunpack.i.h.bf16 %v10503_v16  ;;  %v10504_v21 = vunpack.i.l.bf16 %v10503_v16  ;;  %v6250_v14 = vld [vmem:[#allocation9 + $0x180] sm:$0xff] }
 0x820   : > { %9517 = vmatpush3.bf16.msra.mxu1 %v9514_v23  ;;  %8845 = vmatprep.mubr.msk.f32.mxu1 %vm490_vm0, %v5264_v28  ;;  %v10508_v22 = vpop.permute.xlu1 %10507  ;;  %v5745_v23 = vld [vmem:[#allocation9 + $0xe8] sm:$0xff] }
 0x821   : > { %9519 = vmatprep.subr.bf16.mxu1 %v9518_v29  ;;  %v9558_v25 = vpack.c.bf16 %v10505_v20, %v10504_v21  ;;  %v10510_v26 = vunpack.i.h.bf16 %v10508_v22  ;;  %v10509_v27 = vunpack.i.l.bf16 %v10508_v22  ;;  %v6252_v20 = vld [vmem:[#allocation9 + $0x190] sm:$0xff] }
 0x822   : > { %v10513_v28 = vpop.permute.xlu0 %10512 }
 0x823   : > { %8846 = vmatmul.mubr.msk.f32.gmra.mrb[10].mxu1 %vm490_vm0, %v5265_v33  ;;  %v9562_v31 = vpack.c.bf16 %v10510_v26, %v10509_v27  ;;  %v10515_v32 = vunpack.i.h.bf16 %v10513_v28  ;;  %v10514_v33 = vunpack.i.l.bf16 %v10513_v28  ;;  %v6254_v26 = vld [vmem:[#allocation9 + $0x1a0] sm:$0xff] }
 0x824   : > { %9521 = vmatpush3.bf16.msra.mxu1 %v9518_v29  ;;  %8848 = vmatprep.mubr.msk.f32.mxu1 %vm490_vm0, %v5266_v34  ;;  %v5747_v29 = vld [vmem:[#allocation9 + $0xf8] sm:$0xff]  ;;  %v10518_v34 = vpop.permute.xlu1 %10517 }
 0x825   : > { %9523 = vmatprep.subr.bf16.mxu1 %v9522_v58  ;;  %v9566_v36 = vpack.c.bf16 %v10515_v32, %v10514_v33  ;;  %v10520_v37 = vunpack.i.h.bf16 %v10518_v34  ;;  %v6256_v32 = vld [vmem:[#allocation9 + $0x1b0] sm:$0xff] }
 0x827   : > { %8849 = vmatmul.mubr.msk.f32.gmra.mrb[12].mxu1 %vm490_vm0, %v5267_v38  ;;  %v10519_v38 = vunpack.i.l.bf16 %v10518_v34 }
 0x828   : > { %9525 = vmatpush3.bf16.msra.mxu1 %v9522_v58  ;;  %8851 = vmatprep.mubr.msk.f32.mxu1 %vm490_vm0, %v5268_v39  ;;  %v5911_v58 = vld [vmem:[#allocation9 + $0x108] sm:$0xff]  ;;  %v10523_v39 = vpop.permute.xlu0 %10522 }
 0x829   : > { %9527 = vmatprep.subr.bf16.mxu1 %v9526_v40  ;;  %v9570_v42 = vpack.c.bf16 %v10520_v37, %v10519_v38  ;;  %v10525_v43 = vunpack.i.h.bf16 %v10523_v39  ;;  %v6420_v37 = vld [vmem:[#allocation9 + $0x1c0] sm:$0xff] }
 0x82b   : > { %8852 = vmatmul.mubr.msk.f32.gmra.mrb[14].mxu1 %vm490_vm0, %v5269_v44  ;;  %v10524_v44 = vunpack.i.l.bf16 %v10523_v39 }
 0x82c   : > { %9529 = vmatpush3.bf16.msra.mxu1 %v9526_v40  ;;  %8870 = vmatprep.mubr.msk.f32.mxu1 %vm490_vm0, %v5570_v45  ;;  %v5913_v40 = vld [vmem:[#allocation9 + $0x118] sm:$0xff]  ;;  %v10528_v45 = vpop.permute.xlu1 %10527 }
 0x82d   : > { %9531 = vmatprep.subr.bf16.mxu1 %v9530_v46  ;;  %v9574_v48 = vpack.c.bf16 %v10525_v43, %v10524_v44  ;;  %v10530_v49 = vunpack.i.h.bf16 %v10528_v45  ;;  %v6422_v43 = vld [vmem:[#allocation9 + $0x1d0] sm:$0xff] }
 0x82f   : > { %8871 = vmatmul.mubr.msk.f32.vlgmr.msra.gmra.mrb[8].mxu1 %vm490_vm0, %v5571_v50  ;;  %v10529_v50 = vunpack.i.l.bf16 %v10528_v45 }
 0x830   : > { %9533 = vmatpush3.bf16.msra.mxu1 %v9530_v46  ;;  %8873 = vmatprep.mubr.msk.f32.mxu1 %vm490_vm0, %v5572_v51  ;;  %v5915_v46 = vld [vmem:[#allocation9 + $0x128] sm:$0xff]  ;;  %v10533_v51 = vpop.permute.xlu0 %10532 }
 0x831   : > { %9535 = vmatprep.subr.bf16.mxu1 %v9534_v52  ;;  %v9578_v54 = vpack.c.bf16 %v10530_v49, %v10529_v50  ;;  %v10535_v55 = vunpack.i.h.bf16 %v10533_v51  ;;  %v6424_v49 = vld [vmem:[#allocation9 + $0x1e0] sm:$0xff] }
 0x833   : > { %8874 = vmatmul.mubr.msk.f32.gmra.mrb[10].mxu1 %vm490_vm0, %v5573_v56  ;;  %v10534_v56 = vunpack.i.l.bf16 %v10533_v51 }
 0x834   : > { %9537 = vmatpush3.bf16.msra.mxu1 %v9534_v52  ;;  %8876 = vmatprep.mubr.msk.f32.mxu1 %vm490_vm0, %v5574_v57  ;;  %v5917_v52 = vld [vmem:[#allocation9 + $0x138] sm:$0xff]  ;;  %v10538_v57 = vpop.permute.xlu1 %10537 }
 0x835   : > { %9539 = vmatprep.subr.bf16.mxu1 %v9538_v59  ;;  %v9582_v61 = vpack.c.bf16 %v10535_v55, %v10534_v56  ;;  %v10540_v62 = vunpack.i.h.bf16 %v10538_v57  ;;  %v6427_v56 = vld [vmem:[#allocation9 + $0x1f8] sm:$0xff] }
 0x837   : > { %8877 = vmatmul.mubr.msk.f32.gmra.mrb[12].mxu1 %vm490_vm0, %v5575_v63  ;;  %v10539_v63 = vunpack.i.l.bf16 %v10538_v57  ;;  %v6590_v57 = vld [vmem:[#allocation9 + $0x200] sm:$0xff] }
 0x838   : > { %9541 = vmatpush3.bf16.msra.mxu1 %v9538_v59  ;;  %8879 = vmatprep.mubr.msk.f32.mxu1 %vm490_vm0, %v5576_v0  ;;  %v6081_v59 = vld [vmem:[#allocation9 + $0x148] sm:$0xff]  ;;  %v10543_v0 = vpop.permute.xlu0 %10542 }
 0x839   : > { %9543 = vmatprep.subr.bf16.mxu1 %v9542_v1  ;;  %v9586_v3 = vpack.c.bf16 %v10540_v62, %v10539_v63  ;;  %v10545_v4 = vunpack.i.h.bf16 %v10543_v0  ;;  %v6594_v62 = vld [vmem:[#allocation9 + $0x220] sm:$0xff]  ;;  %v6595_v63 = vld [vmem:[#allocation9 + $0x228] sm:$0xff] }
 0x83b   : > { %8880 = vmatmul.mubr.msk.f32.gmra.mrb[14].mxu1 %vm490_vm0, %v5577_v5  ;;  %v10544_v5 = vunpack.i.l.bf16 %v10543_v0  ;;  %v6596_v0 = vld [vmem:[#allocation9 + $0x230] sm:$0xff] }
 0x83c   : > { %9545 = vmatpush3.bf16.msra.mxu1 %v9542_v1  ;;  %8898 = vmatprep.mubr.msk.f32.mxu1 %vm490_vm0, %v5740_v6  ;;  %v6083_v1 = vld [vmem:[#allocation9 + $0x158] sm:$0xff]  ;;  %v10548_v6 = vpop.permute.xlu1 %10547 }
 0x83d   : > { %9547 = vmatprep.subr.bf16.mxu1 %v9546_v7  ;;  %v9590_v9 = vpack.c.bf16 %v10545_v4, %v10544_v5  ;;  %v10550_v10 = vunpack.i.h.bf16 %v10548_v6 }
 0x83f   : > { %8899 = vmatmul.mubr.msk.f32.vlgmr.msra.gmra.mrb[8].mxu1 %vm490_vm0, %v5741_v11  ;;  %v10549_v11 = vunpack.i.l.bf16 %v10548_v6  ;;  %v7459_v6 = vld [vmem:[%s11967_s7] ss:$0 sm:$0xff] }
 0x840   : > { %9549 = vmatpush3.bf16.msra.mxu1 %v9546_v7  ;;  %8901 = vmatprep.mubr.msk.f32.mxu1 %vm490_vm0, %v5742_v12  ;;  %v6085_v7 = vld [vmem:[#allocation9 + $0x168] sm:$0xff]  ;;  %v10553_v12 = vpop.permute.xlu0 %10552 }
 0x841   : > { %9551 = vmatprep.subr.bf16.mxu1 %v9550_v13  ;;  %v9594_v15 = vpack.c.bf16 %v10550_v10, %v10549_v11  ;;  %v10555_v16 = vunpack.i.h.bf16 %v10553_v12 }
 0x843   : > { %8902 = vmatmul.mubr.msk.f32.gmra.mrb[10].mxu1 %vm490_vm0, %v5743_v17  ;;  %v10554_v17 = vunpack.i.l.bf16 %v10553_v12 }
 0x844   : > { %9553 = vmatpush3.bf16.msra.mxu1 %v9550_v13  ;;  %8904 = vmatprep.mubr.msk.f32.mxu1 %vm490_vm0, %v5744_v18  ;;  %v6087_v13 = vld [vmem:[#allocation9 + $0x178] sm:$0xff]  ;;  %v10558_v18 = vpop.permute.xlu1 %10557 }
 0x845   : > { %9555 = vmatprep.subr.bf16.mxu1 %v9554_v19  ;;  %v9598_v21 = vpack.c.bf16 %v10555_v16, %v10554_v17  ;;  %v10560_v22 = vunpack.i.h.bf16 %v10558_v18 }
 0x847   : > { %8905 = vmatmul.mubr.msk.f32.gmra.mrb[12].mxu1 %vm490_vm0, %v5745_v23  ;;  %v10559_v23 = vunpack.i.l.bf16 %v10558_v18 }
 0x848   : > { %9557 = vmatpush3.bf16.msra.mxu1 %v9554_v19  ;;  %8907 = vmatprep.mubr.msk.f32.mxu1 %vm490_vm0, %v5746_v24  ;;  %v6251_v19 = vld [vmem:[#allocation9 + $0x188] sm:$0xff]  ;;  %v10563_v24 = vpop.permute.xlu0 %10562 }
 0x849   : > { %9559 = vmatprep.subr.bf16.mxu1 %v9558_v25  ;;  %v9602_v27 = vpack.c.bf16 %v10560_v22, %v10559_v23  ;;  %v10565_v28 = vunpack.i.h.bf16 %v10563_v24 }
 0x84b   : > { %8908 = vmatmul.mubr.msk.f32.gmra.mrb[14].mxu1 %vm490_vm0, %v5747_v29  ;;  %v10564_v29 = vunpack.i.l.bf16 %v10563_v24 }
 0x84c   : > { %9561 = vmatpush3.bf16.msra.mxu1 %v9558_v25  ;;  %8926 = vmatprep.mubr.msk.f32.mxu1 %vm490_vm0, %v5910_v30  ;;  %v6253_v25 = vld [vmem:[#allocation9 + $0x198] sm:$0xff]  ;;  %v10568_v30 = vpop.permute.xlu1 %10567 }
 0x84d   : > { %9563 = vmatprep.subr.bf16.mxu1 %v9562_v31  ;;  %v9606_v33 = vpack.c.bf16 %v10565_v28, %v10564_v29  ;;  %v10570_v34 = vunpack.i.h.bf16 %v10568_v30 }
 0x84f   : > { %8927 = vmatmul.mubr.msk.f32.vlgmr.msra.gmra.mrb[8].mxu1 %vm490_vm0, %v5911_v58  ;;  %v10569_v58 = vunpack.i.l.bf16 %v10568_v30 }
 0x850   : > { %9565 = vmatpush3.bf16.msra.mxu1 %v9562_v31  ;;  %8929 = vmatprep.mubr.msk.f32.mxu1 %vm490_vm0, %v5912_v35  ;;  %v6255_v31 = vld [vmem:[#allocation9 + $0x1a8] sm:$0xff]  ;;  %v10573_v35 = vpop.permute.xlu0 %10572 }
 0x851   : > { %9567 = vmatprep.subr.bf16.mxu1 %v9566_v36  ;;  %v9610_v38 = vpack.c.bf16 %v10570_v34, %v10569_v58  ;;  %v10575_v39 = vunpack.i.h.bf16 %v10573_v35 }
 0x853   : > { %8930 = vmatmul.mubr.msk.f32.gmra.mrb[10].mxu1 %vm490_vm0, %v5913_v40  ;;  %v10574_v40 = vunpack.i.l.bf16 %v10573_v35 }
 0x854   : > { %9569 = vmatpush3.bf16.msra.mxu1 %v9566_v36  ;;  %8932 = vmatprep.mubr.msk.f32.mxu1 %vm490_vm0, %v5914_v41  ;;  %v6257_v36 = vld [vmem:[#allocation9 + $0x1b8] sm:$0xff]  ;;  %v10578_v41 = vpop.permute.xlu1 %10577 }
 0x855   : > { %9571 = vmatprep.subr.bf16.mxu1 %v9570_v42  ;;  %v9614_v44 = vpack.c.bf16 %v10575_v39, %v10574_v40  ;;  %v10580_v45 = vunpack.i.h.bf16 %v10578_v41  ;;  %v6841_v39 = vstv %s7460_s23  ;;  %v6850_v40 = vstv %s7461_s24 }
 0x857   : > { %8933 = vmatmul.mubr.msk.f32.gmra.mrb[12].mxu1 %vm490_vm0, %v5915_v46  ;;  %v10579_v46 = vunpack.i.l.bf16 %v10578_v41 }
 0x858   : > { %9573 = vmatpush3.bf16.msra.mxu1 %v9570_v42  ;;  %8935 = vmatprep.mubr.msk.f32.mxu1 %vm490_vm0, %v5916_v47  ;;  %v6421_v42 = vld [vmem:[#allocation9 + $0x1c8] sm:$0xff]  ;;  %v10583_v47 = vpop.permute.xlu0 %10582 }
 0x859   : > { %9575 = vmatprep.subr.bf16.mxu1 %v9574_v48  ;;  %v9618_v50 = vpack.c.bf16 %v10580_v45, %v10579_v46  ;;  %v10585_v51 = vunpack.i.h.bf16 %v10583_v47 }
 0x85b   : > { %8936 = vmatmul.mubr.msk.f32.gmra.mrb[14].mxu1 %vm490_vm0, %v5917_v52  ;;  %v10584_v52 = vunpack.i.l.bf16 %v10583_v47 }
 0x85c   : > { %9577 = vmatpush3.bf16.msra.mxu1 %v9574_v48  ;;  %8954 = vmatprep.mubr.msk.f32.mxu1 %vm490_vm0, %v6080_v53  ;;  %v6423_v48 = vld [vmem:[#allocation9 + $0x1d8] sm:$0xff]  ;;  %v6425_v53 = vld [vmem:[#allocation9 + $0x1e8] sm:$0xff] }
 0x85d   : > { %9579 = vmatprep.subr.bf16.mxu1 %v9578_v54  ;;  %v9622_v55 = vpack.c.bf16 %v10585_v51, %v10584_v52 }
 0x85f   : > { %8955 = vmatmul.mubr.msk.f32.vlgmr.msra.gmra.mrb[8].mxu1 %vm490_vm0, %v6081_v59  ;;  %v6591_v59 = vld [vmem:[#allocation9 + $0x208] sm:$0xff] }
 0x860   : > { %9581 = vmatpush3.bf16.msra.mxu1 %v9578_v54  ;;  %8957 = vmatprep.mubr.msk.f32.mxu1 %vm490_vm0, %v6082_v60  ;;  %v6426_v54 = vld [vmem:[#allocation9 + $0x1f0] sm:$0xff] }
 0x861   : > { %9583 = vmatprep.subr.bf16.mxu1 %v9582_v61  ;;  %v6592_v60 = vld [vmem:[#allocation9 + $0x210] sm:$0xff] }
 0x863   : > { %8958 = vmatmul.mubr.msk.f32.gmra.mrb[10].mxu1 %vm490_vm0, %v6083_v1  ;;  %v6597_v1 = vld [vmem:[#allocation9 + $0x238] sm:$0xff] }
 0x864   : > { %9585 = vmatpush3.bf16.msra.mxu1 %v9582_v61  ;;  %8960 = vmatprep.mubr.msk.f32.mxu1 %vm490_vm0, %v6084_v2  ;;  %v6593_v61 = vld [vmem:[#allocation9 + $0x218] sm:$0xff]  ;;  %v6759_v2 = vstv %s7386_s27 }
 0x865   : > { %9587 = vmatprep.subr.bf16.mxu1 %v9586_v3 }
 0x867   : > { %8961 = vmatmul.mubr.msk.f32.gmra.mrb[12].mxu1 %vm490_vm0, %v6085_v7 }
 0x868   : > { %9589 = vmatpush3.bf16.msra.mxu1 %v9586_v3  ;;  %8963 = vmatprep.mubr.msk.f32.mxu1 %vm490_vm0, %v6086_v8 }
 0x869   : > { %9591 = vmatprep.subr.bf16.mxu1 %v9590_v9 }
 0x86b   : > { %8964 = vmatmul.mubr.msk.f32.gmra.mrb[14].mxu1 %vm490_vm0, %v6087_v13 }
 0x86c   : > { %9593 = vmatpush3.bf16.msra.mxu1 %v9590_v9  ;;  %8982 = vmatprep.mubr.msk.f32.mxu1 %vm490_vm0, %v6250_v14 }
 0x86d   : > { %9595 = vmatprep.subr.bf16.mxu1 %v9594_v15 }
 0x86f   : > { %8983 = vmatmul.mubr.msk.f32.vlgmr.msra.gmra.mrb[8].mxu1 %vm490_vm0, %v6251_v19 }
 0x870   : > { %9597 = vmatpush3.bf16.msra.mxu1 %v9594_v15  ;;  %8985 = vmatprep.mubr.msk.f32.mxu1 %vm490_vm0, %v6252_v20 }
 0x871   : > { %9599 = vmatprep.subr.bf16.mxu1 %v9598_v21 }
 0x873   : > { %8986 = vmatmul.mubr.msk.f32.gmra.mrb[10].mxu1 %vm490_vm0, %v6253_v25 }
 0x874   : > { %9601 = vmatpush3.bf16.msra.mxu1 %v9598_v21  ;;  %8988 = vmatprep.mubr.msk.f32.mxu1 %vm490_vm0, %v6254_v26 }
 0x875   : > { %9603 = vmatprep.subr.bf16.mxu1 %v9602_v27 }
 0x877   : > { %8989 = vmatmul.mubr.msk.f32.gmra.mrb[12].mxu1 %vm490_vm0, %v6255_v31 }
 0x878   : > { %9605 = vmatpush3.bf16.msra.mxu1 %v9602_v27  ;;  %8991 = vmatprep.mubr.msk.f32.mxu1 %vm490_vm0, %v6256_v32 }
 0x879   : > { %9607 = vmatprep.subr.bf16.mxu1 %v9606_v33 }
 0x87b   : > { %8992 = vmatmul.mubr.msk.f32.gmra.mrb[14].mxu1 %vm490_vm0, %v6257_v36 }
 0x87c   : > { %9609 = vmatpush3.bf16.msra.mxu1 %v9606_v33  ;;  %9010 = vmatprep.mubr.msk.f32.mxu1 %vm490_vm0, %v6420_v37 }
 0x87d   : > { %9611 = vmatprep.subr.bf16.mxu1 %v9610_v38 }
 0x87f   : > { %9011 = vmatmul.mubr.msk.f32.vlgmr.msra.gmra.mrb[8].mxu1 %vm490_vm0, %v6421_v42 }
 0x880   : > { %9613 = vmatpush3.bf16.msra.mxu1 %v9610_v38  ;;  %9013 = vmatprep.mubr.msk.f32.mxu1 %vm490_vm0, %v6422_v43 }
 0x881   : > { %9615 = vmatprep.subr.bf16.mxu1 %v9614_v44 }
 0x883   : > { %9014 = vmatmul.mubr.msk.f32.gmra.mrb[10].mxu1 %vm490_vm0, %v6423_v48 }
 0x884   : > { %9617 = vmatpush3.bf16.msra.mxu1 %v9614_v44  ;;  %9016 = vmatprep.mubr.msk.f32.mxu1 %vm490_vm0, %v6424_v49 }
 0x885   : > { %9619 = vmatprep.subr.bf16.mxu1 %v9618_v50 }
 0x887   : > { %9017 = vmatmul.mubr.msk.f32.gmra.mrb[12].mxu1 %vm490_vm0, %v6425_v53 }
 0x888   : > { %9621 = vmatpush3.bf16.msra.mxu1 %v9618_v50  ;;  %9019 = vmatprep.mubr.msk.f32.mxu1 %vm490_vm0, %v6426_v54 }
 0x889   : > { %9623 = vmatprep.subr.bf16.mxu1 %v9622_v55 }
 0x88b   : > { %9020 = vmatmul.mubr.msk.f32.gmra.mrb[14].mxu1 %vm490_vm0, %v6427_v56 }
 0x88c   : > { %9625 = vmatpush3.bf16.msra.mxu1 %v9622_v55  ;;  %9038 = vmatprep.mubr.msk.f32.mxu1 %vm490_vm0, %v6590_v57 }
 0x88f   : > { %9039 = vmatmul.mubr.msk.f32.vlgmr.msra.gmra.mrb[8].mxu1 %vm490_vm0, %v6591_v59 }
 0x890   : > { %9041 = vmatprep.mubr.msk.f32.mxu1 %vm490_vm0, %v6592_v60 }
 0x893   : > { %9042 = vmatmul.mubr.msk.f32.gmra.mrb[10].mxu1 %vm490_vm0, %v6593_v61 }
 0x894   : > { %9044 = vmatprep.mubr.msk.f32.mxu1 %vm490_vm0, %v6594_v62 }
 0x897   : > { %9045 = vmatmul.mubr.msk.f32.gmra.mrb[12].mxu1 %vm490_vm0, %v6595_v63 }
 0x898   : > { %9047 = vmatprep.mubr.msk.f32.mxu1 %vm490_vm0, %v6596_v0 }
 0x89b   : > { %9048 = vmatmul.mubr.msk.f32.gmra.mrb[14].mxu1 %vm490_vm0, %v6597_v1 }
 0x962   : > { %v9040_v3 = vpop.f32.mrb[8].mxu1 }
 0x963   : > { %v6761_v4 = vadd.f32 %v9040_v3, %v6759_v2  ;;  %v6712_v5 = vpop.f32.mrb[9].mxu1 }
 0x964   : > { %v6760_v7 = vadd.f32 %v6759_v2, %v6712_v5 }
 0x965   : > { %v6769_v8 = vmax.f32 %v6761_v4, 0.0 }
 0x966   : > { %v6768_v9 = vmax.f32 %v6760_v7, 0.0  ;;  %v9043_v10 = vpop.f32.mrb[10].mxu1 }
 0x967   : > { %v6784_v11 = vmul.f32 %v7459_v6, %v6769_v8  ;;  %v6763_v12 = vadd.f32 %v9043_v10, %v6759_v2  ;;  %v6722_v13 = vpop.f32.mrb[11].mxu1 }
 0x968   : > { %v6783_v14 = vmul.f32 %v7459_v6, %v6768_v9  ;;  %v6762_v15 = vadd.f32 %v6759_v2, %v6722_v13 }
 0x969   : > { %v6771_v16 = vmax.f32 %v6763_v12, 0.0  ;;  %6801 = vrot.lane.b32.xlu0 %v6784_v11, %s10754_s15 }
 0x96a   : > { %v6770_v17 = vmax.f32 %v6762_v15, 0.0  ;;  %6799 = vrot.lane.b32.xlu1 %v6783_v14, %s10754_s15  ;;  %v9046_v18 = vpop.f32.mrb[12].mxu1 }
 0x96b   : > { %v6786_v19 = vmul.f32 %v7459_v6, %v6771_v16  ;;  %v6765_v20 = vadd.f32 %v9046_v18, %v6759_v2  ;;  %v6732_v21 = vpop.f32.mrb[13].mxu1 }
 0x96c   : > { %v6785_v22 = vmul.f32 %v7459_v6, %v6770_v17  ;;  %v6764_v23 = vadd.f32 %v6759_v2, %v6732_v21 }
 0x96d   : > { %v6773_v24 = vmax.f32 %v6765_v20, 0.0  ;;  %6805 = vrot.lane.b32.xlu0 %v6786_v19, %s10754_s15 }
 0x96e   : > { %v6772_v25 = vmax.f32 %v6764_v23, 0.0  ;;  %6803 = vrot.lane.b32.xlu1 %v6785_v22, %s10754_s15  ;;  %v9049_v26 = vpop.f32.mrb[14].mxu1 }
 0x96f   : > { %v6788_v27 = vmul.f32 %v7459_v6, %v6773_v24  ;;  %v6767_v28 = vadd.f32 %v9049_v26, %v6759_v2  ;;  %v6742_v29 = vpop.f32.mrb[15].mxu1 }
 0x970   : > { %v6787_v30 = vmul.f32 %v7459_v6, %v6772_v25  ;;  %v6766_v31 = vadd.f32 %v6759_v2, %v6742_v29 }
 0x971   : > { %v6775_v32 = vmax.f32 %v6767_v28, 0.0  ;;  %6809 = vrot.lane.b32.xlu0 %v6788_v27, %s10754_s15 }
 0x972   : > { %v6774_v33 = vmax.f32 %v6766_v31, 0.0  ;;  %6807 = vrot.lane.b32.xlu1 %v6787_v30, %s10754_s15 }
 0x973   : > { %v6790_v34 = vmul.f32 %v7459_v6, %v6775_v32 }
 0x974   : > { %v6789_v58 = vmul.f32 %v7459_v6, %v6774_v33 }
 0x975   : > { %6813 = vrot.lane.b32.xlu0 %v6790_v34, %s10754_s15 }
 0x976   : > { %6811 = vrot.lane.b32.xlu1 %v6789_v58, %s10754_s15  ;;  %s11904_s15 = scalar_lea.vmem %s11969_s9, %s11976_s25 }
 0x9db   : > { %v6802_v35 = vpop.permute.xlu0 %6801 }
 0x9dc   : > { %6824 = vst.msk [vmem:[#allocation2 + $0x8] sm:$0xff] %vm2042_vm3, %v6802_v35  ;;  %v6800_v36 = vpop.permute.xlu1 %6799 }
 0x9dd   : > { %6823 = vst.msk [vmem:[#allocation2] sm:$0xff] %vm2042_vm3, %v6800_v36 }
 0x9df   : > { %v6806_v37 = vpop.permute.xlu0 %6805 }
 0x9e0   : > { %6826 = vst.msk [vmem:[#allocation2 + $0x18] sm:$0xff] %vm2042_vm3, %v6806_v37  ;;  %v6804_v38 = vpop.permute.xlu1 %6803 }
 0x9e1   : > { %6825 = vst.msk [vmem:[#allocation2 + $0x10] sm:$0xff] %vm2042_vm3, %v6804_v38 }
 0x9e3   : > { %v6834_v41 = vld [vmem:[#allocation2 + $0x8] sm:$0xff]  ;;  %v6810_v42 = vpop.permute.xlu0 %6809 }
 0x9e4   : > { %v6843_v43 = vmul.f32 %v6841_v39, %v6834_v41  ;;  %v6833_v44 = vld [vmem:[#allocation2] sm:$0xff]  ;;  %6828 = vst.msk [vmem:[#allocation2 + $0x28] sm:$0xff] %vm2042_vm3, %v6810_v42  ;;  %v6808_v45 = vpop.permute.xlu1 %6807 }
 0x9e5   : > { %v6842_v46 = vmul.f32 %v6841_v39, %v6833_v44  ;;  %6827 = vst.msk [vmem:[#allocation2 + $0x20] sm:$0xff] %vm2042_vm3, %v6808_v45 }
 0x9e6   : > { %v6852_v47 = vadd.f32 %v6850_v40, %v6843_v43 }
 0x9e7   : > { %v6851_v48 = vadd.f32 %v6850_v40, %v6842_v46  ;;  %v6836_v49 = vld [vmem:[#allocation2 + $0x18] sm:$0xff]  ;;  %v6814_v50 = vpop.permute.xlu0 %6813 }
 0x9e8   : > { %v11854_v51 = vmax.f32 %v6852_v47, 0.0  ;;  %v6845_v52 = vmul.f32 %v6841_v39, %v6836_v49  ;;  %v6835_v53 = vld [vmem:[#allocation2 + $0x10] sm:$0xff]  ;;  %6830 = vst.msk [vmem:[#allocation2 + $0x38] sm:$0xff] %vm2042_vm3, %v6814_v50  ;;  %v6812_v54 = vpop.permute.xlu1 %6811 }
 0x9e9   : > { %v11857_v55 = vmax.f32 %v6851_v48, 0.0  ;;  %v6844_v56 = vmul.f32 %v6841_v39, %v6835_v53  ;;  %6829 = vst.msk [vmem:[#allocation2 + $0x30] sm:$0xff] %vm2042_vm3, %v6812_v54 }
 0x9ea   : > { %v6876_v57 = vmin.f32 %v11854_v51, 20.0  ;;  %v6854_v59 = vadd.f32 %v6850_v40, %v6845_v52  ;;  %vm6868_vm5 = vcmp.gt.f32.partialorder %v11854_v51, 20.0 }
 0x9eb   : > { %v6875_v60 = vmin.f32 %v11857_v55, 20.0  ;;  %v6853_v61 = vadd.f32 %v6850_v40, %v6844_v56  ;;  %v6838_v62 = vld [vmem:[#allocation2 + $0x28] sm:$0xff]  ;;  %vm6867_vm7 = vcmp.gt.f32.partialorder %v11857_v55, 20.0 }
 0x9ec   : > { %v6885_v63 = vmul.f32 1.442695, %v6876_v57  ;;  %v11862_v0 = vmax.f32 %v6854_v59, 0.0  ;;  %v6847_v1 = vmul.f32 %v6841_v39, %v6838_v62  ;;  %v6837_v2 = vld [vmem:[#allocation2 + $0x20] sm:$0xff] }
 0x9ed   : > { %v6883_v3 = vmul.f32 1.442695, %v6875_v60  ;;  %v11864_v4 = vmax.f32 %v6853_v61, 0.0  ;;  %v6846_v5 = vmul.f32 %v6841_v39, %v6837_v2 }
 0x9ee   : > { %10586 = vpow2.f32 %v6885_v63  ;;  %v6878_v6 = vmin.f32 %v11862_v0, 20.0  ;;  %v6856_v7 = vadd.f32 %v6850_v40, %v6847_v1  ;;  %vm6870_vm10 = vcmp.gt.f32.partialorder %v11862_v0, 20.0 }
 0x9ef   : > { %10588 = vpow2.f32 %v6883_v3  ;;  %v6877_v8 = vmin.f32 %v11864_v4, 20.0  ;;  %v6855_v9 = vadd.f32 %v6850_v40, %v6846_v5  ;;  %v6840_v10 = vld [vmem:[#allocation2 + $0x38] sm:$0xff]  ;;  %vm6869_vm12 = vcmp.gt.f32.partialorder %v11864_v4, 20.0 }
 0x9f0   : > { %v6889_v11 = vmul.f32 1.442695, %v6878_v6  ;;  %v11868_v12 = vmax.f32 %v6856_v7, 0.0  ;;  %v6849_v13 = vmul.f32 %v6841_v39, %v6840_v10  ;;  %v6839_v14 = vld [vmem:[#allocation2 + $0x30] sm:$0xff] }
 0x9f1   : > { %v6887_v15 = vmul.f32 1.442695, %v6877_v8  ;;  %v11870_v16 = vmax.f32 %v6855_v9, 0.0  ;;  %v6848_v19 = vmul.f32 %v6841_v39, %v6839_v14 }
 0x9f2   : > { %10590 = vpow2.f32 %v6889_v11  ;;  %v6880_v17 = vmin.f32 %v11868_v12, 20.0  ;;  %v6858_v18 = vadd.f32 %v6850_v40, %v6849_v13  ;;  %vm6872_vm14 = vcmp.gt.f32.partialorder %v11868_v12, 20.0 }
 0x9f3   : > { %10592 = vpow2.f32 %v6887_v15  ;;  %v6879_v20 = vmin.f32 %v11870_v16, 20.0  ;;  %v6857_v25 = vadd.f32 %v6850_v40, %v6848_v19  ;;  %vm6871_vm0 = vcmp.gt.f32.partialorder %v11870_v16, 20.0 }
 0x9f4   : > { %v6893_v21 = vmul.f32 1.442695, %v6880_v17  ;;  %v11874_v22 = vmax.f32 %v6858_v18, 0.0 }
 0x9f5   : > { %v6891_v23 = vmul.f32 1.442695, %v6879_v20  ;;  %v11877_v31 = vmax.f32 %v6857_v25, 0.0 }
 0x9f6   : > { %10594 = vpow2.f32 %v6893_v21  ;;  %v6882_v24 = vmin.f32 %v11874_v22, 20.0  ;;  %vm6874_vm2 = vcmp.gt.f32.partialorder %v11874_v22, 20.0 }
 0x9f7   : > { %10596 = vpow2.f32 %v6891_v23  ;;  %v6881_v37 = vmin.f32 %v11877_v31, 20.0 }
 0x9f8   : > { %v10587_v26 = vpop.eup %10586  ;;  %v6897_v27 = vmul.f32 1.442695, %v6882_v24 }
 0x9f9   : > { %v10589_v28 = vpop.eup %10588  ;;  %v6908_v29 = vadd.f32 1.0, %v10587_v26  ;;  %v6911_v34 = vmul.f32 -0.5, %v10587_v26  ;;  %v6914_v39 = vand.u32 2147483647, %v10587_v26  ;;  %v6895_v46 = vmul.f32 1.442695, %v6881_v37 }
 0x9fa   : > { %v6899_v30 = vadd.f32 1.0, %v10589_v28  ;;  %10598 = vpow2.f32 %v6897_v27  ;;  %v6902_v35 = vmul.f32 -0.5, %v10589_v28  ;;  %v6905_v50 = vand.u32 2147483647, %v10589_v28 }
 0x9fb   : > { %10600 = vlog2.f32 %v6908_v29  ;;  %v6912_v41 = vadd.f32 1.0, %v6911_v34  ;;  %vm11893_vm6 = vcmp.lt.f32.partialorder %v6914_v39, 0.0004427343 }
 0x9fc   : > { %v10591_v32 = vpop.eup %10590  ;;  %10602 = vlog2.f32 %v6899_v30  ;;  %v6903_v44 = vadd.f32 1.0, %v6902_v35  ;;  %vm6906_vm8 = vcmp.lt.f32.partialorder %v6905_v50, 0.0004427343 }
 0x9fd   : > { %v11879_v33 = vpop.eup %10592  ;;  %v6926_v58 = vadd.f32 1.0, %v10591_v32  ;;  %v6929_v42 = vmul.f32 -0.5, %v10591_v32  ;;  %v6913_v53 = vmul.f32 %v10587_v26, %v6912_v41  ;;  %v6932_v56 = vand.u32 2147483647, %v10591_v32 }
 0x9fe   : > { %v6917_v36 = vadd.f32 1.0, %v11879_v33  ;;  %v6920_v47 = vmul.f32 -0.5, %v11879_v33  ;;  %v6904_v61 = vmul.f32 %v10589_v28, %v6903_v44  ;;  %v6923_v5 = vand.u32 2147483647, %v11879_v33 }
 0x9ff   : > { %10604 = vlog2.f32 %v6926_v58  ;;  %v6930_v54 = vadd.f32 1.0, %v6929_v42  ;;  %vm11914_vm9 = vcmp.lt.f32.partialorder %v6932_v56, 0.0004427343 }
 0xa00   : > { %v11883_v38 = vpop.eup %10594  ;;  %10606 = vlog2.f32 %v6917_v36  ;;  %v6921_v1 = vadd.f32 1.0, %v6920_v47  ;;  %vm6924_vm11 = vcmp.lt.f32.partialorder %v6923_v5, 0.0004427343 }
 0xa01   : > { %v11885_v40 = vpop.eup %10596  ;;  %v6944_v43 = vadd.f32 1.0, %v11883_v38  ;;  %v6947_v62 = vmul.f32 -0.5, %v11883_v38  ;;  %v6931_v9 = vmul.f32 %v10591_v32, %v6930_v54  ;;  %v6950_v19 = vand.u32 2147483647, %v11883_v38 }
 0xa02   : > { %v6935_v45 = vadd.f32 1.0, %v11885_v40  ;;  %v6938_v2 = vmul.f32 -0.5, %v11885_v40 }
 0xa03   : > { %10608 = vlog2.f32 %v6944_v43  ;;  %v6948_v15 = vadd.f32 1.0, %v6947_v62  ;;  %vm6951_vm13 = vcmp.lt.f32.partialorder %v6950_v19, 0.0004427343 }
 0xa04   : > { %v11890_v48 = vpop.eup %10598  ;;  %10610 = vlog2.f32 %v6935_v45  ;;  %v6939_v20 = vadd.f32 1.0, %v6938_v2 }
 0xa05   : > { %v10601_v52 = vpop.eup %10600  ;;  %v6962_v57 = vadd.f32 1.0, %v11890_v48  ;;  %10612 = vpow2.f32 %v6895_v46  ;;  %v6965_v17 = vmul.f32 -0.5, %v11890_v48  ;;  %v6949_v29 = vmul.f32 %v11883_v38, %v6948_v15 }
 0xa06   : > { %v10603_v59 = vpop.eup %10602  ;;  %v6910_v60 = vmul.f32 0.6931472, %v10601_v52 }
 0xa07   : > { %v6901_v63 = vmul.f32 0.6931472, %v10603_v59  ;;  %10614 = vlog2.f32 %v6962_v57  ;;  %v6966_v30 = vadd.f32 1.0, %v6965_v17 }
 0xa08   : > { %v6916_v3 = vsel %vm11893_vm6, %v6913_v53, %v6910_v60 }
 0xa09   : > { %v10605_v6 = vpop.eup %10604  ;;  %v6972_v7 = vsel %vm6868_vm5, %v11854_v51, %v6916_v3  ;;  %v6907_v8 = vsel %vm6906_vm8, %v6904_v61, %v6901_v63  ;;  %v6922_v51 = vmul.f32 %v11879_v33, %v6921_v1  ;;  %v6968_v33 = vand.u32 2147483647, %v11890_v48 }
 0xa0a   : > { %v10607_v11 = vpop.eup %10606  ;;  %6981 = vst.msk [vmem:[%s11904_s15 + $0x8] sm:$0xff] %vm6979_vm4, %v6972_v7  ;;  %v6971_v13 = vsel %vm6867_vm7, %v11857_v55, %v6907_v8  ;;  %v6928_v14 = vmul.f32 0.6931472, %v10605_v6  ;;  %v6941_v55 = vand.u32 2147483647, %v11885_v40  ;;  %vm6873_vm5 = vcmp.gt.f32.partialorder %v11877_v31, 20.0 }
 0xa0b   : > { %6980 = vst.msk [vmem:[%s11904_s15] sm:$0xff] %vm6979_vm4, %v6971_v13  ;;  %v6919_v18 = vmul.f32 0.6931472, %v10607_v11  ;;  %vm6969_vm1 = vcmp.lt.f32.partialorder %v6968_v33, 0.0004427343 }
 0xa0c   : > { %v6934_v21 = vsel %vm11914_vm9, %v6931_v9, %v6928_v14  ;;  %vm6942_vm15 = vcmp.lt.f32.partialorder %v6941_v55, 0.0004427343 }
 0xa0d   : > { %v10609_v23 = vpop.eup %10608  ;;  %v6974_v24 = vsel %vm6870_vm10, %v11862_v0, %v6934_v21  ;;  %v6925_v25 = vsel %vm6924_vm11, %v6922_v51, %v6919_v18  ;;  %v6940_v0 = vmul.f32 %v11885_v40, %v6939_v20  ;;  %v6967_v40 = vmul.f32 %v11890_v48, %v6966_v30 }
 0xa0e   : > { %v10611_v26 = vpop.eup %10610  ;;  %6983 = vst.msk [vmem:[%s11904_s15 + $0x18] sm:$0xff] %vm6979_vm4, %v6974_v24  ;;  %v6973_v27 = vsel %vm6869_vm12, %v11864_v4, %v6925_v25  ;;  %v6946_v28 = vmul.f32 0.6931472, %v10609_v23 }
 0xa0f   : > { %6982 = vst.msk [vmem:[%s11904_s15 + $0x10] sm:$0xff] %vm6979_vm4, %v6973_v27  ;;  %v6937_v32 = vmul.f32 0.6931472, %v10611_v26  ;;  %v10613_v34 = vpop.eup %10612 }
 0xa10   : > { %v6952_v58 = vsel %vm6951_vm13, %v6949_v29, %v6946_v28  ;;  %v6953_v37 = vadd.f32 1.0, %v10613_v34  ;;  %v6956_v42 = vmul.f32 -0.5, %v10613_v34  ;;  %v6959_v44 = vand.u32 2147483647, %v10613_v34 }
 0xa11   : > { %v10615_v4 = vpop.eup %10614  ;;  %v6976_v35 = vsel %vm6872_vm14, %v11868_v12, %v6952_v58  ;;  %v6943_v36 = vsel %vm6942_vm15, %v6940_v0, %v6937_v32 }
 0xa12   : > { %6985 = vst.msk [vmem:[%s11904_s15 + $0x28] sm:$0xff] %vm6979_vm4, %v6976_v35  ;;  %v6975_v38 = vsel %vm6871_vm0, %v11870_v16, %v6943_v36  ;;  %v6964_v39 = vmul.f32 0.6931472, %v10615_v4  ;;  %10616 = vlog2.f32 %v6953_v37  ;;  %v6957_v43 = vadd.f32 1.0, %v6956_v42 }
 0xa13   : > { %6984 = vst.msk [vmem:[%s11904_s15 + $0x20] sm:$0xff] %vm6979_vm4, %v6975_v38  ;;  %vm6960_vm3 = vcmp.lt.f32.partialorder %v6959_v44, 0.0004427343 }
 0xa14   : > { %v6970_v41 = vsel %vm6969_vm1, %v6967_v40, %v6964_v39  ;;  %v6958_v46 = vmul.f32 %v10613_v34, %v6957_v43 }
 0xa15   : > { %v6978_v12 = vsel %vm6874_vm2, %v11874_v22, %v6970_v41 }
 0xa16   : > { %6987 = vst.msk [vmem:[%s11904_s15 + $0x38] sm:$0xff] %vm6979_vm4, %v6978_v12 }
 0xa1c   : > { %v10617_v45 = vpop.eup %10616 }
 0xa1d   : > { %v6955_v16 = vmul.f32 0.6931472, %v10617_v45 }
 0xa1f   : > { %v6961_v47 = vsel %vm6960_vm3, %v6958_v46, %v6955_v16 }
 0xa20   : > { %v6977_v48 = vsel %vm6873_vm5, %v11877_v31, %v6961_v47 }
 0xa21   : > { %6986 = vst.msk [vmem:[%s11904_s15 + $0x30] sm:$0xff] %vm6979_vm4, %v6977_v48 }
 0xa22 PF: > { %s22_s30 = sadd.s32 1, %s10736_s30  }
 0xa23   : > { %p19_p2 = scmp.ge.s32.totalorder %s22_s30, 4  }
 0xa25   :  { %21 = sbr.rel (!%p19_p2) target bundleno = 3 (0x3), region = 136 }
 0xa2c   :  { %7009 = vsyncpa [#allocation5], 1 }
 0xa2d   :  { %7011 = vsyncpa [#allocation5 + $0x1], 1 }
 0xa2e   :  { %7012 = vsyncpa [#allocation8], 1 }
 0xa2f   :  { %7013 = vsyncpa [#allocation6], 1 }
 0xa30   :  { %7015 = vsyncpa [#allocation6 + $0x1], 1 }

</bundles_post_ra>
